<compile_context>
chip_gen: v7x
topology: tpu7x:2x2x1
jax: 0.10.0
libtpu: 0.0.40
codegen_flags: <defaults>
</compile_context>

<pallas_src>
import functools
import math

import jax
import jax.numpy as jnp
from jax.experimental import pallas as pl
from jax.experimental.pallas import tpu as pltpu


# ----------------------------------------------------------------------------
# helpers
# ----------------------------------------------------------------------------
def _ceil_to(x, m):
    return (x + m - 1) // m * m


def _pick_tile(dim, align, max_tile):
    """Return (padded_dim, tile) with tile | padded_dim, tile % align == 0."""
    padded = _ceil_to(dim, align)
    if padded <= max_tile:
        return padded, padded
    padded = _ceil_to(dim, max_tile)
    return padded, max_tile


def _pad2d(x, rows, cols):
    r, c = x.shape
    if (r, c) == (rows, cols):
        return x
    return jnp.pad(x, ((0, rows - r), (0, cols - c)))


# ----------------------------------------------------------------------------
# Pallas kernels
# ----------------------------------------------------------------------------
def _fused_matmul_kernel(*refs, relu, has_res):
    """out = [relu]( a @ w + bias [+ residual] ), f32 MXU accumulation.

    BN scale is pre-folded into `w`, so the epilogue is just add/max/cast.
    """
    if has_res:
        a_ref, w_ref, b_ref, r_ref, o_ref, acc_ref = refs
    else:
        a_ref, w_ref, b_ref, o_ref, acc_ref = refs
        r_ref = None
    kk = pl.program_id(2)

    @pl.when(kk == 0)
    def _init():
        acc_ref[...] = jnp.zeros_like(acc_ref)

    acc_ref[...] += jnp.dot(a_ref[...], w_ref[...],
                            preferred_element_type=jnp.float32)

    @pl.when(kk == pl.num_programs(2) - 1)
    def _finalize():
        y = acc_ref[...] + b_ref[...]
        if has_res:
            y = y + r_ref[...].astype(jnp.float32)
        if relu:
            y = jnp.maximum(y, 0.0)
        o_ref[...] = y.astype(o_ref.dtype)


def fused_matmul(a, w, bias, residual=None, relu=False,
                 out_dtype=jnp.bfloat16):
    """Tiled, pipelined bf16 matmul with bias/residual/ReLU epilogue."""
    m, k = a.shape
    _, n = w.shape

    mp, tm = _pick_tile(m, 16, 512)      # sublane dim of A / out
    kp, tk = _pick_tile(k, 128, 1024)    # lane dim of A, sublane dim of W
    np_, tn = _pick_tile(n, 128, 256)    # lane dim of W / out (lane-dense)

    a_p = _pad2d(a.astype(jnp.bfloat16), mp, kp)
    w_p = _pad2d(w.astype(jnp.bfloat16), kp, np_)
    b_p = _pad2d(bias.astype(jnp.float32).reshape(1, n), 1, np_)

    inputs = [a_p, w_p, b_p]
    in_specs = [
        pl.BlockSpec((tm, tk), lambda i, j, kk: (i, kk)),
        pl.BlockSpec((tk, tn), lambda i, j, kk: (kk, j)),
        pl.BlockSpec((1, tn), lambda i, j, kk: (0, j)),
    ]
    has_res = residual is not None
    if has_res:
        inputs.append(_pad2d(residual.astype(jnp.bfloat16), mp, np_))
        in_specs.append(pl.BlockSpec((tm, tn), lambda i, j, kk: (i, j)))

    out = pl.pallas_call(
        functools.partial(_fused_matmul_kernel, relu=relu, has_res=has_res),
        out_shape=jax.ShapeDtypeStruct((mp, np_), out_dtype),
        grid=(mp // tm, np_ // tn, kp // tk),
        in_specs=in_specs,
        out_specs=pl.BlockSpec((tm, tn), lambda i, j, kk: (i, j)),
        scratch_shapes=[pltpu.VMEM((tm, tn), jnp.float32)],
        compiler_params=pltpu.CompilerParams(
            dimension_semantics=("parallel", "parallel", "arbitrary"),
            vmem_limit_bytes=32 * 1024 * 1024),
    )(*inputs)

    if (mp, np_) != (m, n):
        out = out[:m, :n]
    return out


def _gap_kernel(x_ref, o_ref, *, inv_count):
    """Tiled spatial mean: accumulate partial sums in the resident out block."""
    s = pl.program_id(0)

    @pl.when(s == 0)
    def _init():
        o_ref[...] = jnp.zeros_like(o_ref)

    o_ref[...] += jnp.sum(x_ref[...].astype(jnp.float32), axis=1)

    @pl.when(s == pl.num_programs(0) - 1)
    def _finalize():
        o_ref[...] = o_ref[...] * inv_count


def global_avg_pool(x):
    n, h, w, c = x.shape
    hw = h * w
    hwp, ts = _pick_tile(hw, 16, 512)
    cp = _ceil_to(c, 128)
    xr = x.reshape(n, hw, c)
    if (hwp, cp) != (hw, c):
        xr = jnp.pad(xr, ((0, 0), (0, hwp - hw), (0, cp - c)))
    out = pl.pallas_call(
        functools.partial(_gap_kernel, inv_count=1.0 / float(hw)),
        out_shape=jax.ShapeDtypeStruct((n, cp), jnp.float32),
        grid=(hwp // ts,),
        in_specs=[pl.BlockSpec((n, ts, cp), lambda s: (0, s, 0))],
        out_specs=pl.BlockSpec((n, cp), lambda s: (0, 0)),
        compiler_params=pltpu.CompilerParams(
            dimension_semantics=("arbitrary",)),
    )(xr)
    if cp != c:
        out = out[:, :c]
    return out.reshape(n, 1, 1, c)


# ----------------------------------------------------------------------------
# conv (+ fused BN / ReLU / residual) built on the tiled matmul
# ----------------------------------------------------------------------------
def conv_bn_act(x, conv_p, bn_p=None, *, stride=1, padding=0, dilation=1,
                relu=False, residual=None, out_dtype=jnp.bfloat16):
    """x: (N,H,W,Cin); conv_p['w']: (Cout,Cin,kh,kw) PyTorch layout."""
    w = conv_p["w"]
    n, h, wd, cin = x.shape
    cout, _, kh, kw = w.shape
    ho = (h + 2 * padding - dilation * (kh - 1) - 1) // stride + 1
    wo = (wd + 2 * padding - dilation * (kw - 1) - 1) // stride + 1

    # --- statically drop taps whose receptive field is entirely zero padding.
    taps = []
    for i in range(kh):
        for j in range(kw):
            r0 = -padding + i * dilation
            rl = (ho - 1) * stride - padding + i * dilation
            c0 = -padding + j * dilation
            cl = (wo - 1) * stride - padding + j * dilation
            if rl >= 0 and r0 <= h - 1 and cl >= 0 and c0 <= wd - 1:
                taps.append((i, j))
    if not taps:
        taps = [(i, j) for i in range(kh) for j in range(kw)]

    if kh == 1 and kw == 1 and padding == 0 and dilation == 1:
        patches = x[:, ::stride, ::stride, :].reshape(n * ho * wo, cin)
        wmat = w.reshape(cout, cin).T
    else:
        # minimal padding that covers the *active* taps only.
        pt = max(max(0, padding - i * dilation) for i, _ in taps)
        pb = max(max(0, (ho - 1) * stride - padding + i * dilation - (h - 1))
                 for i, _ in taps)
        pleft = max(max(0, padding - j * dilation) for _, j in taps)
        pright = max(max(0, (wo - 1) * stride - padding + j * dilation - (wd - 1))
                     for _, j in taps)
        xp = jnp.pad(x, ((0, 0), (pt, pb), (pleft, pright), (0, 0)))
        cols, wrows = [], []
        for (i, j) in taps:
            hs = i * dilation - padding + pt
            ws = j * dilation - padding + pleft
            sl = xp[:, hs:hs + (ho - 1) * stride + 1:stride,
                    ws:ws + (wo - 1) * stride + 1:stride, :]
            cols.append(sl)
            wrows.append(w[:, :, i, j])          # (Cout, Cin)
        patches = jnp.concatenate(cols, axis=-1).reshape(
            n * ho * wo, len(taps) * cin)
        wmat = jnp.concatenate(wrows, axis=1).T  # (len(taps)*Cin, Cout)

    # --- fold BN (inference running stats) into the weight / bias.
    if bn_p is not None:
        scale = bn_p["gamma"] / jnp.sqrt(bn_p["var"] + 1e-5)
        bias = bn_p["beta"] - bn_p["mean"] * scale
        wmat = wmat * scale[None, :]             # fold scale into weight cols
    else:
        bias = conv_p["b"] if conv_p["b"] is not None else jnp.zeros(
            (cout,), jnp.float32)

    res2d = None
    if residual is not None:
        res2d = residual.reshape(n * ho * wo, cout)

    y = fused_matmul(patches, wmat, bias, residual=res2d,
                     relu=relu, out_dtype=out_dtype)
    return y.reshape(n, ho, wo, cout)


def maxpool_3x3_s2_p1(x):
    # Memory-bound elementwise-max over 9 shifted views; left to XLA fusion
    # (no 9x HBM materialization, no MXU work).
    n, h, w, c = x.shape
    ho = (h + 2 - 3) // 2 + 1
    wo = (w + 2 - 3) // 2 + 1
    xp = jnp.pad(x, ((0, 0), (1, 1), (1, 1), (0, 0)),
                 constant_values=-jnp.inf)
    out = None
    for i in range(3):
        for j in range(3):
            sl = xp[:, i:i + (ho - 1) * 2 + 1:2, j:j + (wo - 1) * 2 + 1:2, :]
            out = sl if out is None else jnp.maximum(out, sl)
    return out


def bilinear_resize(x, out_h, out_w):
    """Bilinear, PyTorch align_corners=False semantics. Gather + 2-tap lerp."""
    n, h, w, c = x.shape
    if h == 1 and w == 1:
        return jnp.broadcast_to(x, (n, out_h, out_w, c))

    def coords(in_size, out_size):
        scale = in_size / out_size
        dst = jnp.arange(out_size, dtype=jnp.float32)
        src = jnp.maximum((dst + 0.5) * scale - 0.5, 0.0)
        i0 = jnp.clip(jnp.floor(src), 0, in_size - 1).astype(jnp.int32)
        i1 = jnp.minimum(i0 + 1, in_size - 1)
        w1 = src - i0.astype(jnp.float32)
        return i0, i1, 1.0 - w1, w1

    xf = x.astype(jnp.float32)
    i0, i1, w0, w1 = coords(h, out_h)
    xf = (xf[:, i0] * w0[None, :, None, None]
          + xf[:, i1] * w1[None, :, None, None])
    j0, j1, v0, v1 = coords(w, out_w)
    xf = (xf[:, :, j0] * v0[None, None, :, None]
          + xf[:, :, j1] * v1[None, None, :, None])
    return xf


# ----------------------------------------------------------------------------
# Parameter construction (deterministic synthetic init -- no checkpoint load)
# ----------------------------------------------------------------------------
class KeyGen:
    def __init__(self, key):
        self.key = key

    def __call__(self):
        self.key, sub = jax.random.split(self.key)
        return sub


def init_conv(kg, cout, cin, kh, kw, bias=False):
    fan_in = cin * kh * kw
    w = jax.random.normal(kg(), (cout, cin, kh, kw), jnp.float32) * (
        0.5 / math.sqrt(fan_in))
    b = 0.01 * jax.random.normal(kg(), (cout,), jnp.float32) if bias else None
    return {"w": w, "b": b}


def init_bn(kg, c):
    return {
        "gamma": 1.0 + 0.05 * jax.random.normal(kg(), (c,), jnp.float32),
        "beta": 0.05 * jax.random.normal(kg(), (c,), jnp.float32),
        "mean": 0.05 * jax.random.normal(kg(), (c,), jnp.float32),
        "var": 1.0 + 0.05 * jnp.abs(jax.random.normal(kg(), (c,), jnp.float32)),
    }


def make_bottleneck(kg, inplanes, planes, stride, dilation, downsample):
    p = {
        "conv1": init_conv(kg, planes, inplanes, 1, 1),
        "bn1": init_bn(kg, planes),
        "conv2": init_conv(kg, planes, planes, 3, 3),
        "bn2": init_bn(kg, planes),
        "conv3": init_conv(kg, planes * 4, planes, 1, 1),
        "bn3": init_bn(kg, planes * 4),
        "stride": stride,
        "dilation": dilation,
    }
    if downsample:
        p["down_conv"] = init_conv(kg, planes * 4, inplanes, 1, 1)
        p["down_bn"] = init_bn(kg, planes * 4)
    return p


def make_layer(kg, inplanes, planes, blocks, stride, dilation, dilate):
    previous_dilation = dilation
    if dilate:
        dilation *= stride
        stride = 1
    layers = []
    downsample = (stride != 1) or (inplanes != planes * 4)
    layers.append(make_bottleneck(kg, inplanes, planes, stride,
                                  previous_dilation, downsample))
    inplanes = planes * 4
    for _ in range(1, blocks):
        layers.append(make_bottleneck(kg, inplanes, planes, 1, dilation, False))
    return layers, inplanes, dilation


def make_aspp(kg, in_ch, out_ch, rates):
    p = {
        "rates": rates,
        "b0_conv": init_conv(kg, out_ch, in_ch, 1, 1),
        "b0_bn": init_bn(kg, out_ch),
        "pool_conv": init_conv(kg, out_ch, in_ch, 1, 1),
        "pool_bn": init_bn(kg, out_ch),
        "proj_conv": init_conv(kg, out_ch, (2 + len(rates)) * out_ch, 1, 1),
        "proj_bn": init_bn(kg, out_ch),
    }
    for i, _ in enumerate(rates):
        p[f"b{i + 1}_conv"] = init_conv(kg, out_ch, in_ch, 3, 3)
        p[f"b{i + 1}_bn"] = init_bn(kg, out_ch)
    return p


def make_params(n_classes=1, width=8):
    """ResNet-101 structure with a width multiplier (64 -> `width`)."""
    kg = KeyGen(jax.random.PRNGKey(1234))
    params = {}
    params["conv1"] = init_conv(kg, width, 3, 7, 7)
    params["bn1"] = init_bn(kg, width)

    inplanes, dilation = width, 1
    params["layer1"], inplanes, dilation = make_layer(kg, inplanes, width, 3, 1, dilation, False)
    params["layer2"], inplanes, dilation = make_layer(kg, inplanes, 2 * width, 4, 2, dilation, False)
    params["layer3"], inplanes, dilation = make_layer(kg, inplanes, 4 * width, 23, 2, dilation, True)
    params["layer4"], inplanes, dilation = make_layer(kg, inplanes, 8 * width, 3, 2, dilation, True)

    aspp_out = 4 * width  # analogous to 256 when width == 64
    params["classifier"] = {
        "aspp": make_aspp(kg, inplanes, aspp_out, [12, 24, 36]),
        "head_conv": init_conv(kg, aspp_out, aspp_out, 3, 3),
        "head_bn": init_bn(kg, aspp_out),
        "cls_conv": init_conv(kg, n_classes, aspp_out, 1, 1, bias=True),
    }
    return params


# ----------------------------------------------------------------------------
# Forward pass
# ----------------------------------------------------------------------------
def bottleneck_fwd(x, p):
    if "down_conv" in p:
        identity = conv_bn_act(x, p["down_conv"], p["down_bn"],
                               stride=p["stride"], relu=False)
    else:
        identity = x
    out = conv_bn_act(x, p["conv1"], p["bn1"], relu=True)
    out = conv_bn_act(out, p["conv2"], p["bn2"], stride=p["stride"],
                      padding=p["dilation"], dilation=p["dilation"], relu=True)
    # conv3 + BN + residual add + ReLU fused into one matmul epilogue.
    out = conv_bn_act(out, p["conv3"], p["bn3"], relu=True, residual=identity)
    return out


def aspp_fwd(x, p):
    n, h, w, c = x.shape
    branches = [conv_bn_act(x, p["b0_conv"], p["b0_bn"], relu=True)]
    for i, r in enumerate(p["rates"]):
        branches.append(conv_bn_act(x, p[f"b{i + 1}_conv"], p[f"b{i + 1}_bn"],
                                    padding=r, dilation=r, relu=True))
    pooled = global_avg_pool(x)
    pooled = conv_bn_act(pooled, p["pool_conv"], p["pool_bn"], relu=True)
    pooled = bilinear_resize(pooled, h, w)      # 1x1 -> broadcast
    branches.append(pooled.astype(x.dtype))
    cat = jnp.concatenate(branches, axis=-1)
    out = conv_bn_act(cat, p["proj_conv"], p["proj_bn"], relu=True)
    # Dropout(0.5): identity under inference semantics.
    return out


def classifier_fwd(x, p):
    x = aspp_fwd(x, p["aspp"])
    x = conv_bn_act(x, p["head_conv"], p["head_bn"], padding=1, relu=True)
    x = conv_bn_act(x, p["cls_conv"], None, relu=False, out_dtype=jnp.float32)
    return x


def deeplabv3_forward(params, x_nchw):
    """x_nchw: (N,3,H,W) f32 -> (N,n_classes,H,W) f32 (= model(x)['out'])."""
    x = jnp.transpose(x_nchw, (0, 2, 3, 1)).astype(jnp.bfloat16)  # NHWC bf16
    n, h_in, w_in, _ = x.shape

    # stem
    x = conv_bn_act(x, params["conv1"], params["bn1"], stride=2, padding=3,
                    relu=True)
    x = maxpool_3x3_s2_p1(x)

    # residual layers (output stride 8: layers 3/4 dilated)
    for layer_name in ("layer1", "layer2", "layer3", "layer4"):
        for blk in params[layer_name]:
            x = bottleneck_fwd(x, blk)

    # DeepLab head + final bilinear upsample to input resolution
    x = classifier_fwd(x, params["classifier"])
    x = bilinear_resize(x, h_in, w_in)
    return jnp.transpose(x, (0, 3, 1, 2)).astype(jnp.float32)  # NCHW


# ----------------------------------------------------------------------------
if __name__ == "__main__":
    key = jax.random.PRNGKey(0)
    x = jax.random.normal(key, (2, 3, 32, 32), jnp.float32)  # NCHW input

    params = make_params(n_classes=1, width=8)
    fwd = jax.jit(functools.partial(deeplabv3_forward, params))
    out = jax.block_until_ready(fwd(x))

    assert out.shape == (2, 1, 32, 32), out.shape
    assert bool(jnp.all(jnp.isfinite(out)))
    print("KERNEL_OK")
</pallas_src>

<mosaic_0001>
module attributes {stable_mosaic.version = 11 : i64} {
  func.func @_fused_matmul_kernel(%arg0: i32, %arg1: i32, %arg2: i32, %arg3: memref<512x256xbf16, #tpu.memory_space<vmem>>, %arg4: memref<256x128xbf16, #tpu.memory_space<vmem>>, %arg5: memref<1x128xf32, #tpu.memory_space<vmem>>, %arg6: memref<512x128xbf16, #tpu.memory_space<vmem>>, %arg7: memref<512x128xf32, #tpu.memory_space<vmem>>) attributes {dimension_semantics = [#tpu.dimension_semantics<parallel>, #tpu.dimension_semantics<parallel>, #tpu.dimension_semantics<arbitrary>], iteration_bounds = array<i64: 1, 1, 1>, scalar_prefetch = 0 : i64, scratch_operands = 1 : i64, tpu.core_type = #tpu.core_type<tc>, window_params = [{transform_indices = @transform_0, window_bounds = array<i64: 512, 256>}, {transform_indices = @transform_1, window_bounds = array<i64: 256, 128>}, {transform_indices = @transform_2, window_bounds = array<i64: 1, 128>}, {transform_indices = @transform_3, window_bounds = array<i64: 512, 128>}]} {
    %c0_i32 = arith.constant 0 : i32
    %0 = arith.cmpi eq, %arg2, %c0_i32 : i32
    %1 = arith.extui %0 : i1 to i32
    %c0_i32_0 = arith.constant 0 : i32
    %2 = arith.cmpi ne, %1, %c0_i32_0 : i32
    scf.if %2 {
      %cst_10 = arith.constant 0.000000e+00 : f32
      %12 = vector.broadcast %cst_10 : f32 to vector<512x128xf32>
      %c0_11 = arith.constant 0 : index
      %c0_12 = arith.constant 0 : index
      %13 = vector.load %arg7[%c0_11, %c0_12] : memref<512x128xf32, #tpu.memory_space<vmem>>, vector<512x128xf32>
      tpu.vector_store %arg7[%c0_11, %c0_12], %12 {strides = array<i32>} : memref<512x128xf32, #tpu.memory_space<vmem>>, vector<512x128xf32>,
    } else {
    }
    %c0 = arith.constant 0 : index
    %c0_1 = arith.constant 0 : index
    %3 = vector.load %arg7[%c0, %c0_1] : memref<512x128xf32, #tpu.memory_space<vmem>>, vector<512x128xf32>
    %c0_2 = arith.constant 0 : index
    %c0_3 = arith.constant 0 : index
    %4 = vector.load %arg3[%c0_2, %c0_3] : memref<512x256xbf16, #tpu.memory_space<vmem>>, vector<512x256xbf16>
    %c0_4 = arith.constant 0 : index
    %c0_5 = arith.constant 0 : index
    %5 = vector.load %arg4[%c0_4, %c0_5] : memref<256x128xbf16, #tpu.memory_space<vmem>>, vector<256x128xbf16>
    %cst = arith.constant dense<0.000000e+00> : vector<512x128xf32>
    %6 = tpu.matmul %4, %5, %cst {dimension_numbers = #tpu.dot_dimension_numbers<[1], [0], [0], [1], [0, 0, 1, 1], [], []>} : vector<512x256xbf16>, vector<256x128xbf16>, vector<512x128xf32> -> vector<512x128xf32>
    %7 = arith.addf %3, %6 : vector<512x128xf32>
    %c0_6 = arith.constant 0 : index
    %c0_7 = arith.constant 0 : index
    %8 = vector.load %arg7[%c0_6, %c0_7] : memref<512x128xf32, #tpu.memory_space<vmem>>, vector<512x128xf32>
    tpu.vector_store %arg7[%c0_6, %c0_7], %7 {strides = array<i32>} : memref<512x128xf32, #tpu.memory_space<vmem>>, vector<512x128xf32>,
    %c0_i32_8 = arith.constant 0 : i32
    %9 = arith.cmpi eq, %arg2, %c0_i32_8 : i32
    %10 = arith.extui %9 : i1 to i32
    %c0_i32_9 = arith.constant 0 : i32
    %11 = arith.cmpi ne, %10, %c0_i32_9 : i32
    scf.if %11 {
      %c0_10 = arith.constant 0 : index
      %c0_11 = arith.constant 0 : index
      %12 = vector.load %arg7[%c0_10, %c0_11] : memref<512x128xf32, #tpu.memory_space<vmem>>, vector<512x128xf32>
      %c0_12 = arith.constant 0 : index
      %c0_13 = arith.constant 0 : index
      %13 = vector.load %arg5[%c0_12, %c0_13] : memref<1x128xf32, #tpu.memory_space<vmem>>, vector<1x128xf32>
      %14 = vector.broadcast %13 : vector<1x128xf32> to vector<512x128xf32>
      %15 = arith.addf %12, %14 : vector<512x128xf32>
      %cst_14 = arith.constant 0.000000e+00 : f32
      %16 = vector.broadcast %cst_14 : f32 to vector<512x128xf32>
      %17 = arith.maximumf %15, %16 : vector<512x128xf32>
      %18 = arith.truncf %17 : vector<512x128xf32> to vector<512x128xbf16>
      %c0_15 = arith.constant 0 : index
      %c0_16 = arith.constant 0 : index
      %19 = vector.load %arg6[%c0_15, %c0_16] : memref<512x128xbf16, #tpu.memory_space<vmem>>, vector<512x128xbf16>
      tpu.vector_store %arg6[%c0_15, %c0_16], %18 {strides = array<i32>} : memref<512x128xbf16, #tpu.memory_space<vmem>>, vector<512x128xbf16>,
    } else {
    }
    return
  }
  func.func @transform_0(%arg0: i32, %arg1: i32, %arg2: i32) -> (i32, i32) {
    %c0_i32 = arith.constant 0 : i32
    return %arg0, %arg2 : i32, i32
  }
  func.func @transform_1(%arg0: i32, %arg1: i32, %arg2: i32) -> (i32, i32) {
    %c0_i32 = arith.constant 0 : i32
    return %arg2, %arg1 : i32, i32
  }
  func.func @transform_2(%arg0: i32, %arg1: i32, %arg2: i32) -> (i32, i32) {
    %c0_i32 = arith.constant 0 : i32
    %c0_i32_0 = arith.constant 0 : i32
    return %c0_i32, %arg1 : i32, i32
  }
  func.func @transform_3(%arg0: i32, %arg1: i32, %arg2: i32) -> (i32, i32) {
    %c0_i32 = arith.constant 0 : i32
    return %arg0, %arg1 : i32, i32
  }
}

module attributes {stable_mosaic.version = 11 : i64} {
  func.func @_fused_matmul_kernel(%arg0: i32, %arg1: i32, %arg2: i32, %arg3: memref<128x128xbf16, #tpu.memory_space<vmem>>, %arg4: memref<128x128xbf16, #tpu.memory_space<vmem>>, %arg5: memref<1x128xf32, #tpu.memory_space<vmem>>, %arg6: memref<128x128xbf16, #tpu.memory_space<vmem>>, %arg7: memref<128x128xf32, #tpu.memory_space<vmem>>) attributes {dimension_semantics = [#tpu.dimension_semantics<parallel>, #tpu.dimension_semantics<parallel>, #tpu.dimension_semantics<arbitrary>], iteration_bounds = array<i64: 1, 1, 1>, scalar_prefetch = 0 : i64, scratch_operands = 1 : i64, tpu.core_type = #tpu.core_type<tc>, window_params = [{transform_indices = @transform_0, window_bounds = array<i64: 128, 128>}, {transform_indices = @transform_1, window_bounds = array<i64: 128, 128>}, {transform_indices = @transform_2, window_bounds = array<i64: 1, 128>}, {transform_indices = @transform_3, window_bounds = array<i64: 128, 128>}]} {
    %c0_i32 = arith.constant 0 : i32
    %0 = arith.cmpi eq, %arg2, %c0_i32 : i32
    %1 = arith.extui %0 : i1 to i32
    %c0_i32_0 = arith.constant 0 : i32
    %2 = arith.cmpi ne, %1, %c0_i32_0 : i32
    scf.if %2 {
      %cst_10 = arith.constant 0.000000e+00 : f32
      %12 = vector.broadcast %cst_10 : f32 to vector<128x128xf32>
      %c0_11 = arith.constant 0 : index
      %c0_12 = arith.constant 0 : index
      %13 = vector.load %arg7[%c0_11, %c0_12] : memref<128x128xf32, #tpu.memory_space<vmem>>, vector<128x128xf32>
      tpu.vector_store %arg7[%c0_11, %c0_12], %12 {strides = array<i32>} : memref<128x128xf32, #tpu.memory_space<vmem>>, vector<128x128xf32>,
    } else {
    }
    %c0 = arith.constant 0 : index
    %c0_1 = arith.constant 0 : index
    %3 = vector.load %arg7[%c0, %c0_1] : memref<128x128xf32, #tpu.memory_space<vmem>>, vector<128x128xf32>
    %c0_2 = arith.constant 0 : index
    %c0_3 = arith.constant 0 : index
    %4 = vector.load %arg3[%c0_2, %c0_3] : memref<128x128xbf16, #tpu.memory_space<vmem>>, vector<128x128xbf16>
    %c0_4 = arith.constant 0 : index
    %c0_5 = arith.constant 0 : index
    %5 = vector.load %arg4[%c0_4, %c0_5] : memref<128x128xbf16, #tpu.memory_space<vmem>>, vector<128x128xbf16>
    %cst = arith.constant dense<0.000000e+00> : vector<128x128xf32>
    %6 = tpu.matmul %4, %5, %cst {dimension_numbers = #tpu.dot_dimension_numbers<[1], [0], [0], [1], [0, 0, 1, 1], [], []>} : vector<128x128xbf16>, vector<128x128xbf16>, vector<128x128xf32> -> vector<128x128xf32>
    %7 = arith.addf %3, %6 : vector<128x128xf32>
    %c0_6 = arith.constant 0 : index
    %c0_7 = arith.constant 0 : index
    %8 = vector.load %arg7[%c0_6, %c0_7] : memref<128x128xf32, #tpu.memory_space<vmem>>, vector<128x128xf32>
    tpu.vector_store %arg7[%c0_6, %c0_7], %7 {strides = array<i32>} : memref<128x128xf32, #tpu.memory_space<vmem>>, vector<128x128xf32>,
    %c0_i32_8 = arith.constant 0 : i32
    %9 = arith.cmpi eq, %arg2, %c0_i32_8 : i32
    %10 = arith.extui %9 : i1 to i32
    %c0_i32_9 = arith.constant 0 : i32
    %11 = arith.cmpi ne, %10, %c0_i32_9 : i32
    scf.if %11 {
      %c0_10 = arith.constant 0 : index
      %c0_11 = arith.constant 0 : index
      %12 = vector.load %arg7[%c0_10, %c0_11] : memref<128x128xf32, #tpu.memory_space<vmem>>, vector<128x128xf32>
      %c0_12 = arith.constant 0 : index
      %c0_13 = arith.constant 0 : index
      %13 = vector.load %arg5[%c0_12, %c0_13] : memref<1x128xf32, #tpu.memory_space<vmem>>, vector<1x128xf32>
      %14 = vector.broadcast %13 : vector<1x128xf32> to vector<128x128xf32>
      %15 = arith.addf %12, %14 : vector<128x128xf32>
      %cst_14 = arith.constant 0.000000e+00 : f32
      %16 = vector.broadcast %cst_14 : f32 to vector<128x128xf32>
      %17 = arith.maximumf %15, %16 : vector<128x128xf32>
      %18 = arith.truncf %17 : vector<128x128xf32> to vector<128x128xbf16>
      %c0_15 = arith.constant 0 : index
      %c0_16 = arith.constant 0 : index
      %19 = vector.load %arg6[%c0_15, %c0_16] : memref<128x128xbf16, #tpu.memory_space<vmem>>, vector<128x128xbf16>
      tpu.vector_store %arg6[%c0_15, %c0_16], %18 {strides = array<i32>} : memref<128x128xbf16, #tpu.memory_space<vmem>>, vector<128x128xbf16>,
    } else {
    }
    return
  }
  func.func @transform_0(%arg0: i32, %arg1: i32, %arg2: i32) -> (i32, i32) {
    %c0_i32 = arith.constant 0 : i32
    return %arg0, %arg2 : i32, i32
  }
  func.func @transform_1(%arg0: i32, %arg1: i32, %arg2: i32) -> (i32, i32) {
    %c0_i32 = arith.constant 0 : i32
    return %arg2, %arg1 : i32, i32
  }
  func.func @transform_2(%arg0: i32, %arg1: i32, %arg2: i32) -> (i32, i32) {
    %c0_i32 = arith.constant 0 : i32
    %c0_i32_0 = arith.constant 0 : i32
    return %c0_i32, %arg1 : i32, i32
  }
  func.func @transform_3(%arg0: i32, %arg1: i32, %arg2: i32) -> (i32, i32) {
    %c0_i32 = arith.constant 0 : i32
    return %arg0, %arg1 : i32, i32
  }
}

module attributes {stable_mosaic.version = 11 : i64} {
  func.func @_fused_matmul_kernel(%arg0: i32, %arg1: i32, %arg2: i32, %arg3: memref<128x128xbf16, #tpu.memory_space<vmem>>, %arg4: memref<128x128xbf16, #tpu.memory_space<vmem>>, %arg5: memref<1x128xf32, #tpu.memory_space<vmem>>, %arg6: memref<128x128xbf16, #tpu.memory_space<vmem>>, %arg7: memref<128x128xf32, #tpu.memory_space<vmem>>) attributes {dimension_semantics = [#tpu.dimension_semantics<parallel>, #tpu.dimension_semantics<parallel>, #tpu.dimension_semantics<arbitrary>], iteration_bounds = array<i64: 1, 1, 1>, scalar_prefetch = 0 : i64, scratch_operands = 1 : i64, tpu.core_type = #tpu.core_type<tc>, window_params = [{transform_indices = @transform_0, window_bounds = array<i64: 128, 128>}, {transform_indices = @transform_1, window_bounds = array<i64: 128, 128>}, {transform_indices = @transform_2, window_bounds = array<i64: 1, 128>}, {transform_indices = @transform_3, window_bounds = array<i64: 128, 128>}]} {
    %c0_i32 = arith.constant 0 : i32
    %0 = arith.cmpi eq, %arg2, %c0_i32 : i32
    %1 = arith.extui %0 : i1 to i32
    %c0_i32_0 = arith.constant 0 : i32
    %2 = arith.cmpi ne, %1, %c0_i32_0 : i32
    scf.if %2 {
      %cst_10 = arith.constant 0.000000e+00 : f32
      %12 = vector.broadcast %cst_10 : f32 to vector<128x128xf32>
      %c0_11 = arith.constant 0 : index
      %c0_12 = arith.constant 0 : index
      %13 = vector.load %arg7[%c0_11, %c0_12] : memref<128x128xf32, #tpu.memory_space<vmem>>, vector<128x128xf32>
      tpu.vector_store %arg7[%c0_11, %c0_12], %12 {strides = array<i32>} : memref<128x128xf32, #tpu.memory_space<vmem>>, vector<128x128xf32>,
    } else {
    }
    %c0 = arith.constant 0 : index
    %c0_1 = arith.constant 0 : index
    %3 = vector.load %arg7[%c0, %c0_1] : memref<128x128xf32, #tpu.memory_space<vmem>>, vector<128x128xf32>
    %c0_2 = arith.constant 0 : index
    %c0_3 = arith.constant 0 : index
    %4 = vector.load %arg3[%c0_2, %c0_3] : memref<128x128xbf16, #tpu.memory_space<vmem>>, vector<128x128xbf16>
    %c0_4 = arith.constant 0 : index
    %c0_5 = arith.constant 0 : index
    %5 = vector.load %arg4[%c0_4, %c0_5] : memref<128x128xbf16, #tpu.memory_space<vmem>>, vector<128x128xbf16>
    %cst = arith.constant dense<0.000000e+00> : vector<128x128xf32>
    %6 = tpu.matmul %4, %5, %cst {dimension_numbers = #tpu.dot_dimension_numbers<[1], [0], [0], [1], [0, 0, 1, 1], [], []>} : vector<128x128xbf16>, vector<128x128xbf16>, vector<128x128xf32> -> vector<128x128xf32>
    %7 = arith.addf %3, %6 : vector<128x128xf32>
    %c0_6 = arith.constant 0 : index
    %c0_7 = arith.constant 0 : index
    %8 = vector.load %arg7[%c0_6, %c0_7] : memref<128x128xf32, #tpu.memory_space<vmem>>, vector<128x128xf32>
    tpu.vector_store %arg7[%c0_6, %c0_7], %7 {strides = array<i32>} : memref<128x128xf32, #tpu.memory_space<vmem>>, vector<128x128xf32>,
    %c0_i32_8 = arith.constant 0 : i32
    %9 = arith.cmpi eq, %arg2, %c0_i32_8 : i32
    %10 = arith.extui %9 : i1 to i32
    %c0_i32_9 = arith.constant 0 : i32
    %11 = arith.cmpi ne, %10, %c0_i32_9 : i32
    scf.if %11 {
      %c0_10 = arith.constant 0 : index
      %c0_11 = arith.constant 0 : index
      %12 = vector.load %arg7[%c0_10, %c0_11] : memref<128x128xf32, #tpu.memory_space<vmem>>, vector<128x128xf32>
      %c0_12 = arith.constant 0 : index
      %c0_13 = arith.constant 0 : index
      %13 = vector.load %arg5[%c0_12, %c0_13] : memref<1x128xf32, #tpu.memory_space<vmem>>, vector<1x128xf32>
      %14 = vector.broadcast %13 : vector<1x128xf32> to vector<128x128xf32>
      %15 = arith.addf %12, %14 : vector<128x128xf32>
      %16 = arith.truncf %15 : vector<128x128xf32> to vector<128x128xbf16>
      %c0_14 = arith.constant 0 : index
      %c0_15 = arith.constant 0 : index
      %17 = vector.load %arg6[%c0_14, %c0_15] : memref<128x128xbf16, #tpu.memory_space<vmem>>, vector<128x128xbf16>
      tpu.vector_store %arg6[%c0_14, %c0_15], %16 {strides = array<i32>} : memref<128x128xbf16, #tpu.memory_space<vmem>>, vector<128x128xbf16>,
    } else {
    }
    return
  }
  func.func @transform_0(%arg0: i32, %arg1: i32, %arg2: i32) -> (i32, i32) {
    %c0_i32 = arith.constant 0 : i32
    return %arg0, %arg2 : i32, i32
  }
  func.func @transform_1(%arg0: i32, %arg1: i32, %arg2: i32) -> (i32, i32) {
    %c0_i32 = arith.constant 0 : i32
    return %arg2, %arg1 : i32, i32
  }
  func.func @transform_2(%arg0: i32, %arg1: i32, %arg2: i32) -> (i32, i32) {
    %c0_i32 = arith.constant 0 : i32
    %c0_i32_0 = arith.constant 0 : i32
    return %c0_i32, %arg1 : i32, i32
  }
  func.func @transform_3(%arg0: i32, %arg1: i32, %arg2: i32) -> (i32, i32) {
    %c0_i32 = arith.constant 0 : i32
    return %arg0, %arg1 : i32, i32
  }
}

module attributes {stable_mosaic.version = 11 : i64} {
  func.func @_fused_matmul_kernel(%arg0: i32, %arg1: i32, %arg2: i32, %arg3: memref<128x128xbf16, #tpu.memory_space<vmem>>, %arg4: memref<128x128xbf16, #tpu.memory_space<vmem>>, %arg5: memref<1x128xf32, #tpu.memory_space<vmem>>, %arg6: memref<128x128xbf16, #tpu.memory_space<vmem>>, %arg7: memref<128x128xbf16, #tpu.memory_space<vmem>>, %arg8: memref<128x128xf32, #tpu.memory_space<vmem>>) attributes {dimension_semantics = [#tpu.dimension_semantics<parallel>, #tpu.dimension_semantics<parallel>, #tpu.dimension_semantics<arbitrary>], iteration_bounds = array<i64: 1, 1, 1>, scalar_prefetch = 0 : i64, scratch_operands = 1 : i64, tpu.core_type = #tpu.core_type<tc>, window_params = [{transform_indices = @transform_0, window_bounds = array<i64: 128, 128>}, {transform_indices = @transform_1, window_bounds = array<i64: 128, 128>}, {transform_indices = @transform_2, window_bounds = array<i64: 1, 128>}, {transform_indices = @transform_3, window_bounds = array<i64: 128, 128>}, {transform_indices = @transform_4, window_bounds = array<i64: 128, 128>}]} {
    %c0_i32 = arith.constant 0 : i32
    %0 = arith.cmpi eq, %arg2, %c0_i32 : i32
    %1 = arith.extui %0 : i1 to i32
    %c0_i32_0 = arith.constant 0 : i32
    %2 = arith.cmpi ne, %1, %c0_i32_0 : i32
    scf.if %2 {
      %cst_10 = arith.constant 0.000000e+00 : f32
      %12 = vector.broadcast %cst_10 : f32 to vector<128x128xf32>
      %c0_11 = arith.constant 0 : index
      %c0_12 = arith.constant 0 : index
      %13 = vector.load %arg8[%c0_11, %c0_12] : memref<128x128xf32, #tpu.memory_space<vmem>>, vector<128x128xf32>
      tpu.vector_store %arg8[%c0_11, %c0_12], %12 {strides = array<i32>} : memref<128x128xf32, #tpu.memory_space<vmem>>, vector<128x128xf32>,
    } else {
    }
    %c0 = arith.constant 0 : index
    %c0_1 = arith.constant 0 : index
    %3 = vector.load %arg8[%c0, %c0_1] : memref<128x128xf32, #tpu.memory_space<vmem>>, vector<128x128xf32>
    %c0_2 = arith.constant 0 : index
    %c0_3 = arith.constant 0 : index
    %4 = vector.load %arg3[%c0_2, %c0_3] : memref<128x128xbf16, #tpu.memory_space<vmem>>, vector<128x128xbf16>
    %c0_4 = arith.constant 0 : index
    %c0_5 = arith.constant 0 : index
    %5 = vector.load %arg4[%c0_4, %c0_5] : memref<128x128xbf16, #tpu.memory_space<vmem>>, vector<128x128xbf16>
    %cst = arith.constant dense<0.000000e+00> : vector<128x128xf32>
    %6 = tpu.matmul %4, %5, %cst {dimension_numbers = #tpu.dot_dimension_numbers<[1], [0], [0], [1], [0, 0, 1, 1], [], []>} : vector<128x128xbf16>, vector<128x128xbf16>, vector<128x128xf32> -> vector<128x128xf32>
    %7 = arith.addf %3, %6 : vector<128x128xf32>
    %c0_6 = arith.constant 0 : index
    %c0_7 = arith.constant 0 : index
    %8 = vector.load %arg8[%c0_6, %c0_7] : memref<128x128xf32, #tpu.memory_space<vmem>>, vector<128x128xf32>
    tpu.vector_store %arg8[%c0_6, %c0_7], %7 {strides = array<i32>} : memref<128x128xf32, #tpu.memory_space<vmem>>, vector<128x128xf32>,
    %c0_i32_8 = arith.constant 0 : i32
    %9 = arith.cmpi eq, %arg2, %c0_i32_8 : i32
    %10 = arith.extui %9 : i1 to i32
    %c0_i32_9 = arith.constant 0 : i32
    %11 = arith.cmpi ne, %10, %c0_i32_9 : i32
    scf.if %11 {
      %c0_10 = arith.constant 0 : index
      %c0_11 = arith.constant 0 : index
      %12 = vector.load %arg8[%c0_10, %c0_11] : memref<128x128xf32, #tpu.memory_space<vmem>>, vector<128x128xf32>
      %c0_12 = arith.constant 0 : index
      %c0_13 = arith.constant 0 : index
      %13 = vector.load %arg5[%c0_12, %c0_13] : memref<1x128xf32, #tpu.memory_space<vmem>>, vector<1x128xf32>
      %14 = vector.broadcast %13 : vector<1x128xf32> to vector<128x128xf32>
      %15 = arith.addf %12, %14 : vector<128x128xf32>
      %c0_14 = arith.constant 0 : index
      %c0_15 = arith.constant 0 : index
      %16 = vector.load %arg6[%c0_14, %c0_15] : memref<128x128xbf16, #tpu.memory_space<vmem>>, vector<128x128xbf16>
      %17 = arith.extf %16 : vector<128x128xbf16> to vector<128x128xf32>
      %18 = arith.addf %15, %17 : vector<128x128xf32>
      %cst_16 = arith.constant 0.000000e+00 : f32
      %19 = vector.broadcast %cst_16 : f32 to vector<128x128xf32>
      %20 = arith.maximumf %18, %19 : vector<128x128xf32>
      %21 = arith.truncf %20 : vector<128x128xf32> to vector<128x128xbf16>
      %c0_17 = arith.constant 0 : index
      %c0_18 = arith.constant 0 : index
      %22 = vector.load %arg7[%c0_17, %c0_18] : memref<128x128xbf16, #tpu.memory_space<vmem>>, vector<128x128xbf16>
      tpu.vector_store %arg7[%c0_17, %c0_18], %21 {strides = array<i32>} : memref<128x128xbf16, #tpu.memory_space<vmem>>, vector<128x128xbf16>,
    } else {
    }
    return
  }
  func.func @transform_0(%arg0: i32, %arg1: i32, %arg2: i32) -> (i32, i32) {
    %c0_i32 = arith.constant 0 : i32
    return %arg0, %arg2 : i32, i32
  }
  func.func @transform_1(%arg0: i32, %arg1: i32, %arg2: i32) -> (i32, i32) {
    %c0_i32 = arith.constant 0 : i32
    return %arg2, %arg1 : i32, i32
  }
  func.func @transform_2(%arg0: i32, %arg1: i32, %arg2: i32) -> (i32, i32) {
    %c0_i32 = arith.constant 0 : i32
    %c0_i32_0 = arith.constant 0 : i32
    return %c0_i32, %arg1 : i32, i32
  }
  func.func @transform_3(%arg0: i32, %arg1: i32, %arg2: i32) -> (i32, i32) {
    %c0_i32 = arith.constant 0 : i32
    return %arg0, %arg1 : i32, i32
  }
  func.func @transform_4(%arg0: i32, %arg1: i32, %arg2: i32) -> (i32, i32) {
    %c0_i32 = arith.constant 0 : i32
    return %arg0, %arg1 : i32, i32
  }
}

module attributes {stable_mosaic.version = 11 : i64} {
  func.func @_fused_matmul_kernel(%arg0: i32, %arg1: i32, %arg2: i32, %arg3: memref<32x128xbf16, #tpu.memory_space<vmem>>, %arg4: memref<128x128xbf16, #tpu.memory_space<vmem>>, %arg5: memref<1x128xf32, #tpu.memory_space<vmem>>, %arg6: memref<32x128xbf16, #tpu.memory_space<vmem>>, %arg7: memref<32x128xf32, #tpu.memory_space<vmem>>) attributes {dimension_semantics = [#tpu.dimension_semantics<parallel>, #tpu.dimension_semantics<parallel>, #tpu.dimension_semantics<arbitrary>], iteration_bounds = array<i64: 1, 1, 1>, scalar_prefetch = 0 : i64, scratch_operands = 1 : i64, tpu.core_type = #tpu.core_type<tc>, window_params = [{transform_indices = @transform_0, window_bounds = array<i64: 32, 128>}, {transform_indices = @transform_1, window_bounds = array<i64: 128, 128>}, {transform_indices = @transform_2, window_bounds = array<i64: 1, 128>}, {transform_indices = @transform_3, window_bounds = array<i64: 32, 128>}]} {
    %c0_i32 = arith.constant 0 : i32
    %0 = arith.cmpi eq, %arg2, %c0_i32 : i32
    %1 = arith.extui %0 : i1 to i32
    %c0_i32_0 = arith.constant 0 : i32
    %2 = arith.cmpi ne, %1, %c0_i32_0 : i32
    scf.if %2 {
      %cst_10 = arith.constant 0.000000e+00 : f32
      %12 = vector.broadcast %cst_10 : f32 to vector<32x128xf32>
      %c0_11 = arith.constant 0 : index
      %c0_12 = arith.constant 0 : index
      %13 = vector.load %arg7[%c0_11, %c0_12] : memref<32x128xf32, #tpu.memory_space<vmem>>, vector<32x128xf32>
      tpu.vector_store %arg7[%c0_11, %c0_12], %12 {strides = array<i32>} : memref<32x128xf32, #tpu.memory_space<vmem>>, vector<32x128xf32>,
    } else {
    }
    %c0 = arith.constant 0 : index
    %c0_1 = arith.constant 0 : index
    %3 = vector.load %arg7[%c0, %c0_1] : memref<32x128xf32, #tpu.memory_space<vmem>>, vector<32x128xf32>
    %c0_2 = arith.constant 0 : index
    %c0_3 = arith.constant 0 : index
    %4 = vector.load %arg3[%c0_2, %c0_3] : memref<32x128xbf16, #tpu.memory_space<vmem>>, vector<32x128xbf16>
    %c0_4 = arith.constant 0 : index
    %c0_5 = arith.constant 0 : index
    %5 = vector.load %arg4[%c0_4, %c0_5] : memref<128x128xbf16, #tpu.memory_space<vmem>>, vector<128x128xbf16>
    %cst = arith.constant dense<0.000000e+00> : vector<32x128xf32>
    %6 = tpu.matmul %4, %5, %cst {dimension_numbers = #tpu.dot_dimension_numbers<[1], [0], [0], [1], [0, 0, 1, 1], [], []>} : vector<32x128xbf16>, vector<128x128xbf16>, vector<32x128xf32> -> vector<32x128xf32>
    %7 = arith.addf %3, %6 : vector<32x128xf32>
    %c0_6 = arith.constant 0 : index
    %c0_7 = arith.constant 0 : index
    %8 = vector.load %arg7[%c0_6, %c0_7] : memref<32x128xf32, #tpu.memory_space<vmem>>, vector<32x128xf32>
    tpu.vector_store %arg7[%c0_6, %c0_7], %7 {strides = array<i32>} : memref<32x128xf32, #tpu.memory_space<vmem>>, vector<32x128xf32>,
    %c0_i32_8 = arith.constant 0 : i32
    %9 = arith.cmpi eq, %arg2, %c0_i32_8 : i32
    %10 = arith.extui %9 : i1 to i32
    %c0_i32_9 = arith.constant 0 : i32
    %11 = arith.cmpi ne, %10, %c0_i32_9 : i32
    scf.if %11 {
      %c0_10 = arith.constant 0 : index
      %c0_11 = arith.constant 0 : index
      %12 = vector.load %arg7[%c0_10, %c0_11] : memref<32x128xf32, #tpu.memory_space<vmem>>, vector<32x128xf32>
      %c0_12 = arith.constant 0 : index
      %c0_13 = arith.constant 0 : index
      %13 = vector.load %arg5[%c0_12, %c0_13] : memref<1x128xf32, #tpu.memory_space<vmem>>, vector<1x128xf32>
      %14 = vector.broadcast %13 : vector<1x128xf32> to vector<32x128xf32>
      %15 = arith.addf %12, %14 : vector<32x128xf32>
      %cst_14 = arith.constant 0.000000e+00 : f32
      %16 = vector.broadcast %cst_14 : f32 to vector<32x128xf32>
      %17 = arith.maximumf %15, %16 : vector<32x128xf32>
      %18 = arith.truncf %17 : vector<32x128xf32> to vector<32x128xbf16>
      %c0_15 = arith.constant 0 : index
      %c0_16 = arith.constant 0 : index
      %19 = vector.load %arg6[%c0_15, %c0_16] : memref<32x128xbf16, #tpu.memory_space<vmem>>, vector<32x128xbf16>
      tpu.vector_store %arg6[%c0_15, %c0_16], %18 {strides = array<i32>} : memref<32x128xbf16, #tpu.memory_space<vmem>>, vector<32x128xbf16>,
    } else {
    }
    return
  }
  func.func @transform_0(%arg0: i32, %arg1: i32, %arg2: i32) -> (i32, i32) {
    %c0_i32 = arith.constant 0 : i32
    return %arg0, %arg2 : i32, i32
  }
  func.func @transform_1(%arg0: i32, %arg1: i32, %arg2: i32) -> (i32, i32) {
    %c0_i32 = arith.constant 0 : i32
    return %arg2, %arg1 : i32, i32
  }
  func.func @transform_2(%arg0: i32, %arg1: i32, %arg2: i32) -> (i32, i32) {
    %c0_i32 = arith.constant 0 : i32
    %c0_i32_0 = arith.constant 0 : i32
    return %c0_i32, %arg1 : i32, i32
  }
  func.func @transform_3(%arg0: i32, %arg1: i32, %arg2: i32) -> (i32, i32) {
    %c0_i32 = arith.constant 0 : i32
    return %arg0, %arg1 : i32, i32
  }
}

module attributes {stable_mosaic.version = 11 : i64} {
  func.func @_fused_matmul_kernel(%arg0: i32, %arg1: i32, %arg2: i32, %arg3: memref<32x128xbf16, #tpu.memory_space<vmem>>, %arg4: memref<128x128xbf16, #tpu.memory_space<vmem>>, %arg5: memref<1x128xf32, #tpu.memory_space<vmem>>, %arg6: memref<32x128xbf16, #tpu.memory_space<vmem>>, %arg7: memref<32x128xbf16, #tpu.memory_space<vmem>>, %arg8: memref<32x128xf32, #tpu.memory_space<vmem>>) attributes {dimension_semantics = [#tpu.dimension_semantics<parallel>, #tpu.dimension_semantics<parallel>, #tpu.dimension_semantics<arbitrary>], iteration_bounds = array<i64: 1, 1, 1>, scalar_prefetch = 0 : i64, scratch_operands = 1 : i64, tpu.core_type = #tpu.core_type<tc>, window_params = [{transform_indices = @transform_0, window_bounds = array<i64: 32, 128>}, {transform_indices = @transform_1, window_bounds = array<i64: 128, 128>}, {transform_indices = @transform_2, window_bounds = array<i64: 1, 128>}, {transform_indices = @transform_3, window_bounds = array<i64: 32, 128>}, {transform_indices = @transform_4, window_bounds = array<i64: 32, 128>}]} {
    %c0_i32 = arith.constant 0 : i32
    %0 = arith.cmpi eq, %arg2, %c0_i32 : i32
    %1 = arith.extui %0 : i1 to i32
    %c0_i32_0 = arith.constant 0 : i32
    %2 = arith.cmpi ne, %1, %c0_i32_0 : i32
    scf.if %2 {
      %cst_10 = arith.constant 0.000000e+00 : f32
      %12 = vector.broadcast %cst_10 : f32 to vector<32x128xf32>
      %c0_11 = arith.constant 0 : index
      %c0_12 = arith.constant 0 : index
      %13 = vector.load %arg8[%c0_11, %c0_12] : memref<32x128xf32, #tpu.memory_space<vmem>>, vector<32x128xf32>
      tpu.vector_store %arg8[%c0_11, %c0_12], %12 {strides = array<i32>} : memref<32x128xf32, #tpu.memory_space<vmem>>, vector<32x128xf32>,
    } else {
    }
    %c0 = arith.constant 0 : index
    %c0_1 = arith.constant 0 : index
    %3 = vector.load %arg8[%c0, %c0_1] : memref<32x128xf32, #tpu.memory_space<vmem>>, vector<32x128xf32>
    %c0_2 = arith.constant 0 : index
    %c0_3 = arith.constant 0 : index
    %4 = vector.load %arg3[%c0_2, %c0_3] : memref<32x128xbf16, #tpu.memory_space<vmem>>, vector<32x128xbf16>
    %c0_4 = arith.constant 0 : index
    %c0_5 = arith.constant 0 : index
    %5 = vector.load %arg4[%c0_4, %c0_5] : memref<128x128xbf16, #tpu.memory_space<vmem>>, vector<128x128xbf16>
    %cst = arith.constant dense<0.000000e+00> : vector<32x128xf32>
    %6 = tpu.matmul %4, %5, %cst {dimension_numbers = #tpu.dot_dimension_numbers<[1], [0], [0], [1], [0, 0, 1, 1], [], []>} : vector<32x128xbf16>, vector<128x128xbf16>, vector<32x128xf32> -> vector<32x128xf32>
    %7 = arith.addf %3, %6 : vector<32x128xf32>
    %c0_6 = arith.constant 0 : index
    %c0_7 = arith.constant 0 : index
    %8 = vector.load %arg8[%c0_6, %c0_7] : memref<32x128xf32, #tpu.memory_space<vmem>>, vector<32x128xf32>
    tpu.vector_store %arg8[%c0_6, %c0_7], %7 {strides = array<i32>} : memref<32x128xf32, #tpu.memory_space<vmem>>, vector<32x128xf32>,
    %c0_i32_8 = arith.constant 0 : i32
    %9 = arith.cmpi eq, %arg2, %c0_i32_8 : i32
    %10 = arith.extui %9 : i1 to i32
    %c0_i32_9 = arith.constant 0 : i32
    %11 = arith.cmpi ne, %10, %c0_i32_9 : i32
    scf.if %11 {
      %c0_10 = arith.constant 0 : index
      %c0_11 = arith.constant 0 : index
      %12 = vector.load %arg8[%c0_10, %c0_11] : memref<32x128xf32, #tpu.memory_space<vmem>>, vector<32x128xf32>
      %c0_12 = arith.constant 0 : index
      %c0_13 = arith.constant 0 : index
      %13 = vector.load %arg5[%c0_12, %c0_13] : memref<1x128xf32, #tpu.memory_space<vmem>>, vector<1x128xf32>
      %14 = vector.broadcast %13 : vector<1x128xf32> to vector<32x128xf32>
      %15 = arith.addf %12, %14 : vector<32x128xf32>
      %c0_14 = arith.constant 0 : index
      %c0_15 = arith.constant 0 : index
      %16 = vector.load %arg6[%c0_14, %c0_15] : memref<32x128xbf16, #tpu.memory_space<vmem>>, vector<32x128xbf16>
      %17 = arith.extf %16 : vector<32x128xbf16> to vector<32x128xf32>
      %18 = arith.addf %15, %17 : vector<32x128xf32>
      %cst_16 = arith.constant 0.000000e+00 : f32
      %19 = vector.broadcast %cst_16 : f32 to vector<32x128xf32>
      %20 = arith.maximumf %18, %19 : vector<32x128xf32>
      %21 = arith.truncf %20 : vector<32x128xf32> to vector<32x128xbf16>
      %c0_17 = arith.constant 0 : index
      %c0_18 = arith.constant 0 : index
      %22 = vector.load %arg7[%c0_17, %c0_18] : memref<32x128xbf16, #tpu.memory_space<vmem>>, vector<32x128xbf16>
      tpu.vector_store %arg7[%c0_17, %c0_18], %21 {strides = array<i32>} : memref<32x128xbf16, #tpu.memory_space<vmem>>, vector<32x128xbf16>,
    } else {
    }
    return
  }
  func.func @transform_0(%arg0: i32, %arg1: i32, %arg2: i32) -> (i32, i32) {
    %c0_i32 = arith.constant 0 : i32
    return %arg0, %arg2 : i32, i32
  }
  func.func @transform_1(%arg0: i32, %arg1: i32, %arg2: i32) -> (i32, i32) {
    %c0_i32 = arith.constant 0 : i32
    return %arg2, %arg1 : i32, i32
  }
  func.func @transform_2(%arg0: i32, %arg1: i32, %arg2: i32) -> (i32, i32) {
    %c0_i32 = arith.constant 0 : i32
    %c0_i32_0 = arith.constant 0 : i32
    return %c0_i32, %arg1 : i32, i32
  }
  func.func @transform_3(%arg0: i32, %arg1: i32, %arg2: i32) -> (i32, i32) {
    %c0_i32 = arith.constant 0 : i32
    return %arg0, %arg1 : i32, i32
  }
  func.func @transform_4(%arg0: i32, %arg1: i32, %arg2: i32) -> (i32, i32) {
    %c0_i32 = arith.constant 0 : i32
    return %arg0, %arg1 : i32, i32
  }
}

module attributes {stable_mosaic.version = 11 : i64} {
  func.func @_fused_matmul_kernel(%arg0: i32, %arg1: i32, %arg2: i32, %arg3: memref<32x256xbf16, #tpu.memory_space<vmem>>, %arg4: memref<256x128xbf16, #tpu.memory_space<vmem>>, %arg5: memref<1x128xf32, #tpu.memory_space<vmem>>, %arg6: memref<32x128xbf16, #tpu.memory_space<vmem>>, %arg7: memref<32x128xf32, #tpu.memory_space<vmem>>) attributes {dimension_semantics = [#tpu.dimension_semantics<parallel>, #tpu.dimension_semantics<parallel>, #tpu.dimension_semantics<arbitrary>], iteration_bounds = array<i64: 1, 1, 1>, scalar_prefetch = 0 : i64, scratch_operands = 1 : i64, tpu.core_type = #tpu.core_type<tc>, window_params = [{transform_indices = @transform_0, window_bounds = array<i64: 32, 256>}, {transform_indices = @transform_1, window_bounds = array<i64: 256, 128>}, {transform_indices = @transform_2, window_bounds = array<i64: 1, 128>}, {transform_indices = @transform_3, window_bounds = array<i64: 32, 128>}]} {
    %c0_i32 = arith.constant 0 : i32
    %0 = arith.cmpi eq, %arg2, %c0_i32 : i32
    %1 = arith.extui %0 : i1 to i32
    %c0_i32_0 = arith.constant 0 : i32
    %2 = arith.cmpi ne, %1, %c0_i32_0 : i32
    scf.if %2 {
      %cst_10 = arith.constant 0.000000e+00 : f32
      %12 = vector.broadcast %cst_10 : f32 to vector<32x128xf32>
      %c0_11 = arith.constant 0 : index
      %c0_12 = arith.constant 0 : index
      %13 = vector.load %arg7[%c0_11, %c0_12] : memref<32x128xf32, #tpu.memory_space<vmem>>, vector<32x128xf32>
      tpu.vector_store %arg7[%c0_11, %c0_12], %12 {strides = array<i32>} : memref<32x128xf32, #tpu.memory_space<vmem>>, vector<32x128xf32>,
    } else {
    }
    %c0 = arith.constant 0 : index
    %c0_1 = arith.constant 0 : index
    %3 = vector.load %arg7[%c0, %c0_1] : memref<32x128xf32, #tpu.memory_space<vmem>>, vector<32x128xf32>
    %c0_2 = arith.constant 0 : index
    %c0_3 = arith.constant 0 : index
    %4 = vector.load %arg3[%c0_2, %c0_3] : memref<32x256xbf16, #tpu.memory_space<vmem>>, vector<32x256xbf16>
    %c0_4 = arith.constant 0 : index
    %c0_5 = arith.constant 0 : index
    %5 = vector.load %arg4[%c0_4, %c0_5] : memref<256x128xbf16, #tpu.memory_space<vmem>>, vector<256x128xbf16>
    %cst = arith.constant dense<0.000000e+00> : vector<32x128xf32>
    %6 = tpu.matmul %4, %5, %cst {dimension_numbers = #tpu.dot_dimension_numbers<[1], [0], [0], [1], [0, 0, 1, 1], [], []>} : vector<32x256xbf16>, vector<256x128xbf16>, vector<32x128xf32> -> vector<32x128xf32>
    %7 = arith.addf %3, %6 : vector<32x128xf32>
    %c0_6 = arith.constant 0 : index
    %c0_7 = arith.constant 0 : index
    %8 = vector.load %arg7[%c0_6, %c0_7] : memref<32x128xf32, #tpu.memory_space<vmem>>, vector<32x128xf32>
    tpu.vector_store %arg7[%c0_6, %c0_7], %7 {strides = array<i32>} : memref<32x128xf32, #tpu.memory_space<vmem>>, vector<32x128xf32>,
    %c0_i32_8 = arith.constant 0 : i32
    %9 = arith.cmpi eq, %arg2, %c0_i32_8 : i32
    %10 = arith.extui %9 : i1 to i32
    %c0_i32_9 = arith.constant 0 : i32
    %11 = arith.cmpi ne, %10, %c0_i32_9 : i32
    scf.if %11 {
      %c0_10 = arith.constant 0 : index
      %c0_11 = arith.constant 0 : index
      %12 = vector.load %arg7[%c0_10, %c0_11] : memref<32x128xf32, #tpu.memory_space<vmem>>, vector<32x128xf32>
      %c0_12 = arith.constant 0 : index
      %c0_13 = arith.constant 0 : index
      %13 = vector.load %arg5[%c0_12, %c0_13] : memref<1x128xf32, #tpu.memory_space<vmem>>, vector<1x128xf32>
      %14 = vector.broadcast %13 : vector<1x128xf32> to vector<32x128xf32>
      %15 = arith.addf %12, %14 : vector<32x128xf32>
      %cst_14 = arith.constant 0.000000e+00 : f32
      %16 = vector.broadcast %cst_14 : f32 to vector<32x128xf32>
      %17 = arith.maximumf %15, %16 : vector<32x128xf32>
      %18 = arith.truncf %17 : vector<32x128xf32> to vector<32x128xbf16>
      %c0_15 = arith.constant 0 : index
      %c0_16 = arith.constant 0 : index
      %19 = vector.load %arg6[%c0_15, %c0_16] : memref<32x128xbf16, #tpu.memory_space<vmem>>, vector<32x128xbf16>
      tpu.vector_store %arg6[%c0_15, %c0_16], %18 {strides = array<i32>} : memref<32x128xbf16, #tpu.memory_space<vmem>>, vector<32x128xbf16>,
    } else {
    }
    return
  }
  func.func @transform_0(%arg0: i32, %arg1: i32, %arg2: i32) -> (i32, i32) {
    %c0_i32 = arith.constant 0 : i32
    return %arg0, %arg2 : i32, i32
  }
  func.func @transform_1(%arg0: i32, %arg1: i32, %arg2: i32) -> (i32, i32) {
    %c0_i32 = arith.constant 0 : i32
    return %arg2, %arg1 : i32, i32
  }
  func.func @transform_2(%arg0: i32, %arg1: i32, %arg2: i32) -> (i32, i32) {
    %c0_i32 = arith.constant 0 : i32
    %c0_i32_0 = arith.constant 0 : i32
    return %c0_i32, %arg1 : i32, i32
  }
  func.func @transform_3(%arg0: i32, %arg1: i32, %arg2: i32) -> (i32, i32) {
    %c0_i32 = arith.constant 0 : i32
    return %arg0, %arg1 : i32, i32
  }
}

module attributes {stable_mosaic.version = 11 : i64} {
  func.func @_fused_matmul_kernel(%arg0: i32, %arg1: i32, %arg2: i32, %arg3: memref<32x128xbf16, #tpu.memory_space<vmem>>, %arg4: memref<128x128xbf16, #tpu.memory_space<vmem>>, %arg5: memref<1x128xf32, #tpu.memory_space<vmem>>, %arg6: memref<32x128xbf16, #tpu.memory_space<vmem>>, %arg7: memref<32x128xf32, #tpu.memory_space<vmem>>) attributes {dimension_semantics = [#tpu.dimension_semantics<parallel>, #tpu.dimension_semantics<parallel>, #tpu.dimension_semantics<arbitrary>], iteration_bounds = array<i64: 1, 1, 1>, scalar_prefetch = 0 : i64, scratch_operands = 1 : i64, tpu.core_type = #tpu.core_type<tc>, window_params = [{transform_indices = @transform_0, window_bounds = array<i64: 32, 128>}, {transform_indices = @transform_1, window_bounds = array<i64: 128, 128>}, {transform_indices = @transform_2, window_bounds = array<i64: 1, 128>}, {transform_indices = @transform_3, window_bounds = array<i64: 32, 128>}]} {
    %c0_i32 = arith.constant 0 : i32
    %0 = arith.cmpi eq, %arg2, %c0_i32 : i32
    %1 = arith.extui %0 : i1 to i32
    %c0_i32_0 = arith.constant 0 : i32
    %2 = arith.cmpi ne, %1, %c0_i32_0 : i32
    scf.if %2 {
      %cst_10 = arith.constant 0.000000e+00 : f32
      %12 = vector.broadcast %cst_10 : f32 to vector<32x128xf32>
      %c0_11 = arith.constant 0 : index
      %c0_12 = arith.constant 0 : index
      %13 = vector.load %arg7[%c0_11, %c0_12] : memref<32x128xf32, #tpu.memory_space<vmem>>, vector<32x128xf32>
      tpu.vector_store %arg7[%c0_11, %c0_12], %12 {strides = array<i32>} : memref<32x128xf32, #tpu.memory_space<vmem>>, vector<32x128xf32>,
    } else {
    }
    %c0 = arith.constant 0 : index
    %c0_1 = arith.constant 0 : index
    %3 = vector.load %arg7[%c0, %c0_1] : memref<32x128xf32, #tpu.memory_space<vmem>>, vector<32x128xf32>
    %c0_2 = arith.constant 0 : index
    %c0_3 = arith.constant 0 : index
    %4 = vector.load %arg3[%c0_2, %c0_3] : memref<32x128xbf16, #tpu.memory_space<vmem>>, vector<32x128xbf16>
    %c0_4 = arith.constant 0 : index
    %c0_5 = arith.constant 0 : index
    %5 = vector.load %arg4[%c0_4, %c0_5] : memref<128x128xbf16, #tpu.memory_space<vmem>>, vector<128x128xbf16>
    %cst = arith.constant dense<0.000000e+00> : vector<32x128xf32>
    %6 = tpu.matmul %4, %5, %cst {dimension_numbers = #tpu.dot_dimension_numbers<[1], [0], [0], [1], [0, 0, 1, 1], [], []>} : vector<32x128xbf16>, vector<128x128xbf16>, vector<32x128xf32> -> vector<32x128xf32>
    %7 = arith.addf %3, %6 : vector<32x128xf32>
    %c0_6 = arith.constant 0 : index
    %c0_7 = arith.constant 0 : index
    %8 = vector.load %arg7[%c0_6, %c0_7] : memref<32x128xf32, #tpu.memory_space<vmem>>, vector<32x128xf32>
    tpu.vector_store %arg7[%c0_6, %c0_7], %7 {strides = array<i32>} : memref<32x128xf32, #tpu.memory_space<vmem>>, vector<32x128xf32>,
    %c0_i32_8 = arith.constant 0 : i32
    %9 = arith.cmpi eq, %arg2, %c0_i32_8 : i32
    %10 = arith.extui %9 : i1 to i32
    %c0_i32_9 = arith.constant 0 : i32
    %11 = arith.cmpi ne, %10, %c0_i32_9 : i32
    scf.if %11 {
      %c0_10 = arith.constant 0 : index
      %c0_11 = arith.constant 0 : index
      %12 = vector.load %arg7[%c0_10, %c0_11] : memref<32x128xf32, #tpu.memory_space<vmem>>, vector<32x128xf32>
      %c0_12 = arith.constant 0 : index
      %c0_13 = arith.constant 0 : index
      %13 = vector.load %arg5[%c0_12, %c0_13] : memref<1x128xf32, #tpu.memory_space<vmem>>, vector<1x128xf32>
      %14 = vector.broadcast %13 : vector<1x128xf32> to vector<32x128xf32>
      %15 = arith.addf %12, %14 : vector<32x128xf32>
      %16 = arith.truncf %15 : vector<32x128xf32> to vector<32x128xbf16>
      %c0_14 = arith.constant 0 : index
      %c0_15 = arith.constant 0 : index
      %17 = vector.load %arg6[%c0_14, %c0_15] : memref<32x128xbf16, #tpu.memory_space<vmem>>, vector<32x128xbf16>
      tpu.vector_store %arg6[%c0_14, %c0_15], %16 {strides = array<i32>} : memref<32x128xbf16, #tpu.memory_space<vmem>>, vector<32x128xbf16>,
    } else {
    }
    return
  }
  func.func @transform_0(%arg0: i32, %arg1: i32, %arg2: i32) -> (i32, i32) {
    %c0_i32 = arith.constant 0 : i32
    return %arg0, %arg2 : i32, i32
  }
  func.func @transform_1(%arg0: i32, %arg1: i32, %arg2: i32) -> (i32, i32) {
    %c0_i32 = arith.constant 0 : i32
    return %arg2, %arg1 : i32, i32
  }
  func.func @transform_2(%arg0: i32, %arg1: i32, %arg2: i32) -> (i32, i32) {
    %c0_i32 = arith.constant 0 : i32
    %c0_i32_0 = arith.constant 0 : i32
    return %c0_i32, %arg1 : i32, i32
  }
  func.func @transform_3(%arg0: i32, %arg1: i32, %arg2: i32) -> (i32, i32) {
    %c0_i32 = arith.constant 0 : i32
    return %arg0, %arg1 : i32, i32
  }
}

module attributes {stable_mosaic.version = 11 : i64} {
  func.func @_fused_matmul_kernel(%arg0: i32, %arg1: i32, %arg2: i32, %arg3: memref<32x384xbf16, #tpu.memory_space<vmem>>, %arg4: memref<384x128xbf16, #tpu.memory_space<vmem>>, %arg5: memref<1x128xf32, #tpu.memory_space<vmem>>, %arg6: memref<32x128xbf16, #tpu.memory_space<vmem>>, %arg7: memref<32x128xf32, #tpu.memory_space<vmem>>) attributes {dimension_semantics = [#tpu.dimension_semantics<parallel>, #tpu.dimension_semantics<parallel>, #tpu.dimension_semantics<arbitrary>], iteration_bounds = array<i64: 1, 1, 1>, scalar_prefetch = 0 : i64, scratch_operands = 1 : i64, tpu.core_type = #tpu.core_type<tc>, window_params = [{transform_indices = @transform_0, window_bounds = array<i64: 32, 384>}, {transform_indices = @transform_1, window_bounds = array<i64: 384, 128>}, {transform_indices = @transform_2, window_bounds = array<i64: 1, 128>}, {transform_indices = @transform_3, window_bounds = array<i64: 32, 128>}]} {
    %c0_i32 = arith.constant 0 : i32
    %0 = arith.cmpi eq, %arg2, %c0_i32 : i32
    %1 = arith.extui %0 : i1 to i32
    %c0_i32_0 = arith.constant 0 : i32
    %2 = arith.cmpi ne, %1, %c0_i32_0 : i32
    scf.if %2 {
      %cst_10 = arith.constant 0.000000e+00 : f32
      %12 = vector.broadcast %cst_10 : f32 to vector<32x128xf32>
      %c0_11 = arith.constant 0 : index
      %c0_12 = arith.constant 0 : index
      %13 = vector.load %arg7[%c0_11, %c0_12] : memref<32x128xf32, #tpu.memory_space<vmem>>, vector<32x128xf32>
      tpu.vector_store %arg7[%c0_11, %c0_12], %12 {strides = array<i32>} : memref<32x128xf32, #tpu.memory_space<vmem>>, vector<32x128xf32>,
    } else {
    }
    %c0 = arith.constant 0 : index
    %c0_1 = arith.constant 0 : index
    %3 = vector.load %arg7[%c0, %c0_1] : memref<32x128xf32, #tpu.memory_space<vmem>>, vector<32x128xf32>
    %c0_2 = arith.constant 0 : index
    %c0_3 = arith.constant 0 : index
    %4 = vector.load %arg3[%c0_2, %c0_3] : memref<32x384xbf16, #tpu.memory_space<vmem>>, vector<32x384xbf16>
    %c0_4 = arith.constant 0 : index
    %c0_5 = arith.constant 0 : index
    %5 = vector.load %arg4[%c0_4, %c0_5] : memref<384x128xbf16, #tpu.memory_space<vmem>>, vector<384x128xbf16>
    %cst = arith.constant dense<0.000000e+00> : vector<32x128xf32>
    %6 = tpu.matmul %4, %5, %cst {dimension_numbers = #tpu.dot_dimension_numbers<[1], [0], [0], [1], [0, 0, 1, 1], [], []>} : vector<32x384xbf16>, vector<384x128xbf16>, vector<32x128xf32> -> vector<32x128xf32>
    %7 = arith.addf %3, %6 : vector<32x128xf32>
    %c0_6 = arith.constant 0 : index
    %c0_7 = arith.constant 0 : index
    %8 = vector.load %arg7[%c0_6, %c0_7] : memref<32x128xf32, #tpu.memory_space<vmem>>, vector<32x128xf32>
    tpu.vector_store %arg7[%c0_6, %c0_7], %7 {strides = array<i32>} : memref<32x128xf32, #tpu.memory_space<vmem>>, vector<32x128xf32>,
    %c0_i32_8 = arith.constant 0 : i32
    %9 = arith.cmpi eq, %arg2, %c0_i32_8 : i32
    %10 = arith.extui %9 : i1 to i32
    %c0_i32_9 = arith.constant 0 : i32
    %11 = arith.cmpi ne, %10, %c0_i32_9 : i32
    scf.if %11 {
      %c0_10 = arith.constant 0 : index
      %c0_11 = arith.constant 0 : index
      %12 = vector.load %arg7[%c0_10, %c0_11] : memref<32x128xf32, #tpu.memory_space<vmem>>, vector<32x128xf32>
      %c0_12 = arith.constant 0 : index
      %c0_13 = arith.constant 0 : index
      %13 = vector.load %arg5[%c0_12, %c0_13] : memref<1x128xf32, #tpu.memory_space<vmem>>, vector<1x128xf32>
      %14 = vector.broadcast %13 : vector<1x128xf32> to vector<32x128xf32>
      %15 = arith.addf %12, %14 : vector<32x128xf32>
      %cst_14 = arith.constant 0.000000e+00 : f32
      %16 = vector.broadcast %cst_14 : f32 to vector<32x128xf32>
      %17 = arith.maximumf %15, %16 : vector<32x128xf32>
      %18 = arith.truncf %17 : vector<32x128xf32> to vector<32x128xbf16>
      %c0_15 = arith.constant 0 : index
      %c0_16 = arith.constant 0 : index
      %19 = vector.load %arg6[%c0_15, %c0_16] : memref<32x128xbf16, #tpu.memory_space<vmem>>, vector<32x128xbf16>
      tpu.vector_store %arg6[%c0_15, %c0_16], %18 {strides = array<i32>} : memref<32x128xbf16, #tpu.memory_space<vmem>>, vector<32x128xbf16>,
    } else {
    }
    return
  }
  func.func @transform_0(%arg0: i32, %arg1: i32, %arg2: i32) -> (i32, i32) {
    %c0_i32 = arith.constant 0 : i32
    return %arg0, %arg2 : i32, i32
  }
  func.func @transform_1(%arg0: i32, %arg1: i32, %arg2: i32) -> (i32, i32) {
    %c0_i32 = arith.constant 0 : i32
    return %arg2, %arg1 : i32, i32
  }
  func.func @transform_2(%arg0: i32, %arg1: i32, %arg2: i32) -> (i32, i32) {
    %c0_i32 = arith.constant 0 : i32
    %c0_i32_0 = arith.constant 0 : i32
    return %c0_i32, %arg1 : i32, i32
  }
  func.func @transform_3(%arg0: i32, %arg1: i32, %arg2: i32) -> (i32, i32) {
    %c0_i32 = arith.constant 0 : i32
    return %arg0, %arg1 : i32, i32
  }
}

module attributes {stable_mosaic.version = 11 : i64} {
  func.func @_fused_matmul_kernel(%arg0: i32, %arg1: i32, %arg2: i32, %arg3: memref<32x128xbf16, #tpu.memory_space<vmem>>, %arg4: memref<128x256xbf16, #tpu.memory_space<vmem>>, %arg5: memref<1x256xf32, #tpu.memory_space<vmem>>, %arg6: memref<32x256xbf16, #tpu.memory_space<vmem>>, %arg7: memref<32x256xbf16, #tpu.memory_space<vmem>>, %arg8: memref<32x256xf32, #tpu.memory_space<vmem>>) attributes {dimension_semantics = [#tpu.dimension_semantics<parallel>, #tpu.dimension_semantics<parallel>, #tpu.dimension_semantics<arbitrary>], iteration_bounds = array<i64: 1, 1, 1>, scalar_prefetch = 0 : i64, scratch_operands = 1 : i64, tpu.core_type = #tpu.core_type<tc>, window_params = [{transform_indices = @transform_0, window_bounds = array<i64: 32, 128>}, {transform_indices = @transform_1, window_bounds = array<i64: 128, 256>}, {transform_indices = @transform_2, window_bounds = array<i64: 1, 256>}, {transform_indices = @transform_3, window_bounds = array<i64: 32, 256>}, {transform_indices = @transform_4, window_bounds = array<i64: 32, 256>}]} {
    %c0_i32 = arith.constant 0 : i32
    %0 = arith.cmpi eq, %arg2, %c0_i32 : i32
    %1 = arith.extui %0 : i1 to i32
    %c0_i32_0 = arith.constant 0 : i32
    %2 = arith.cmpi ne, %1, %c0_i32_0 : i32
    scf.if %2 {
      %cst_10 = arith.constant 0.000000e+00 : f32
      %12 = vector.broadcast %cst_10 : f32 to vector<32x256xf32>
      %c0_11 = arith.constant 0 : index
      %c0_12 = arith.constant 0 : index
      %13 = vector.load %arg8[%c0_11, %c0_12] : memref<32x256xf32, #tpu.memory_space<vmem>>, vector<32x256xf32>
      tpu.vector_store %arg8[%c0_11, %c0_12], %12 {strides = array<i32>} : memref<32x256xf32, #tpu.memory_space<vmem>>, vector<32x256xf32>,
    } else {
    }
    %c0 = arith.constant 0 : index
    %c0_1 = arith.constant 0 : index
    %3 = vector.load %arg8[%c0, %c0_1] : memref<32x256xf32, #tpu.memory_space<vmem>>, vector<32x256xf32>
    %c0_2 = arith.constant 0 : index
    %c0_3 = arith.constant 0 : index
    %4 = vector.load %arg3[%c0_2, %c0_3] : memref<32x128xbf16, #tpu.memory_space<vmem>>, vector<32x128xbf16>
    %c0_4 = arith.constant 0 : index
    %c0_5 = arith.constant 0 : index
    %5 = vector.load %arg4[%c0_4, %c0_5] : memref<128x256xbf16, #tpu.memory_space<vmem>>, vector<128x256xbf16>
    %cst = arith.constant dense<0.000000e+00> : vector<32x256xf32>
    %6 = tpu.matmul %4, %5, %cst {dimension_numbers = #tpu.dot_dimension_numbers<[1], [0], [0], [1], [0, 0, 1, 1], [], []>} : vector<32x128xbf16>, vector<128x256xbf16>, vector<32x256xf32> -> vector<32x256xf32>
    %7 = arith.addf %3, %6 : vector<32x256xf32>
    %c0_6 = arith.constant 0 : index
    %c0_7 = arith.constant 0 : index
    %8 = vector.load %arg8[%c0_6, %c0_7] : memref<32x256xf32, #tpu.memory_space<vmem>>, vector<32x256xf32>
    tpu.vector_store %arg8[%c0_6, %c0_7], %7 {strides = array<i32>} : memref<32x256xf32, #tpu.memory_space<vmem>>, vector<32x256xf32>,
    %c0_i32_8 = arith.constant 0 : i32
    %9 = arith.cmpi eq, %arg2, %c0_i32_8 : i32
    %10 = arith.extui %9 : i1 to i32
    %c0_i32_9 = arith.constant 0 : i32
    %11 = arith.cmpi ne, %10, %c0_i32_9 : i32
    scf.if %11 {
      %c0_10 = arith.constant 0 : index
      %c0_11 = arith.constant 0 : index
      %12 = vector.load %arg8[%c0_10, %c0_11] : memref<32x256xf32, #tpu.memory_space<vmem>>, vector<32x256xf32>
      %c0_12 = arith.constant 0 : index
      %c0_13 = arith.constant 0 : index
      %13 = vector.load %arg5[%c0_12, %c0_13] : memref<1x256xf32, #tpu.memory_space<vmem>>, vector<1x256xf32>
      %14 = vector.broadcast %13 : vector<1x256xf32> to vector<32x256xf32>
      %15 = arith.addf %12, %14 : vector<32x256xf32>
      %c0_14 = arith.constant 0 : index
      %c0_15 = arith.constant 0 : index
      %16 = vector.load %arg6[%c0_14, %c0_15] : memref<32x256xbf16, #tpu.memory_space<vmem>>, vector<32x256xbf16>
      %17 = arith.extf %16 : vector<32x256xbf16> to vector<32x256xf32>
      %18 = arith.addf %15, %17 : vector<32x256xf32>
      %cst_16 = arith.constant 0.000000e+00 : f32
      %19 = vector.broadcast %cst_16 : f32 to vector<32x256xf32>
      %20 = arith.maximumf %18, %19 : vector<32x256xf32>
      %21 = arith.truncf %20 : vector<32x256xf32> to vector<32x256xbf16>
      %c0_17 = arith.constant 0 : index
      %c0_18 = arith.constant 0 : index
      %22 = vector.load %arg7[%c0_17, %c0_18] : memref<32x256xbf16, #tpu.memory_space<vmem>>, vector<32x256xbf16>
      tpu.vector_store %arg7[%c0_17, %c0_18], %21 {strides = array<i32>} : memref<32x256xbf16, #tpu.memory_space<vmem>>, vector<32x256xbf16>,
    } else {
    }
    return
  }
  func.func @transform_0(%arg0: i32, %arg1: i32, %arg2: i32) -> (i32, i32) {
    %c0_i32 = arith.constant 0 : i32
    return %arg0, %arg2 : i32, i32
  }
  func.func @transform_1(%arg0: i32, %arg1: i32, %arg2: i32) -> (i32, i32) {
    %c0_i32 = arith.constant 0 : i32
    return %arg2, %arg1 : i32, i32
  }
  func.func @transform_2(%arg0: i32, %arg1: i32, %arg2: i32) -> (i32, i32) {
    %c0_i32 = arith.constant 0 : i32
    %c0_i32_0 = arith.constant 0 : i32
    return %c0_i32, %arg1 : i32, i32
  }
  func.func @transform_3(%arg0: i32, %arg1: i32, %arg2: i32) -> (i32, i32) {
    %c0_i32 = arith.constant 0 : i32
    return %arg0, %arg1 : i32, i32
  }
  func.func @transform_4(%arg0: i32, %arg1: i32, %arg2: i32) -> (i32, i32) {
    %c0_i32 = arith.constant 0 : i32
    return %arg0, %arg1 : i32, i32
  }
}

module attributes {stable_mosaic.version = 11 : i64} {
  func.func @_fused_matmul_kernel(%arg0: i32, %arg1: i32, %arg2: i32, %arg3: memref<32x640xbf16, #tpu.memory_space<vmem>>, %arg4: memref<640x128xbf16, #tpu.memory_space<vmem>>, %arg5: memref<1x128xf32, #tpu.memory_space<vmem>>, %arg6: memref<32x128xbf16, #tpu.memory_space<vmem>>, %arg7: memref<32x128xf32, #tpu.memory_space<vmem>>) attributes {dimension_semantics = [#tpu.dimension_semantics<parallel>, #tpu.dimension_semantics<parallel>, #tpu.dimension_semantics<arbitrary>], iteration_bounds = array<i64: 1, 1, 1>, scalar_prefetch = 0 : i64, scratch_operands = 1 : i64, tpu.core_type = #tpu.core_type<tc>, window_params = [{transform_indices = @transform_0, window_bounds = array<i64: 32, 640>}, {transform_indices = @transform_1, window_bounds = array<i64: 640, 128>}, {transform_indices = @transform_2, window_bounds = array<i64: 1, 128>}, {transform_indices = @transform_3, window_bounds = array<i64: 32, 128>}]} {
    %c0_i32 = arith.constant 0 : i32
    %0 = arith.cmpi eq, %arg2, %c0_i32 : i32
    %1 = arith.extui %0 : i1 to i32
    %c0_i32_0 = arith.constant 0 : i32
    %2 = arith.cmpi ne, %1, %c0_i32_0 : i32
    scf.if %2 {
      %cst_10 = arith.constant 0.000000e+00 : f32
      %12 = vector.broadcast %cst_10 : f32 to vector<32x128xf32>
      %c0_11 = arith.constant 0 : index
      %c0_12 = arith.constant 0 : index
      %13 = vector.load %arg7[%c0_11, %c0_12] : memref<32x128xf32, #tpu.memory_space<vmem>>, vector<32x128xf32>
      tpu.vector_store %arg7[%c0_11, %c0_12], %12 {strides = array<i32>} : memref<32x128xf32, #tpu.memory_space<vmem>>, vector<32x128xf32>,
    } else {
    }
    %c0 = arith.constant 0 : index
    %c0_1 = arith.constant 0 : index
    %3 = vector.load %arg7[%c0, %c0_1] : memref<32x128xf32, #tpu.memory_space<vmem>>, vector<32x128xf32>
    %c0_2 = arith.constant 0 : index
    %c0_3 = arith.constant 0 : index
    %4 = vector.load %arg3[%c0_2, %c0_3] : memref<32x640xbf16, #tpu.memory_space<vmem>>, vector<32x640xbf16>
    %c0_4 = arith.constant 0 : index
    %c0_5 = arith.constant 0 : index
    %5 = vector.load %arg4[%c0_4, %c0_5] : memref<640x128xbf16, #tpu.memory_space<vmem>>, vector<640x128xbf16>
    %cst = arith.constant dense<0.000000e+00> : vector<32x128xf32>
    %6 = tpu.matmul %4, %5, %cst {dimension_numbers = #tpu.dot_dimension_numbers<[1], [0], [0], [1], [0, 0, 1, 1], [], []>} : vector<32x640xbf16>, vector<640x128xbf16>, vector<32x128xf32> -> vector<32x128xf32>
    %7 = arith.addf %3, %6 : vector<32x128xf32>
    %c0_6 = arith.constant 0 : index
    %c0_7 = arith.constant 0 : index
    %8 = vector.load %arg7[%c0_6, %c0_7] : memref<32x128xf32, #tpu.memory_space<vmem>>, vector<32x128xf32>
    tpu.vector_store %arg7[%c0_6, %c0_7], %7 {strides = array<i32>} : memref<32x128xf32, #tpu.memory_space<vmem>>, vector<32x128xf32>,
    %c0_i32_8 = arith.constant 0 : i32
    %9 = arith.cmpi eq, %arg2, %c0_i32_8 : i32
    %10 = arith.extui %9 : i1 to i32
    %c0_i32_9 = arith.constant 0 : i32
    %11 = arith.cmpi ne, %10, %c0_i32_9 : i32
    scf.if %11 {
      %c0_10 = arith.constant 0 : index
      %c0_11 = arith.constant 0 : index
      %12 = vector.load %arg7[%c0_10, %c0_11] : memref<32x128xf32, #tpu.memory_space<vmem>>, vector<32x128xf32>
      %c0_12 = arith.constant 0 : index
      %c0_13 = arith.constant 0 : index
      %13 = vector.load %arg5[%c0_12, %c0_13] : memref<1x128xf32, #tpu.memory_space<vmem>>, vector<1x128xf32>
      %14 = vector.broadcast %13 : vector<1x128xf32> to vector<32x128xf32>
      %15 = arith.addf %12, %14 : vector<32x128xf32>
      %cst_14 = arith.constant 0.000000e+00 : f32
      %16 = vector.broadcast %cst_14 : f32 to vector<32x128xf32>
      %17 = arith.maximumf %15, %16 : vector<32x128xf32>
      %18 = arith.truncf %17 : vector<32x128xf32> to vector<32x128xbf16>
      %c0_15 = arith.constant 0 : index
      %c0_16 = arith.constant 0 : index
      %19 = vector.load %arg6[%c0_15, %c0_16] : memref<32x128xbf16, #tpu.memory_space<vmem>>, vector<32x128xbf16>
      tpu.vector_store %arg6[%c0_15, %c0_16], %18 {strides = array<i32>} : memref<32x128xbf16, #tpu.memory_space<vmem>>, vector<32x128xbf16>,
    } else {
    }
    return
  }
  func.func @transform_0(%arg0: i32, %arg1: i32, %arg2: i32) -> (i32, i32) {
    %c0_i32 = arith.constant 0 : i32
    return %arg0, %arg2 : i32, i32
  }
  func.func @transform_1(%arg0: i32, %arg1: i32, %arg2: i32) -> (i32, i32) {
    %c0_i32 = arith.constant 0 : i32
    return %arg2, %arg1 : i32, i32
  }
  func.func @transform_2(%arg0: i32, %arg1: i32, %arg2: i32) -> (i32, i32) {
    %c0_i32 = arith.constant 0 : i32
    %c0_i32_0 = arith.constant 0 : i32
    return %c0_i32, %arg1 : i32, i32
  }
  func.func @transform_3(%arg0: i32, %arg1: i32, %arg2: i32) -> (i32, i32) {
    %c0_i32 = arith.constant 0 : i32
    return %arg0, %arg1 : i32, i32
  }
}

module attributes {stable_mosaic.version = 11 : i64} {
  func.func @_fused_matmul_kernel(%arg0: i32, %arg1: i32, %arg2: i32, %arg3: memref<32x128xbf16, #tpu.memory_space<vmem>>, %arg4: memref<128x256xbf16, #tpu.memory_space<vmem>>, %arg5: memref<1x256xf32, #tpu.memory_space<vmem>>, %arg6: memref<32x256xbf16, #tpu.memory_space<vmem>>, %arg7: memref<32x256xf32, #tpu.memory_space<vmem>>) attributes {dimension_semantics = [#tpu.dimension_semantics<parallel>, #tpu.dimension_semantics<parallel>, #tpu.dimension_semantics<arbitrary>], iteration_bounds = array<i64: 1, 1, 1>, scalar_prefetch = 0 : i64, scratch_operands = 1 : i64, tpu.core_type = #tpu.core_type<tc>, window_params = [{transform_indices = @transform_0, window_bounds = array<i64: 32, 128>}, {transform_indices = @transform_1, window_bounds = array<i64: 128, 256>}, {transform_indices = @transform_2, window_bounds = array<i64: 1, 256>}, {transform_indices = @transform_3, window_bounds = array<i64: 32, 256>}]} {
    %c0_i32 = arith.constant 0 : i32
    %0 = arith.cmpi eq, %arg2, %c0_i32 : i32
    %1 = arith.extui %0 : i1 to i32
    %c0_i32_0 = arith.constant 0 : i32
    %2 = arith.cmpi ne, %1, %c0_i32_0 : i32
    scf.if %2 {
      %cst_10 = arith.constant 0.000000e+00 : f32
      %12 = vector.broadcast %cst_10 : f32 to vector<32x256xf32>
      %c0_11 = arith.constant 0 : index
      %c0_12 = arith.constant 0 : index
      %13 = vector.load %arg7[%c0_11, %c0_12] : memref<32x256xf32, #tpu.memory_space<vmem>>, vector<32x256xf32>
      tpu.vector_store %arg7[%c0_11, %c0_12], %12 {strides = array<i32>} : memref<32x256xf32, #tpu.memory_space<vmem>>, vector<32x256xf32>,
    } else {
    }
    %c0 = arith.constant 0 : index
    %c0_1 = arith.constant 0 : index
    %3 = vector.load %arg7[%c0, %c0_1] : memref<32x256xf32, #tpu.memory_space<vmem>>, vector<32x256xf32>
    %c0_2 = arith.constant 0 : index
    %c0_3 = arith.constant 0 : index
    %4 = vector.load %arg3[%c0_2, %c0_3] : memref<32x128xbf16, #tpu.memory_space<vmem>>, vector<32x128xbf16>
    %c0_4 = arith.constant 0 : index
    %c0_5 = arith.constant 0 : index
    %5 = vector.load %arg4[%c0_4, %c0_5] : memref<128x256xbf16, #tpu.memory_space<vmem>>, vector<128x256xbf16>
    %cst = arith.constant dense<0.000000e+00> : vector<32x256xf32>
    %6 = tpu.matmul %4, %5, %cst {dimension_numbers = #tpu.dot_dimension_numbers<[1], [0], [0], [1], [0, 0, 1, 1], [], []>} : vector<32x128xbf16>, vector<128x256xbf16>, vector<32x256xf32> -> vector<32x256xf32>
    %7 = arith.addf %3, %6 : vector<32x256xf32>
    %c0_6 = arith.constant 0 : index
    %c0_7 = arith.constant 0 : index
    %8 = vector.load %arg7[%c0_6, %c0_7] : memref<32x256xf32, #tpu.memory_space<vmem>>, vector<32x256xf32>
    tpu.vector_store %arg7[%c0_6, %c0_7], %7 {strides = array<i32>} : memref<32x256xf32, #tpu.memory_space<vmem>>, vector<32x256xf32>,
    %c0_i32_8 = arith.constant 0 : i32
    %9 = arith.cmpi eq, %arg2, %c0_i32_8 : i32
    %10 = arith.extui %9 : i1 to i32
    %c0_i32_9 = arith.constant 0 : i32
    %11 = arith.cmpi ne, %10, %c0_i32_9 : i32
    scf.if %11 {
      %c0_10 = arith.constant 0 : index
      %c0_11 = arith.constant 0 : index
      %12 = vector.load %arg7[%c0_10, %c0_11] : memref<32x256xf32, #tpu.memory_space<vmem>>, vector<32x256xf32>
      %c0_12 = arith.constant 0 : index
      %c0_13 = arith.constant 0 : index
      %13 = vector.load %arg5[%c0_12, %c0_13] : memref<1x256xf32, #tpu.memory_space<vmem>>, vector<1x256xf32>
      %14 = vector.broadcast %13 : vector<1x256xf32> to vector<32x256xf32>
      %15 = arith.addf %12, %14 : vector<32x256xf32>
      %16 = arith.truncf %15 : vector<32x256xf32> to vector<32x256xbf16>
      %c0_14 = arith.constant 0 : index
      %c0_15 = arith.constant 0 : index
      %17 = vector.load %arg6[%c0_14, %c0_15] : memref<32x256xbf16, #tpu.memory_space<vmem>>, vector<32x256xbf16>
      tpu.vector_store %arg6[%c0_14, %c0_15], %16 {strides = array<i32>} : memref<32x256xbf16, #tpu.memory_space<vmem>>, vector<32x256xbf16>,
    } else {
    }
    return
  }
  func.func @transform_0(%arg0: i32, %arg1: i32, %arg2: i32) -> (i32, i32) {
    %c0_i32 = arith.constant 0 : i32
    return %arg0, %arg2 : i32, i32
  }
  func.func @transform_1(%arg0: i32, %arg1: i32, %arg2: i32) -> (i32, i32) {
    %c0_i32 = arith.constant 0 : i32
    return %arg2, %arg1 : i32, i32
  }
  func.func @transform_2(%arg0: i32, %arg1: i32, %arg2: i32) -> (i32, i32) {
    %c0_i32 = arith.constant 0 : i32
    %c0_i32_0 = arith.constant 0 : i32
    return %c0_i32, %arg1 : i32, i32
  }
  func.func @transform_3(%arg0: i32, %arg1: i32, %arg2: i32) -> (i32, i32) {
    %c0_i32 = arith.constant 0 : i32
    return %arg0, %arg1 : i32, i32
  }
}

module attributes {stable_mosaic.version = 11 : i64} {
  func.func @_gap_kernel(%arg0: i32, %arg1: memref<2x16x256xbf16, #tpu.memory_space<vmem>>, %arg2: memref<2x256xf32, #tpu.memory_space<vmem>>) attributes {dimension_semantics = [#tpu.dimension_semantics<arbitrary>], iteration_bounds = array<i64: 1>, scalar_prefetch = 0 : i64, scratch_operands = 0 : i64, tpu.core_type = #tpu.core_type<tc>, window_params = [{transform_indices = @transform_0, window_bounds = array<i64: 2, 16, 256>}, {pipeline_mode = #tpu.pipeline_mode<synchronous>, transform_indices = @transform_1, window_bounds = array<i64: 2, 256>}]} {
    %c0_i32 = arith.constant 0 : i32
    %0 = arith.cmpi eq, %arg0, %c0_i32 : i32
    %1 = arith.extui %0 : i1 to i32
    %c0_i32_0 = arith.constant 0 : i32
    %2 = arith.cmpi ne, %1, %c0_i32_0 : i32
    scf.if %2 {
      %cst_9 = arith.constant 0.000000e+00 : f32
      %12 = vector.broadcast %cst_9 : f32 to vector<2x256xf32>
      %c0_10 = arith.constant 0 : index
      %c0_11 = arith.constant 0 : index
      %13 = vector.load %arg2[%c0_10, %c0_11] : memref<2x256xf32, #tpu.memory_space<vmem>>, vector<2x256xf32>
      tpu.vector_store %arg2[%c0_10, %c0_11], %12 {strides = array<i32>} : memref<2x256xf32, #tpu.memory_space<vmem>>, vector<2x256xf32>,
    } else {
    }
    %c0 = arith.constant 0 : index
    %c0_1 = arith.constant 0 : index
    %3 = vector.load %arg2[%c0, %c0_1] : memref<2x256xf32, #tpu.memory_space<vmem>>, vector<2x256xf32>
    %c0_2 = arith.constant 0 : index
    %c0_3 = arith.constant 0 : index
    %c0_4 = arith.constant 0 : index
    %4 = vector.load %arg1[%c0_2, %c0_3, %c0_4] : memref<2x16x256xbf16, #tpu.memory_space<vmem>>, vector<2x16x256xbf16>
    %5 = arith.extf %4 : vector<2x16x256xbf16> to vector<2x16x256xf32>
    %cst = arith.constant dense<0.000000e+00> : vector<2x256xf32>
    %6 = vector.multi_reduction <add>, %5, %cst [1] : vector<2x16x256xf32> to vector<2x256xf32>
    %7 = arith.addf %3, %6 : vector<2x256xf32>
    %c0_5 = arith.constant 0 : index
    %c0_6 = arith.constant 0 : index
    %8 = vector.load %arg2[%c0_5, %c0_6] : memref<2x256xf32, #tpu.memory_space<vmem>>, vector<2x256xf32>
    tpu.vector_store %arg2[%c0_5, %c0_6], %7 {strides = array<i32>} : memref<2x256xf32, #tpu.memory_space<vmem>>, vector<2x256xf32>,
    %c0_i32_7 = arith.constant 0 : i32
    %9 = arith.cmpi eq, %arg0, %c0_i32_7 : i32
    %10 = arith.extui %9 : i1 to i32
    %c0_i32_8 = arith.constant 0 : i32
    %11 = arith.cmpi ne, %10, %c0_i32_8 : i32
    scf.if %11 {
      %c0_9 = arith.constant 0 : index
      %c0_10 = arith.constant 0 : index
      %12 = vector.load %arg2[%c0_9, %c0_10] : memref<2x256xf32, #tpu.memory_space<vmem>>, vector<2x256xf32>
      %cst_11 = arith.constant 6.250000e-02 : f32
      %13 = vector.broadcast %cst_11 : f32 to vector<2x256xf32>
      %14 = arith.mulf %12, %13 : vector<2x256xf32>
      %c0_12 = arith.constant 0 : index
      %c0_13 = arith.constant 0 : index
      %15 = vector.load %arg2[%c0_12, %c0_13] : memref<2x256xf32, #tpu.memory_space<vmem>>, vector<2x256xf32>
      tpu.vector_store %arg2[%c0_12, %c0_13], %14 {strides = array<i32>} : memref<2x256xf32, #tpu.memory_space<vmem>>, vector<2x256xf32>,
    } else {
    }
    return
  }
  func.func @transform_0(%arg0: i32) -> (i32, i32, i32) {
    %c0_i32 = arith.constant 0 : i32
    %c0_i32_0 = arith.constant 0 : i32
    %c0_i32_1 = arith.constant 0 : i32
    return %c0_i32, %arg0, %c0_i32_0 : i32, i32, i32
  }
  func.func @transform_1(%arg0: i32) -> (i32, i32) {
    %c0_i32 = arith.constant 0 : i32
    %c0_i32_0 = arith.constant 0 : i32
    %c0_i32_1 = arith.constant 0 : i32
    return %c0_i32, %c0_i32_0 : i32, i32
  }
}

module attributes {stable_mosaic.version = 11 : i64} {
  func.func @_fused_matmul_kernel(%arg0: i32, %arg1: i32, %arg2: i32, %arg3: memref<16x256xbf16, #tpu.memory_space<vmem>>, %arg4: memref<256x128xbf16, #tpu.memory_space<vmem>>, %arg5: memref<1x128xf32, #tpu.memory_space<vmem>>, %arg6: memref<16x128xbf16, #tpu.memory_space<vmem>>, %arg7: memref<16x128xf32, #tpu.memory_space<vmem>>) attributes {dimension_semantics = [#tpu.dimension_semantics<parallel>, #tpu.dimension_semantics<parallel>, #tpu.dimension_semantics<arbitrary>], iteration_bounds = array<i64: 1, 1, 1>, scalar_prefetch = 0 : i64, scratch_operands = 1 : i64, tpu.core_type = #tpu.core_type<tc>, window_params = [{transform_indices = @transform_0, window_bounds = array<i64: 16, 256>}, {transform_indices = @transform_1, window_bounds = array<i64: 256, 128>}, {transform_indices = @transform_2, window_bounds = array<i64: 1, 128>}, {transform_indices = @transform_3, window_bounds = array<i64: 16, 128>}]} {
    %c0_i32 = arith.constant 0 : i32
    %0 = arith.cmpi eq, %arg2, %c0_i32 : i32
    %1 = arith.extui %0 : i1 to i32
    %c0_i32_0 = arith.constant 0 : i32
    %2 = arith.cmpi ne, %1, %c0_i32_0 : i32
    scf.if %2 {
      %cst_10 = arith.constant 0.000000e+00 : f32
      %12 = vector.broadcast %cst_10 : f32 to vector<16x128xf32>
      %c0_11 = arith.constant 0 : index
      %c0_12 = arith.constant 0 : index
      %13 = vector.load %arg7[%c0_11, %c0_12] : memref<16x128xf32, #tpu.memory_space<vmem>>, vector<16x128xf32>
      tpu.vector_store %arg7[%c0_11, %c0_12], %12 {strides = array<i32>} : memref<16x128xf32, #tpu.memory_space<vmem>>, vector<16x128xf32>,
    } else {
    }
    %c0 = arith.constant 0 : index
    %c0_1 = arith.constant 0 : index
    %3 = vector.load %arg7[%c0, %c0_1] : memref<16x128xf32, #tpu.memory_space<vmem>>, vector<16x128xf32>
    %c0_2 = arith.constant 0 : index
    %c0_3 = arith.constant 0 : index
    %4 = vector.load %arg3[%c0_2, %c0_3] : memref<16x256xbf16, #tpu.memory_space<vmem>>, vector<16x256xbf16>
    %c0_4 = arith.constant 0 : index
    %c0_5 = arith.constant 0 : index
    %5 = vector.load %arg4[%c0_4, %c0_5] : memref<256x128xbf16, #tpu.memory_space<vmem>>, vector<256x128xbf16>
    %cst = arith.constant dense<0.000000e+00> : vector<16x128xf32>
    %6 = tpu.matmul %4, %5, %cst {dimension_numbers = #tpu.dot_dimension_numbers<[1], [0], [0], [1], [0, 0, 1, 1], [], []>} : vector<16x256xbf16>, vector<256x128xbf16>, vector<16x128xf32> -> vector<16x128xf32>
    %7 = arith.addf %3, %6 : vector<16x128xf32>
    %c0_6 = arith.constant 0 : index
    %c0_7 = arith.constant 0 : index
    %8 = vector.load %arg7[%c0_6, %c0_7] : memref<16x128xf32, #tpu.memory_space<vmem>>, vector<16x128xf32>
    tpu.vector_store %arg7[%c0_6, %c0_7], %7 {strides = array<i32>} : memref<16x128xf32, #tpu.memory_space<vmem>>, vector<16x128xf32>,
    %c0_i32_8 = arith.constant 0 : i32
    %9 = arith.cmpi eq, %arg2, %c0_i32_8 : i32
    %10 = arith.extui %9 : i1 to i32
    %c0_i32_9 = arith.constant 0 : i32
    %11 = arith.cmpi ne, %10, %c0_i32_9 : i32
    scf.if %11 {
      %c0_10 = arith.constant 0 : index
      %c0_11 = arith.constant 0 : index
      %12 = vector.load %arg7[%c0_10, %c0_11] : memref<16x128xf32, #tpu.memory_space<vmem>>, vector<16x128xf32>
      %c0_12 = arith.constant 0 : index
      %c0_13 = arith.constant 0 : index
      %13 = vector.load %arg5[%c0_12, %c0_13] : memref<1x128xf32, #tpu.memory_space<vmem>>, vector<1x128xf32>
      %14 = vector.broadcast %13 : vector<1x128xf32> to vector<16x128xf32>
      %15 = arith.addf %12, %14 : vector<16x128xf32>
      %cst_14 = arith.constant 0.000000e+00 : f32
      %16 = vector.broadcast %cst_14 : f32 to vector<16x128xf32>
      %17 = arith.maximumf %15, %16 : vector<16x128xf32>
      %18 = arith.truncf %17 : vector<16x128xf32> to vector<16x128xbf16>
      %c0_15 = arith.constant 0 : index
      %c0_16 = arith.constant 0 : index
      %19 = vector.load %arg6[%c0_15, %c0_16] : memref<16x128xbf16, #tpu.memory_space<vmem>>, vector<16x128xbf16>
      tpu.vector_store %arg6[%c0_15, %c0_16], %18 {strides = array<i32>} : memref<16x128xbf16, #tpu.memory_space<vmem>>, vector<16x128xbf16>,
    } else {
    }
    return
  }
  func.func @transform_0(%arg0: i32, %arg1: i32, %arg2: i32) -> (i32, i32) {
    %c0_i32 = arith.constant 0 : i32
    return %arg0, %arg2 : i32, i32
  }
  func.func @transform_1(%arg0: i32, %arg1: i32, %arg2: i32) -> (i32, i32) {
    %c0_i32 = arith.constant 0 : i32
    return %arg2, %arg1 : i32, i32
  }
  func.func @transform_2(%arg0: i32, %arg1: i32, %arg2: i32) -> (i32, i32) {
    %c0_i32 = arith.constant 0 : i32
    %c0_i32_0 = arith.constant 0 : i32
    return %c0_i32, %arg1 : i32, i32
  }
  func.func @transform_3(%arg0: i32, %arg1: i32, %arg2: i32) -> (i32, i32) {
    %c0_i32 = arith.constant 0 : i32
    return %arg0, %arg1 : i32, i32
  }
}

module attributes {stable_mosaic.version = 11 : i64} {
  func.func @_fused_matmul_kernel(%arg0: i32, %arg1: i32, %arg2: i32, %arg3: memref<32x128xbf16, #tpu.memory_space<vmem>>, %arg4: memref<128x128xbf16, #tpu.memory_space<vmem>>, %arg5: memref<1x128xf32, #tpu.memory_space<vmem>>, %arg6: memref<32x128xf32, #tpu.memory_space<vmem>>, %arg7: memref<32x128xf32, #tpu.memory_space<vmem>>) attributes {dimension_semantics = [#tpu.dimension_semantics<parallel>, #tpu.dimension_semantics<parallel>, #tpu.dimension_semantics<arbitrary>], iteration_bounds = array<i64: 1, 1, 1>, scalar_prefetch = 0 : i64, scratch_operands = 1 : i64, tpu.core_type = #tpu.core_type<tc>, window_params = [{transform_indices = @transform_0, window_bounds = array<i64: 32, 128>}, {transform_indices = @transform_1, window_bounds = array<i64: 128, 128>}, {transform_indices = @transform_2, window_bounds = array<i64: 1, 128>}, {transform_indices = @transform_3, window_bounds = array<i64: 32, 128>}]} {
    %c0_i32 = arith.constant 0 : i32
    %0 = arith.cmpi eq, %arg2, %c0_i32 : i32
    %1 = arith.extui %0 : i1 to i32
    %c0_i32_0 = arith.constant 0 : i32
    %2 = arith.cmpi ne, %1, %c0_i32_0 : i32
    scf.if %2 {
      %cst_10 = arith.constant 0.000000e+00 : f32
      %12 = vector.broadcast %cst_10 : f32 to vector<32x128xf32>
      %c0_11 = arith.constant 0 : index
      %c0_12 = arith.constant 0 : index
      %13 = vector.load %arg7[%c0_11, %c0_12] : memref<32x128xf32, #tpu.memory_space<vmem>>, vector<32x128xf32>
      tpu.vector_store %arg7[%c0_11, %c0_12], %12 {strides = array<i32>} : memref<32x128xf32, #tpu.memory_space<vmem>>, vector<32x128xf32>,
    } else {
    }
    %c0 = arith.constant 0 : index
    %c0_1 = arith.constant 0 : index
    %3 = vector.load %arg7[%c0, %c0_1] : memref<32x128xf32, #tpu.memory_space<vmem>>, vector<32x128xf32>
    %c0_2 = arith.constant 0 : index
    %c0_3 = arith.constant 0 : index
    %4 = vector.load %arg3[%c0_2, %c0_3] : memref<32x128xbf16, #tpu.memory_space<vmem>>, vector<32x128xbf16>
    %c0_4 = arith.constant 0 : index
    %c0_5 = arith.constant 0 : index
    %5 = vector.load %arg4[%c0_4, %c0_5] : memref<128x128xbf16, #tpu.memory_space<vmem>>, vector<128x128xbf16>
    %cst = arith.constant dense<0.000000e+00> : vector<32x128xf32>
    %6 = tpu.matmul %4, %5, %cst {dimension_numbers = #tpu.dot_dimension_numbers<[1], [0], [0], [1], [0, 0, 1, 1], [], []>} : vector<32x128xbf16>, vector<128x128xbf16>, vector<32x128xf32> -> vector<32x128xf32>
    %7 = arith.addf %3, %6 : vector<32x128xf32>
    %c0_6 = arith.constant 0 : index
    %c0_7 = arith.constant 0 : index
    %8 = vector.load %arg7[%c0_6, %c0_7] : memref<32x128xf32, #tpu.memory_space<vmem>>, vector<32x128xf32>
    tpu.vector_store %arg7[%c0_6, %c0_7], %7 {strides = array<i32>} : memref<32x128xf32, #tpu.memory_space<vmem>>, vector<32x128xf32>,
    %c0_i32_8 = arith.constant 0 : i32
    %9 = arith.cmpi eq, %arg2, %c0_i32_8 : i32
    %10 = arith.extui %9 : i1 to i32
    %c0_i32_9 = arith.constant 0 : i32
    %11 = arith.cmpi ne, %10, %c0_i32_9 : i32
    scf.if %11 {
      %c0_10 = arith.constant 0 : index
      %c0_11 = arith.constant 0 : index
      %12 = vector.load %arg7[%c0_10, %c0_11] : memref<32x128xf32, #tpu.memory_space<vmem>>, vector<32x128xf32>
      %c0_12 = arith.constant 0 : index
      %c0_13 = arith.constant 0 : index
      %13 = vector.load %arg5[%c0_12, %c0_13] : memref<1x128xf32, #tpu.memory_space<vmem>>, vector<1x128xf32>
      %14 = vector.broadcast %13 : vector<1x128xf32> to vector<32x128xf32>
      %15 = arith.addf %12, %14 : vector<32x128xf32>
      %c0_14 = arith.constant 0 : index
      %c0_15 = arith.constant 0 : index
      %16 = vector.load %arg6[%c0_14, %c0_15] : memref<32x128xf32, #tpu.memory_space<vmem>>, vector<32x128xf32>
      tpu.vector_store %arg6[%c0_14, %c0_15], %15 {strides = array<i32>} : memref<32x128xf32, #tpu.memory_space<vmem>>, vector<32x128xf32>,
    } else {
    }
    return
  }
  func.func @transform_0(%arg0: i32, %arg1: i32, %arg2: i32) -> (i32, i32) {
    %c0_i32 = arith.constant 0 : i32
    return %arg0, %arg2 : i32, i32
  }
  func.func @transform_1(%arg0: i32, %arg1: i32, %arg2: i32) -> (i32, i32) {
    %c0_i32 = arith.constant 0 : i32
    return %arg2, %arg1 : i32, i32
  }
  func.func @transform_2(%arg0: i32, %arg1: i32, %arg2: i32) -> (i32, i32) {
    %c0_i32 = arith.constant 0 : i32
    %c0_i32_0 = arith.constant 0 : i32
    return %c0_i32, %arg1 : i32, i32
  }
  func.func @transform_3(%arg0: i32, %arg1: i32, %arg2: i32) -> (i32, i32) {
    %c0_i32 = arith.constant 0 : i32
    return %arg0, %arg1 : i32, i32
  }
}

</mosaic_0001>

<bundles_post_ra>
// kernel: deeplabv3_forward.113
= control target key start
LH: loop header
LB: loop body
LE: loop exit
PB: predicated region body
PF: predicated region fallthrough
CT: control target
= control target key end

     0   :  { %v2147_v0 = vmov 0   ;;  %s2605_s1 = inlined_call_operand.vmem [shape: bf16[256,128], index: 1, kind: input, shape index: {}]   ;;  %s2606_s0 = inlined_call_operand.vmem [shape: bf16[512,256], index: 0, kind: input, shape index: {}]   ;;  %s2607_s2 = inlined_call_operand.vmem [shape: f32[1,128], index: 2, kind: input, shape index: {}]   ;;  %s2608_s3 = inlined_call_operand.vmem [shape: bf16[512,128], index: 3, kind: output, shape index: {}]  }
   0x1   :  { %659 = vmatprep.subr.bf16.mxu0 %v2147_v0  ;;  %2002 = vmatprep.subr.bf16.mxu1 %v2147_v0  ;;  %v2035_v1 = vld [vmem:[%s2605_s1] sm:$0xff]   ;;  %v2036_v2 = vld [vmem:[%s2605_s1 + $0x8] sm:$0xff]   ;;  %v2037_v3 = vld [vmem:[%s2605_s1 + $0x10] sm:$0xff]  }
   0x2   :  { %660 = vmatpush1.bf16.msra.mxu0 %v2035_v1  ;;  %2018 = vmatpush1.bf16.msra.mxu1 %v2035_v1  ;;  %v2038_v4 = vld [vmem:[%s2605_s1 + $0x18] sm:$0xff]   ;;  %v2039_v5 = vld [vmem:[%s2605_s1 + $0x20] sm:$0xff]   ;;  %v2040_v7 = vld [vmem:[%s2605_s1 + $0x28] sm:$0xff]  }
   0x3   :  { %661 = vmatprep.subr.bf16.mxu0 %v2147_v0  ;;  %2003 = vmatprep.subr.bf16.mxu1 %v2147_v0  ;;  %v2053_v6 = vld [vmem:[%s2606_s0 + $0x4] ss:$8 sps:$4 sm:$0xff]   ;;  %v2041_v9 = vld [vmem:[%s2605_s1 + $0x30] sm:$0xff]   ;;  %v2042_v10 = vld [vmem:[%s2605_s1 + $0x38] sm:$0xff]  }
   0x4   :  { %v2056_v8 = vld [vmem:[%s2606_s0 + $0x104] ss:$8 sps:$4 sm:$0xff]   ;;  %691 = vmatprep.mubr.bf16.mxu0 %v2053_v6  ;;  %v2045_v13 = vld [vmem:[%s2605_s1 + $0x50] sm:$0xff]   ;;  %v2046_v14 = vld [vmem:[%s2605_s1 + $0x58] sm:$0xff]  }
   0x5   :  { %819 = vmatprep.mubr.bf16.mxu1 %v2056_v8  ;;  %v2043_v11 = vld [vmem:[%s2605_s1 + $0x40] sm:$0xff]   ;;  %v2044_v12 = vld [vmem:[%s2605_s1 + $0x48] sm:$0xff]   ;;  %v2049_v17 = vld [vmem:[%s2605_s1 + $0x70] sm:$0xff]  }
   0x6   :  { %662 = vmatpush1.bf16.msra.mxu0 %v2036_v2  ;;  %2019 = vmatpush1.bf16.msra.mxu1 %v2036_v2  ;;  %v2047_v15 = vld [vmem:[%s2605_s1 + $0x60] sm:$0xff]   ;;  %v2048_v16 = vld [vmem:[%s2605_s1 + $0x68] sm:$0xff]   ;;  %v2050_v18 = vld [vmem:[%s2605_s1 + $0x78] sm:$0xff]  }
   0x7   :  { %663 = vmatprep.subr.bf16.mxu0 %v2147_v0  ;;  %2004 = vmatprep.subr.bf16.mxu1 %v2147_v0  ;;  %v2051_v19 = vld [vmem:[%s2606_s0] ss:$8 sps:$4 sm:$0xff]   ;;  %v2057_v21 = vld [vmem:[%s2606_s0 + $0x14] ss:$8 sps:$4 sm:$0xff]   ;;  %v2061_v23 = vld [vmem:[%s2606_s0 + $0x10] ss:$8 sps:$4 sm:$0xff]  }
   0x8   :  { %v2054_v20 = vld [vmem:[%s2606_s0 + $0x100] ss:$8 sps:$4 sm:$0xff]   ;;  %v2059_v22 = vld [vmem:[%s2606_s0 + $0x114] ss:$8 sps:$4 sm:$0xff]   ;;  %v2062_v24 = vld [vmem:[%s2606_s0 + $0x110] ss:$8 sps:$4 sm:$0xff]  }
   0x9   :  { %v2063_v25 = vld [vmem:[%s2606_s0 + $0x24] ss:$8 sps:$4 sm:$0xff]   ;;  %v2067_v27 = vld [vmem:[%s2606_s0 + $0x20] ss:$8 sps:$4 sm:$0xff]   ;;  %v2069_v29 = vld [vmem:[%s2606_s0 + $0x34] ss:$8 sps:$4 sm:$0xff]  }
   0xa   :  { %664 = vmatpush1.bf16.msra.mxu0 %v2037_v3  ;;  %2020 = vmatpush1.bf16.msra.mxu1 %v2037_v3  ;;  %v2065_v26 = vld [vmem:[%s2606_s0 + $0x124] ss:$8 sps:$4 sm:$0xff]   ;;  %v2068_v28 = vld [vmem:[%s2606_s0 + $0x120] ss:$8 sps:$4 sm:$0xff]   ;;  %v2071_v30 = vld [vmem:[%s2606_s0 + $0x134] ss:$8 sps:$4 sm:$0xff]  }
   0xb   :  { %665 = vmatprep.subr.bf16.mxu0 %v2147_v0  ;;  %2005 = vmatprep.subr.bf16.mxu1 %v2147_v0  ;;  %v2073_v31 = vld [vmem:[%s2606_s0 + $0x30] ss:$8 sps:$4 sm:$0xff]   ;;  %v2075_v33 = vld [vmem:[%s2606_s0 + $0x44] ss:$8 sps:$4 sm:$0xff]   ;;  %v2079_v35 = vld [vmem:[%s2606_s0 + $0x40] ss:$8 sps:$4 sm:$0xff]  }
   0xc   :  { %v2074_v32 = vld [vmem:[%s2606_s0 + $0x130] ss:$8 sps:$4 sm:$0xff]   ;;  %v2077_v34 = vld [vmem:[%s2606_s0 + $0x144] ss:$8 sps:$4 sm:$0xff]   ;;  %v2080_v36 = vld [vmem:[%s2606_s0 + $0x140] ss:$8 sps:$4 sm:$0xff]  }
   0xd   :  { %v2081_v37 = vld [vmem:[%s2606_s0 + $0x54] ss:$8 sps:$4 sm:$0xff]   ;;  %v2085_v39 = vld [vmem:[%s2606_s0 + $0x50] ss:$8 sps:$4 sm:$0xff]   ;;  %v2087_v41 = vld [vmem:[%s2606_s0 + $0x64] ss:$8 sps:$4 sm:$0xff]  }
   0xe   :  { %666 = vmatpush1.bf16.msra.mxu0 %v2038_v4  ;;  %2021 = vmatpush1.bf16.msra.mxu1 %v2038_v4  ;;  %v2083_v38 = vld [vmem:[%s2606_s0 + $0x154] ss:$8 sps:$4 sm:$0xff]   ;;  %v2086_v40 = vld [vmem:[%s2606_s0 + $0x150] ss:$8 sps:$4 sm:$0xff]   ;;  %v2089_v42 = vld [vmem:[%s2606_s0 + $0x164] ss:$8 sps:$4 sm:$0xff]  }
   0xf   :  { %667 = vmatprep.subr.bf16.mxu0 %v2147_v0  ;;  %2006 = vmatprep.subr.bf16.mxu1 %v2147_v0  ;;  %v2091_v43 = vld [vmem:[%s2606_s0 + $0x60] ss:$8 sps:$4 sm:$0xff]   ;;  %v2093_v45 = vld [vmem:[%s2606_s0 + $0x74] ss:$8 sps:$4 sm:$0xff]   ;;  %v2097_v47 = vld [vmem:[%s2606_s0 + $0x70] ss:$8 sps:$4 sm:$0xff]  }
  0x10   :  { %v2092_v44 = vld [vmem:[%s2606_s0 + $0x160] ss:$8 sps:$4 sm:$0xff]   ;;  %v2095_v46 = vld [vmem:[%s2606_s0 + $0x174] ss:$8 sps:$4 sm:$0xff]   ;;  %v2098_v48 = vld [vmem:[%s2606_s0 + $0x170] ss:$8 sps:$4 sm:$0xff]  }
  0x11   :  { %v2099_v49 = vld [vmem:[%s2606_s0 + $0x84] ss:$8 sps:$4 sm:$0xff]   ;;  %v2103_v51 = vld [vmem:[%s2606_s0 + $0x80] ss:$8 sps:$4 sm:$0xff]   ;;  %v2105_v53 = vld [vmem:[%s2606_s0 + $0x94] ss:$8 sps:$4 sm:$0xff]  }
  0x12   :  { %668 = vmatpush1.bf16.msra.mxu0 %v2039_v5  ;;  %2022 = vmatpush1.bf16.msra.mxu1 %v2039_v5  ;;  %v2101_v50 = vld [vmem:[%s2606_s0 + $0x184] ss:$8 sps:$4 sm:$0xff]   ;;  %v2104_v52 = vld [vmem:[%s2606_s0 + $0x180] ss:$8 sps:$4 sm:$0xff]   ;;  %v2107_v54 = vld [vmem:[%s2606_s0 + $0x194] ss:$8 sps:$4 sm:$0xff]  }
  0x13   :  { %669 = vmatprep.subr.bf16.mxu0 %v2147_v0  ;;  %2007 = vmatprep.subr.bf16.mxu1 %v2147_v0  ;;  %v2109_v55 = vld [vmem:[%s2606_s0 + $0x90] ss:$8 sps:$4 sm:$0xff]   ;;  %v2111_v57 = vld [vmem:[%s2606_s0 + $0xa4] ss:$8 sps:$4 sm:$0xff]   ;;  %v2115_v59 = vld [vmem:[%s2606_s0 + $0xa0] ss:$8 sps:$4 sm:$0xff]  }
  0x14   :  { %v2110_v56 = vld [vmem:[%s2606_s0 + $0x190] ss:$8 sps:$4 sm:$0xff]   ;;  %v2113_v58 = vld [vmem:[%s2606_s0 + $0x1a4] ss:$8 sps:$4 sm:$0xff]   ;;  %v2116_v60 = vld [vmem:[%s2606_s0 + $0x1a0] ss:$8 sps:$4 sm:$0xff]  }
  0x15   :  { %v2117_v61 = vld [vmem:[%s2606_s0 + $0xb4] ss:$8 sps:$4 sm:$0xff]   ;;  %v2121_v63 = vld [vmem:[%s2606_s0 + $0xb0] ss:$8 sps:$4 sm:$0xff]   ;;  %v2123_v1 = vld [vmem:[%s2606_s0 + $0xc4] ss:$8 sps:$4 sm:$0xff]  }
  0x16   :  { %670 = vmatpush1.bf16.msra.mxu0 %v2040_v7  ;;  %2023 = vmatpush1.bf16.msra.mxu1 %v2040_v7  ;;  %v2119_v62 = vld [vmem:[%s2606_s0 + $0x1b4] ss:$8 sps:$4 sm:$0xff]   ;;  %v2125_v2 = vld [vmem:[%s2606_s0 + $0x1c4] ss:$8 sps:$4 sm:$0xff]   ;;  %v2127_v3 = vld [vmem:[%s2606_s0 + $0xc0] ss:$8 sps:$4 sm:$0xff]  }
  0x17   :  { %671 = vmatprep.subr.bf16.mxu0 %v2147_v0  ;;  %2008 = vmatprep.subr.bf16.mxu1 %v2147_v0  ;;  %v2128_v4 = vld [vmem:[%s2606_s0 + $0x1c0] ss:$8 sps:$4 sm:$0xff]   ;;  %v2129_v5 = vld [vmem:[%s2606_s0 + $0xd4] ss:$8 sps:$4 sm:$0xff]   ;;  %v2133_v7 = vld [vmem:[%s2606_s0 + $0xd0] ss:$8 sps:$4 sm:$0xff]  }
  0x18   :  { %v2131_v6 = vld [vmem:[%s2606_s0 + $0x1d4] ss:$8 sps:$4 sm:$0xff]   ;;  %v2134_v8 = vld [vmem:[%s2606_s0 + $0x1d0] ss:$8 sps:$4 sm:$0xff]  }
  0x1a   :  { %672 = vmatpush1.bf16.msra.mxu0 %v2041_v9  ;;  %2024 = vmatpush1.bf16.msra.mxu1 %v2041_v9  ;;  %v2135_v9 = vld [vmem:[%s2606_s0 + $0xe4] ss:$8 sps:$4 sm:$0xff]  }
  0x1b   :  { %673 = vmatprep.subr.bf16.mxu0 %v2147_v0  ;;  %2009 = vmatprep.subr.bf16.mxu1 %v2147_v0 }
  0x1e   :  { %674 = vmatpush1.bf16.msra.mxu0 %v2042_v10  ;;  %2025 = vmatpush1.bf16.msra.mxu1 %v2042_v10  ;;  %v2137_v10 = vld [vmem:[%s2606_s0 + $0x1e4] ss:$8 sps:$4 sm:$0xff]  }
  0x1f   :  { %675 = vmatprep.subr.bf16.mxu0 %v2147_v0  ;;  %2010 = vmatprep.subr.bf16.mxu1 %v2147_v0 }
  0x22   :  { %676 = vmatpush1.bf16.msra.mxu0 %v2043_v11  ;;  %2026 = vmatpush1.bf16.msra.mxu1 %v2043_v11  ;;  %v2139_v11 = vld [vmem:[%s2606_s0 + $0xe0] ss:$8 sps:$4 sm:$0xff]  }
  0x23   :  { %677 = vmatprep.subr.bf16.mxu0 %v2147_v0  ;;  %2011 = vmatprep.subr.bf16.mxu1 %v2147_v0 }
  0x26   :  { %678 = vmatpush1.bf16.msra.mxu0 %v2044_v12  ;;  %2027 = vmatpush1.bf16.msra.mxu1 %v2044_v12  ;;  %v2140_v12 = vld [vmem:[%s2606_s0 + $0x1e0] ss:$8 sps:$4 sm:$0xff]  }
  0x27   :  { %679 = vmatprep.subr.bf16.mxu0 %v2147_v0  ;;  %2012 = vmatprep.subr.bf16.mxu1 %v2147_v0 }
  0x2a   :  { %680 = vmatpush1.bf16.msra.mxu0 %v2045_v13  ;;  %2028 = vmatpush1.bf16.msra.mxu1 %v2045_v13  ;;  %v2141_v13 = vld [vmem:[%s2606_s0 + $0xf4] ss:$8 sps:$4 sm:$0xff]  }
  0x2b   :  { %681 = vmatprep.subr.bf16.mxu0 %v2147_v0  ;;  %2013 = vmatprep.subr.bf16.mxu1 %v2147_v0 }
  0x2e   :  { %682 = vmatpush1.bf16.msra.mxu0 %v2046_v14  ;;  %2029 = vmatpush1.bf16.msra.mxu1 %v2046_v14  ;;  %v2143_v14 = vld [vmem:[%s2606_s0 + $0x1f4] ss:$8 sps:$4 sm:$0xff]  }
  0x2f   :  { %683 = vmatprep.subr.bf16.mxu0 %v2147_v0  ;;  %2014 = vmatprep.subr.bf16.mxu1 %v2147_v0 }
  0x32   :  { %684 = vmatpush1.bf16.msra.mxu0 %v2047_v15  ;;  %2030 = vmatpush1.bf16.msra.mxu1 %v2047_v15  ;;  %v2145_v15 = vld [vmem:[%s2606_s0 + $0xf0] ss:$8 sps:$4 sm:$0xff]  }
  0x33   :  { %685 = vmatprep.subr.bf16.mxu0 %v2147_v0  ;;  %2015 = vmatprep.subr.bf16.mxu1 %v2147_v0 }
  0x36   :  { %686 = vmatpush1.bf16.msra.mxu0 %v2048_v16  ;;  %2031 = vmatpush1.bf16.msra.mxu1 %v2048_v16  ;;  %v2146_v16 = vld [vmem:[%s2606_s0 + $0x1f0] ss:$8 sps:$4 sm:$0xff]  }
  0x37   :  { %687 = vmatprep.subr.bf16.mxu0 %v2147_v0  ;;  %2016 = vmatprep.subr.bf16.mxu1 %v2147_v0 }
  0x3a   :  { %688 = vmatpush1.bf16.msra.mxu0 %v2049_v17  ;;  %2032 = vmatpush1.bf16.msra.mxu1 %v2049_v17  ;;  %v2443_v17 = vld [vmem:[%s2607_s2] ss:$0 sm:$0xff] }
  0x3b   :  { %689 = vmatprep.subr.bf16.mxu0 %v2147_v0  ;;  %2017 = vmatprep.subr.bf16.mxu1 %v2147_v0  ;;  %v2122_v0 = vld [vmem:[%s2606_s0 + $0x1b0] ss:$8 sps:$4 sm:$0xff]  }
  0x3e   :  { %690 = vmatpush1.bf16.msra.mxu0 %v2050_v18  ;;  %2033 = vmatpush1.bf16.msra.mxu1 %v2050_v18 }
  0x41   :  { %692 = vmatmul.mubr.bf16.vlgmr.msra.gmra.mrb[0].mxu0 %v2051_v19  ;;  %820 = vmatmul.mubr.bf16.vlgmr.msra.gmra.mrb[0].mxu1 %v2054_v20 }
  0x42   :  { %699 = vmatprep.mubr.bf16.mxu0 %v2057_v21  ;;  %827 = vmatprep.mubr.bf16.mxu1 %v2059_v22 }
  0x49   :  { %700 = vmatmul.mubr.bf16.gmra.mrb[4].mxu0 %v2061_v23  ;;  %828 = vmatmul.mubr.bf16.gmra.mrb[4].mxu1 %v2062_v24 }
  0x4a   :  { %707 = vmatprep.mubr.bf16.mxu0 %v2063_v25  ;;  %835 = vmatprep.mubr.bf16.mxu1 %v2065_v26 }
  0x51   :  { %708 = vmatmul.mubr.bf16.gmra.mrb[8].mxu0 %v2067_v27  ;;  %836 = vmatmul.mubr.bf16.gmra.mrb[8].mxu1 %v2068_v28 }
  0x52   :  { %715 = vmatprep.mubr.bf16.mxu0 %v2069_v29  ;;  %843 = vmatprep.mubr.bf16.mxu1 %v2071_v30 }
  0x59   :  { %716 = vmatmul.mubr.bf16.gmra.mrb[12].mxu0 %v2073_v31  ;;  %844 = vmatmul.mubr.bf16.gmra.mrb[12].mxu1 %v2074_v32 }
  0x5a   :  { %723 = vmatprep.mubr.bf16.mxu0 %v2075_v33  ;;  %851 = vmatprep.mubr.bf16.mxu1 %v2077_v34 }
  0x61   :  { %724 = vmatmul.mubr.bf16.gmra.mrb[16].mxu0 %v2079_v35  ;;  %852 = vmatmul.mubr.bf16.gmra.mrb[16].mxu1 %v2080_v36 }
  0x62   :  { %731 = vmatprep.mubr.bf16.mxu0 %v2081_v37  ;;  %859 = vmatprep.mubr.bf16.mxu1 %v2083_v38 }
  0x69   :  { %732 = vmatmul.mubr.bf16.gmra.mrb[20].mxu0 %v2085_v39  ;;  %860 = vmatmul.mubr.bf16.gmra.mrb[20].mxu1 %v2086_v40 }
  0x6a   :  { %739 = vmatprep.mubr.bf16.mxu0 %v2087_v41  ;;  %867 = vmatprep.mubr.bf16.mxu1 %v2089_v42 }
  0x71   :  { %740 = vmatmul.mubr.bf16.gmra.mrb[24].mxu0 %v2091_v43  ;;  %868 = vmatmul.mubr.bf16.gmra.mrb[24].mxu1 %v2092_v44 }
  0x72   :  { %747 = vmatprep.mubr.bf16.mxu0 %v2093_v45  ;;  %875 = vmatprep.mubr.bf16.mxu1 %v2095_v46 }
  0x79   :  { %748 = vmatmul.mubr.bf16.gmra.mrb[28].mxu0 %v2097_v47  ;;  %876 = vmatmul.mubr.bf16.gmra.mrb[28].mxu1 %v2098_v48 }
  0x7a   :  { %755 = vmatprep.mubr.bf16.mxu0 %v2099_v49  ;;  %883 = vmatprep.mubr.bf16.mxu1 %v2101_v50 }
  0x81   :  { %756 = vmatmul.mubr.bf16.gmra.mrb[32].mxu0 %v2103_v51  ;;  %884 = vmatmul.mubr.bf16.gmra.mrb[32].mxu1 %v2104_v52 }
  0x82   :  { %763 = vmatprep.mubr.bf16.mxu0 %v2105_v53  ;;  %891 = vmatprep.mubr.bf16.mxu1 %v2107_v54 }
  0x89   :  { %764 = vmatmul.mubr.bf16.gmra.mrb[36].mxu0 %v2109_v55  ;;  %892 = vmatmul.mubr.bf16.gmra.mrb[36].mxu1 %v2110_v56 }
  0x8a   :  { %771 = vmatprep.mubr.bf16.mxu0 %v2111_v57  ;;  %899 = vmatprep.mubr.bf16.mxu1 %v2113_v58 }
  0x91   :  { %772 = vmatmul.mubr.bf16.gmra.mrb[40].mxu0 %v2115_v59  ;;  %900 = vmatmul.mubr.bf16.gmra.mrb[40].mxu1 %v2116_v60 }
  0x92   :  { %779 = vmatprep.mubr.bf16.mxu0 %v2117_v61  ;;  %907 = vmatprep.mubr.bf16.mxu1 %v2119_v62 }
  0x99   :  { %780 = vmatmul.mubr.bf16.gmra.mrb[44].mxu0 %v2121_v63  ;;  %908 = vmatmul.mubr.bf16.gmra.mrb[44].mxu1 %v2122_v0 }
  0x9a   :  { %787 = vmatprep.mubr.bf16.mxu0 %v2123_v1  ;;  %915 = vmatprep.mubr.bf16.mxu1 %v2125_v2 }
  0xa1   :  { %788 = vmatmul.mubr.bf16.gmra.mrb[48].mxu0 %v2127_v3  ;;  %916 = vmatmul.mubr.bf16.gmra.mrb[48].mxu1 %v2128_v4 }
  0xa2   :  { %795 = vmatprep.mubr.bf16.mxu0 %v2129_v5  ;;  %923 = vmatprep.mubr.bf16.mxu1 %v2131_v6 }
  0xa9   :  { %796 = vmatmul.mubr.bf16.gmra.mrb[52].mxu0 %v2133_v7  ;;  %924 = vmatmul.mubr.bf16.gmra.mrb[52].mxu1 %v2134_v8 }
  0xaa   :  { %803 = vmatprep.mubr.bf16.mxu0 %v2135_v9  ;;  %931 = vmatprep.mubr.bf16.mxu1 %v2137_v10 }
  0xb1   :  { %804 = vmatmul.mubr.bf16.gmra.mrb[56].mxu0 %v2139_v11  ;;  %932 = vmatmul.mubr.bf16.gmra.mrb[56].mxu1 %v2140_v12 }
  0xb2   :  { %811 = vmatprep.mubr.bf16.mxu0 %v2141_v13  ;;  %939 = vmatprep.mubr.bf16.mxu1 %v2143_v14 }
  0xb9   :  { %812 = vmatmul.mubr.bf16.gmra.mrb[60].mxu0 %v2145_v15  ;;  %940 = vmatmul.mubr.bf16.gmra.mrb[60].mxu1 %v2146_v16 }
 0x114   :  { %v693_v18 = vpop.f32.mrb[0].mxu0  ;;  %v821_v19 = vpop.f32.mrb[0].mxu1 }
 0x115   :  { %v1150_v20 = vadd.f32 %v2443_v17, %v693_v18  ;;  %v1182_v21 = vadd.f32 %v2443_v17, %v821_v19  ;;  %v695_v22 = vpop.f32.mrb[1].mxu0  ;;  %v823_v23 = vpop.f32.mrb[1].mxu1 }
 0x116   :  { %v696_v24 = vpop.f32.mrb[2].mxu0  ;;  %v824_v25 = vpop.f32.mrb[2].mxu1 }
 0x117   :  { %v1151_v26 = vadd.f32 %v2443_v17, %v696_v24  ;;  %v1183_v27 = vadd.f32 %v2443_v17, %v824_v25  ;;  %v698_v28 = vpop.f32.mrb[3].mxu0  ;;  %v826_v29 = vpop.f32.mrb[3].mxu1  ;;  %v1214_v30 = vmax.f32 %v1150_v20, 0.0  ;;  %v1246_v31 = vmax.f32 %v1182_v21, 0.0 }
 0x119   :  { %v1215_v32 = vmax.f32 %v1151_v26, 0.0  ;;  %v1247_v33 = vmax.f32 %v1183_v27, 0.0 }
 0x11b   :  { %v1814_v34 = vpack.c.bf16 %v1215_v32, %v1214_v30  ;;  %v1894_v35 = vpack.c.bf16 %v1247_v33, %v1246_v31 }
 0x11c   :  { %v701_v36 = vpop.f32.mrb[4].mxu0  ;;  %v829_v37 = vpop.f32.mrb[4].mxu1 }
 0x11d   :  { %1815 = vst [vmem:[%s2608_s3] sm:$0xff] %v1814_v34   ;;  %1986 = vst [vmem:[%s2608_s3 + $0x80] sm:$0xff] %v1894_v35   ;;  %v1152_v38 = vadd.f32 %v2443_v17, %v701_v36  ;;  %v1184_v39 = vadd.f32 %v2443_v17, %v829_v37  ;;  %v703_v40 = vpop.f32.mrb[5].mxu0  ;;  %v831_v41 = vpop.f32.mrb[5].mxu1 }
 0x11e   :  { %v704_v42 = vpop.f32.mrb[6].mxu0  ;;  %v832_v43 = vpop.f32.mrb[6].mxu1 }
 0x11f   :  { %v1153_v44 = vadd.f32 %v2443_v17, %v704_v42  ;;  %v1185_v45 = vadd.f32 %v2443_v17, %v832_v43  ;;  %v706_v46 = vpop.f32.mrb[7].mxu0  ;;  %v834_v47 = vpop.f32.mrb[7].mxu1  ;;  %v1216_v48 = vmax.f32 %v1152_v38, 0.0  ;;  %v1248_v49 = vmax.f32 %v1184_v39, 0.0 }
 0x121   :  { %v1217_v50 = vmax.f32 %v1153_v44, 0.0  ;;  %v1249_v51 = vmax.f32 %v1185_v45, 0.0 }
 0x123   :  { %v1819_v52 = vpack.c.bf16 %v1217_v50, %v1216_v48  ;;  %v1899_v53 = vpack.c.bf16 %v1249_v51, %v1248_v49 }
 0x124   :  { %v709_v54 = vpop.f32.mrb[8].mxu0  ;;  %v837_v55 = vpop.f32.mrb[8].mxu1 }
 0x125   :  { %1971 = vst [vmem:[%s2608_s3 + $0x8] sm:$0xff] %v1819_v52   ;;  %1987 = vst [vmem:[%s2608_s3 + $0x88] sm:$0xff] %v1899_v53   ;;  %v1154_v56 = vadd.f32 %v2443_v17, %v709_v54  ;;  %v1186_v57 = vadd.f32 %v2443_v17, %v837_v55  ;;  %v711_v58 = vpop.f32.mrb[9].mxu0  ;;  %v839_v59 = vpop.f32.mrb[9].mxu1 }
 0x126   :  { %v712_v60 = vpop.f32.mrb[10].mxu0  ;;  %v840_v61 = vpop.f32.mrb[10].mxu1 }
 0x127   :  { %v1155_v62 = vadd.f32 %v2443_v17, %v712_v60  ;;  %v1187_v63 = vadd.f32 %v2443_v17, %v840_v61  ;;  %v714_v0 = vpop.f32.mrb[11].mxu0  ;;  %v842_v1 = vpop.f32.mrb[11].mxu1  ;;  %v1218_v2 = vmax.f32 %v1154_v56, 0.0  ;;  %v1250_v3 = vmax.f32 %v1186_v57, 0.0 }
 0x129   :  { %v1219_v4 = vmax.f32 %v1155_v62, 0.0  ;;  %v1251_v5 = vmax.f32 %v1187_v63, 0.0 }
 0x12b   :  { %v1824_v6 = vpack.c.bf16 %v1219_v4, %v1218_v2  ;;  %v1904_v7 = vpack.c.bf16 %v1251_v5, %v1250_v3 }
 0x12c   :  { %v717_v8 = vpop.f32.mrb[12].mxu0  ;;  %v845_v9 = vpop.f32.mrb[12].mxu1 }
 0x12d   :  { %1972 = vst [vmem:[%s2608_s3 + $0x10] sm:$0xff] %v1824_v6   ;;  %1988 = vst [vmem:[%s2608_s3 + $0x90] sm:$0xff] %v1904_v7   ;;  %v1156_v10 = vadd.f32 %v2443_v17, %v717_v8  ;;  %v1188_v11 = vadd.f32 %v2443_v17, %v845_v9  ;;  %v719_v12 = vpop.f32.mrb[13].mxu0  ;;  %v847_v13 = vpop.f32.mrb[13].mxu1 }
 0x12e   :  { %v720_v14 = vpop.f32.mrb[14].mxu0  ;;  %v848_v15 = vpop.f32.mrb[14].mxu1 }
 0x12f   :  { %v1157_v16 = vadd.f32 %v2443_v17, %v720_v14  ;;  %v1189_v18 = vadd.f32 %v2443_v17, %v848_v15  ;;  %v722_v19 = vpop.f32.mrb[15].mxu0  ;;  %v850_v20 = vpop.f32.mrb[15].mxu1  ;;  %v1220_v21 = vmax.f32 %v1156_v10, 0.0  ;;  %v1252_v22 = vmax.f32 %v1188_v11, 0.0 }
 0x131   :  { %v1221_v23 = vmax.f32 %v1157_v16, 0.0  ;;  %v1253_v24 = vmax.f32 %v1189_v18, 0.0 }
 0x133   :  { %v1829_v25 = vpack.c.bf16 %v1221_v23, %v1220_v21  ;;  %v1909_v26 = vpack.c.bf16 %v1253_v24, %v1252_v22 }
 0x134   :  { %v725_v27 = vpop.f32.mrb[16].mxu0  ;;  %v853_v28 = vpop.f32.mrb[16].mxu1 }
 0x135   :  { %1973 = vst [vmem:[%s2608_s3 + $0x18] sm:$0xff] %v1829_v25   ;;  %1989 = vst [vmem:[%s2608_s3 + $0x98] sm:$0xff] %v1909_v26   ;;  %v1158_v29 = vadd.f32 %v2443_v17, %v725_v27  ;;  %v1190_v30 = vadd.f32 %v2443_v17, %v853_v28  ;;  %v727_v31 = vpop.f32.mrb[17].mxu0  ;;  %v855_v32 = vpop.f32.mrb[17].mxu1 }
 0x136   :  { %v728_v33 = vpop.f32.mrb[18].mxu0  ;;  %v856_v34 = vpop.f32.mrb[18].mxu1 }
 0x137   :  { %v1159_v35 = vadd.f32 %v2443_v17, %v728_v33  ;;  %v1191_v36 = vadd.f32 %v2443_v17, %v856_v34  ;;  %v730_v37 = vpop.f32.mrb[19].mxu0  ;;  %v858_v38 = vpop.f32.mrb[19].mxu1  ;;  %v1222_v39 = vmax.f32 %v1158_v29, 0.0  ;;  %v1254_v40 = vmax.f32 %v1190_v30, 0.0 }
 0x139   :  { %v1223_v41 = vmax.f32 %v1159_v35, 0.0  ;;  %v1255_v42 = vmax.f32 %v1191_v36, 0.0 }
 0x13b   :  { %v1834_v43 = vpack.c.bf16 %v1223_v41, %v1222_v39  ;;  %v1914_v44 = vpack.c.bf16 %v1255_v42, %v1254_v40 }
 0x13c   :  { %v733_v45 = vpop.f32.mrb[20].mxu0  ;;  %v861_v46 = vpop.f32.mrb[20].mxu1 }
 0x13d   :  { %1974 = vst [vmem:[%s2608_s3 + $0x20] sm:$0xff] %v1834_v43   ;;  %1990 = vst [vmem:[%s2608_s3 + $0xa0] sm:$0xff] %v1914_v44   ;;  %v1160_v47 = vadd.f32 %v2443_v17, %v733_v45  ;;  %v1192_v48 = vadd.f32 %v2443_v17, %v861_v46  ;;  %v735_v49 = vpop.f32.mrb[21].mxu0  ;;  %v863_v50 = vpop.f32.mrb[21].mxu1 }
 0x13e   :  { %v736_v51 = vpop.f32.mrb[22].mxu0  ;;  %v864_v52 = vpop.f32.mrb[22].mxu1 }
 0x13f   :  { %v1161_v53 = vadd.f32 %v2443_v17, %v736_v51  ;;  %v1193_v54 = vadd.f32 %v2443_v17, %v864_v52  ;;  %v738_v55 = vpop.f32.mrb[23].mxu0  ;;  %v866_v56 = vpop.f32.mrb[23].mxu1  ;;  %v1224_v57 = vmax.f32 %v1160_v47, 0.0  ;;  %v1256_v58 = vmax.f32 %v1192_v48, 0.0 }
 0x141   :  { %v1225_v59 = vmax.f32 %v1161_v53, 0.0  ;;  %v1257_v60 = vmax.f32 %v1193_v54, 0.0 }
 0x143   :  { %v1839_v61 = vpack.c.bf16 %v1225_v59, %v1224_v57  ;;  %v1919_v62 = vpack.c.bf16 %v1257_v60, %v1256_v58 }
 0x144   :  { %v741_v63 = vpop.f32.mrb[24].mxu0  ;;  %v869_v0 = vpop.f32.mrb[24].mxu1 }
 0x145   :  { %1975 = vst [vmem:[%s2608_s3 + $0x28] sm:$0xff] %v1839_v61   ;;  %1991 = vst [vmem:[%s2608_s3 + $0xa8] sm:$0xff] %v1919_v62   ;;  %v1162_v1 = vadd.f32 %v2443_v17, %v741_v63  ;;  %v1194_v2 = vadd.f32 %v2443_v17, %v869_v0  ;;  %v743_v3 = vpop.f32.mrb[25].mxu0  ;;  %v871_v4 = vpop.f32.mrb[25].mxu1 }
 0x146   :  { %v744_v5 = vpop.f32.mrb[26].mxu0  ;;  %v872_v6 = vpop.f32.mrb[26].mxu1 }
 0x147   :  { %v1163_v7 = vadd.f32 %v2443_v17, %v744_v5  ;;  %v1195_v8 = vadd.f32 %v2443_v17, %v872_v6  ;;  %v746_v9 = vpop.f32.mrb[27].mxu0  ;;  %v874_v10 = vpop.f32.mrb[27].mxu1  ;;  %v1226_v11 = vmax.f32 %v1162_v1, 0.0  ;;  %v1258_v12 = vmax.f32 %v1194_v2, 0.0 }
 0x149   :  { %v1227_v13 = vmax.f32 %v1163_v7, 0.0  ;;  %v1259_v14 = vmax.f32 %v1195_v8, 0.0 }
 0x14b   :  { %v1844_v15 = vpack.c.bf16 %v1227_v13, %v1226_v11  ;;  %v1924_v16 = vpack.c.bf16 %v1259_v14, %v1258_v12 }
 0x14c   :  { %v749_v18 = vpop.f32.mrb[28].mxu0  ;;  %v877_v19 = vpop.f32.mrb[28].mxu1 }
 0x14d   :  { %1976 = vst [vmem:[%s2608_s3 + $0x30] sm:$0xff] %v1844_v15   ;;  %1992 = vst [vmem:[%s2608_s3 + $0xb0] sm:$0xff] %v1924_v16   ;;  %v1164_v20 = vadd.f32 %v2443_v17, %v749_v18  ;;  %v1196_v21 = vadd.f32 %v2443_v17, %v877_v19  ;;  %v751_v22 = vpop.f32.mrb[29].mxu0  ;;  %v879_v23 = vpop.f32.mrb[29].mxu1 }
 0x14e   :  { %v752_v24 = vpop.f32.mrb[30].mxu0  ;;  %v880_v25 = vpop.f32.mrb[30].mxu1 }
 0x14f   :  { %v1165_v26 = vadd.f32 %v2443_v17, %v752_v24  ;;  %v1197_v27 = vadd.f32 %v2443_v17, %v880_v25  ;;  %v754_v28 = vpop.f32.mrb[31].mxu0  ;;  %v882_v29 = vpop.f32.mrb[31].mxu1  ;;  %v1228_v30 = vmax.f32 %v1164_v20, 0.0  ;;  %v1260_v31 = vmax.f32 %v1196_v21, 0.0 }
 0x151   :  { %v1229_v32 = vmax.f32 %v1165_v26, 0.0  ;;  %v1261_v33 = vmax.f32 %v1197_v27, 0.0 }
 0x153   :  { %v1849_v34 = vpack.c.bf16 %v1229_v32, %v1228_v30  ;;  %v1929_v35 = vpack.c.bf16 %v1261_v33, %v1260_v31 }
 0x154   :  { %v757_v36 = vpop.f32.mrb[32].mxu0  ;;  %v885_v37 = vpop.f32.mrb[32].mxu1 }
 0x155   :  { %1977 = vst [vmem:[%s2608_s3 + $0x38] sm:$0xff] %v1849_v34   ;;  %1993 = vst [vmem:[%s2608_s3 + $0xb8] sm:$0xff] %v1929_v35   ;;  %v1166_v38 = vadd.f32 %v2443_v17, %v757_v36  ;;  %v1198_v39 = vadd.f32 %v2443_v17, %v885_v37  ;;  %v759_v40 = vpop.f32.mrb[33].mxu0  ;;  %v887_v41 = vpop.f32.mrb[33].mxu1 }
 0x156   :  { %v760_v42 = vpop.f32.mrb[34].mxu0  ;;  %v888_v43 = vpop.f32.mrb[34].mxu1 }
 0x157   :  { %v1167_v44 = vadd.f32 %v2443_v17, %v760_v42  ;;  %v1199_v45 = vadd.f32 %v2443_v17, %v888_v43  ;;  %v762_v46 = vpop.f32.mrb[35].mxu0  ;;  %v890_v47 = vpop.f32.mrb[35].mxu1  ;;  %v1230_v48 = vmax.f32 %v1166_v38, 0.0  ;;  %v1262_v49 = vmax.f32 %v1198_v39, 0.0 }
 0x159   :  { %v1231_v50 = vmax.f32 %v1167_v44, 0.0  ;;  %v1263_v51 = vmax.f32 %v1199_v45, 0.0 }
 0x15b   :  { %v1854_v52 = vpack.c.bf16 %v1231_v50, %v1230_v48  ;;  %v1934_v53 = vpack.c.bf16 %v1263_v51, %v1262_v49 }
 0x15c   :  { %v765_v54 = vpop.f32.mrb[36].mxu0  ;;  %v893_v55 = vpop.f32.mrb[36].mxu1 }
 0x15d   :  { %1978 = vst [vmem:[%s2608_s3 + $0x40] sm:$0xff] %v1854_v52   ;;  %1994 = vst [vmem:[%s2608_s3 + $0xc0] sm:$0xff] %v1934_v53   ;;  %v1168_v56 = vadd.f32 %v2443_v17, %v765_v54  ;;  %v1200_v57 = vadd.f32 %v2443_v17, %v893_v55  ;;  %v767_v58 = vpop.f32.mrb[37].mxu0  ;;  %v895_v59 = vpop.f32.mrb[37].mxu1 }
 0x15e   :  { %v768_v60 = vpop.f32.mrb[38].mxu0  ;;  %v896_v61 = vpop.f32.mrb[38].mxu1 }
 0x15f   :  { %v1169_v62 = vadd.f32 %v2443_v17, %v768_v60  ;;  %v1201_v63 = vadd.f32 %v2443_v17, %v896_v61  ;;  %v770_v0 = vpop.f32.mrb[39].mxu0  ;;  %v898_v1 = vpop.f32.mrb[39].mxu1  ;;  %v1232_v2 = vmax.f32 %v1168_v56, 0.0  ;;  %v1264_v3 = vmax.f32 %v1200_v57, 0.0 }
 0x161   :  { %v1233_v4 = vmax.f32 %v1169_v62, 0.0  ;;  %v1265_v5 = vmax.f32 %v1201_v63, 0.0 }
 0x163   :  { %v1859_v6 = vpack.c.bf16 %v1233_v4, %v1232_v2  ;;  %v1939_v7 = vpack.c.bf16 %v1265_v5, %v1264_v3 }
 0x164   :  { %v773_v8 = vpop.f32.mrb[40].mxu0  ;;  %v901_v9 = vpop.f32.mrb[40].mxu1 }
 0x165   :  { %1979 = vst [vmem:[%s2608_s3 + $0x48] sm:$0xff] %v1859_v6   ;;  %1995 = vst [vmem:[%s2608_s3 + $0xc8] sm:$0xff] %v1939_v7   ;;  %v1170_v10 = vadd.f32 %v2443_v17, %v773_v8  ;;  %v1202_v11 = vadd.f32 %v2443_v17, %v901_v9  ;;  %v775_v12 = vpop.f32.mrb[41].mxu0  ;;  %v903_v13 = vpop.f32.mrb[41].mxu1 }
 0x166   :  { %v776_v14 = vpop.f32.mrb[42].mxu0  ;;  %v904_v15 = vpop.f32.mrb[42].mxu1 }
 0x167   :  { %v1171_v16 = vadd.f32 %v2443_v17, %v776_v14  ;;  %v1203_v18 = vadd.f32 %v2443_v17, %v904_v15  ;;  %v778_v19 = vpop.f32.mrb[43].mxu0  ;;  %v906_v20 = vpop.f32.mrb[43].mxu1  ;;  %v1234_v21 = vmax.f32 %v1170_v10, 0.0  ;;  %v1266_v22 = vmax.f32 %v1202_v11, 0.0 }
 0x169   :  { %v1235_v23 = vmax.f32 %v1171_v16, 0.0  ;;  %v1267_v24 = vmax.f32 %v1203_v18, 0.0 }
 0x16b   :  { %v1864_v25 = vpack.c.bf16 %v1235_v23, %v1234_v21  ;;  %v1944_v26 = vpack.c.bf16 %v1267_v24, %v1266_v22 }
 0x16c   :  { %v781_v27 = vpop.f32.mrb[44].mxu0  ;;  %v909_v28 = vpop.f32.mrb[44].mxu1 }
 0x16d   :  { %1980 = vst [vmem:[%s2608_s3 + $0x50] sm:$0xff] %v1864_v25   ;;  %1996 = vst [vmem:[%s2608_s3 + $0xd0] sm:$0xff] %v1944_v26   ;;  %v1172_v29 = vadd.f32 %v2443_v17, %v781_v27  ;;  %v1204_v30 = vadd.f32 %v2443_v17, %v909_v28  ;;  %v783_v31 = vpop.f32.mrb[45].mxu0  ;;  %v911_v32 = vpop.f32.mrb[45].mxu1 }
 0x16e   :  { %v784_v33 = vpop.f32.mrb[46].mxu0  ;;  %v912_v34 = vpop.f32.mrb[46].mxu1 }
 0x16f   :  { %v1173_v35 = vadd.f32 %v2443_v17, %v784_v33  ;;  %v1205_v36 = vadd.f32 %v2443_v17, %v912_v34  ;;  %v786_v37 = vpop.f32.mrb[47].mxu0  ;;  %v914_v38 = vpop.f32.mrb[47].mxu1  ;;  %v1236_v39 = vmax.f32 %v1172_v29, 0.0  ;;  %v1268_v40 = vmax.f32 %v1204_v30, 0.0 }
 0x171   :  { %v1237_v41 = vmax.f32 %v1173_v35, 0.0  ;;  %v1269_v42 = vmax.f32 %v1205_v36, 0.0 }
 0x173   :  { %v1869_v43 = vpack.c.bf16 %v1237_v41, %v1236_v39  ;;  %v1949_v44 = vpack.c.bf16 %v1269_v42, %v1268_v40 }
 0x174   :  { %v789_v45 = vpop.f32.mrb[48].mxu0  ;;  %v917_v46 = vpop.f32.mrb[48].mxu1 }
 0x175   :  { %1981 = vst [vmem:[%s2608_s3 + $0x58] sm:$0xff] %v1869_v43   ;;  %1997 = vst [vmem:[%s2608_s3 + $0xd8] sm:$0xff] %v1949_v44   ;;  %v1174_v47 = vadd.f32 %v2443_v17, %v789_v45  ;;  %v1206_v48 = vadd.f32 %v2443_v17, %v917_v46  ;;  %v791_v49 = vpop.f32.mrb[49].mxu0  ;;  %v919_v50 = vpop.f32.mrb[49].mxu1 }
 0x176   :  { %v792_v51 = vpop.f32.mrb[50].mxu0  ;;  %v920_v52 = vpop.f32.mrb[50].mxu1 }
 0x177   :  { %v1175_v53 = vadd.f32 %v2443_v17, %v792_v51  ;;  %v1207_v54 = vadd.f32 %v2443_v17, %v920_v52  ;;  %v794_v55 = vpop.f32.mrb[51].mxu0  ;;  %v922_v56 = vpop.f32.mrb[51].mxu1  ;;  %v1238_v57 = vmax.f32 %v1174_v47, 0.0  ;;  %v1270_v58 = vmax.f32 %v1206_v48, 0.0 }
 0x179   :  { %v1239_v59 = vmax.f32 %v1175_v53, 0.0  ;;  %v1271_v60 = vmax.f32 %v1207_v54, 0.0 }
 0x17b   :  { %v1874_v61 = vpack.c.bf16 %v1239_v59, %v1238_v57  ;;  %v1954_v62 = vpack.c.bf16 %v1271_v60, %v1270_v58 }
 0x17c   :  { %v797_v63 = vpop.f32.mrb[52].mxu0  ;;  %v925_v0 = vpop.f32.mrb[52].mxu1 }
 0x17d   :  { %1982 = vst [vmem:[%s2608_s3 + $0x60] sm:$0xff] %v1874_v61   ;;  %1998 = vst [vmem:[%s2608_s3 + $0xe0] sm:$0xff] %v1954_v62   ;;  %v1176_v1 = vadd.f32 %v2443_v17, %v797_v63  ;;  %v1208_v2 = vadd.f32 %v2443_v17, %v925_v0  ;;  %v799_v3 = vpop.f32.mrb[53].mxu0  ;;  %v927_v4 = vpop.f32.mrb[53].mxu1 }
 0x17e   :  { %v800_v5 = vpop.f32.mrb[54].mxu0  ;;  %v928_v6 = vpop.f32.mrb[54].mxu1 }
 0x17f   :  { %v1177_v7 = vadd.f32 %v2443_v17, %v800_v5  ;;  %v1209_v8 = vadd.f32 %v2443_v17, %v928_v6  ;;  %v802_v9 = vpop.f32.mrb[55].mxu0  ;;  %v930_v10 = vpop.f32.mrb[55].mxu1  ;;  %v1240_v11 = vmax.f32 %v1176_v1, 0.0  ;;  %v1272_v12 = vmax.f32 %v1208_v2, 0.0 }
 0x181   :  { %v1241_v13 = vmax.f32 %v1177_v7, 0.0  ;;  %v1273_v14 = vmax.f32 %v1209_v8, 0.0 }
 0x183   :  { %v1879_v15 = vpack.c.bf16 %v1241_v13, %v1240_v11  ;;  %v1959_v16 = vpack.c.bf16 %v1273_v14, %v1272_v12 }
 0x184   :  { %v805_v18 = vpop.f32.mrb[56].mxu0  ;;  %v933_v19 = vpop.f32.mrb[56].mxu1 }
 0x185   :  { %1983 = vst [vmem:[%s2608_s3 + $0x68] sm:$0xff] %v1879_v15   ;;  %1999 = vst [vmem:[%s2608_s3 + $0xe8] sm:$0xff] %v1959_v16   ;;  %v1178_v20 = vadd.f32 %v2443_v17, %v805_v18  ;;  %v1210_v21 = vadd.f32 %v2443_v17, %v933_v19  ;;  %v807_v22 = vpop.f32.mrb[57].mxu0  ;;  %v935_v23 = vpop.f32.mrb[57].mxu1 }
 0x186   :  { %v808_v24 = vpop.f32.mrb[58].mxu0  ;;  %v936_v25 = vpop.f32.mrb[58].mxu1 }
 0x187   :  { %v1179_v26 = vadd.f32 %v2443_v17, %v808_v24  ;;  %v1211_v27 = vadd.f32 %v2443_v17, %v936_v25  ;;  %v810_v28 = vpop.f32.mrb[59].mxu0  ;;  %v938_v29 = vpop.f32.mrb[59].mxu1  ;;  %v1242_v30 = vmax.f32 %v1178_v20, 0.0  ;;  %v1274_v31 = vmax.f32 %v1210_v21, 0.0 }
 0x189   :  { %v1243_v32 = vmax.f32 %v1179_v26, 0.0  ;;  %v1275_v33 = vmax.f32 %v1211_v27, 0.0 }
 0x18b   :  { %v1884_v34 = vpack.c.bf16 %v1243_v32, %v1242_v30  ;;  %v1964_v35 = vpack.c.bf16 %v1275_v33, %v1274_v31 }
 0x18c   :  { %v813_v36 = vpop.f32.mrb[60].mxu0  ;;  %v941_v37 = vpop.f32.mrb[60].mxu1 }
 0x18d   :  { %1984 = vst [vmem:[%s2608_s3 + $0x70] sm:$0xff] %v1884_v34   ;;  %2000 = vst [vmem:[%s2608_s3 + $0xf0] sm:$0xff] %v1964_v35   ;;  %v1180_v38 = vadd.f32 %v2443_v17, %v813_v36  ;;  %v1212_v39 = vadd.f32 %v2443_v17, %v941_v37  ;;  %v815_v40 = vpop.f32.mrb[61].mxu0  ;;  %v943_v41 = vpop.f32.mrb[61].mxu1 }
 0x18e   :  { %v816_v42 = vpop.f32.mrb[62].mxu0  ;;  %v944_v43 = vpop.f32.mrb[62].mxu1 }
 0x18f   :  { %v1181_v44 = vadd.f32 %v2443_v17, %v816_v42  ;;  %v1213_v45 = vadd.f32 %v2443_v17, %v944_v43  ;;  %v818_v46 = vpop.f32.mrb[63].mxu0  ;;  %v946_v47 = vpop.f32.mrb[63].mxu1  ;;  %v1244_v48 = vmax.f32 %v1180_v38, 0.0  ;;  %v1276_v49 = vmax.f32 %v1212_v39, 0.0 }
 0x191   :  { %v1245_v50 = vmax.f32 %v1181_v44, 0.0  ;;  %v1277_v51 = vmax.f32 %v1213_v45, 0.0 }
 0x193   :  { %v1889_v52 = vpack.c.bf16 %v1245_v50, %v1244_v48  ;;  %v1969_v53 = vpack.c.bf16 %v1277_v51, %v1276_v49 }
 0x195   :  { %1985 = vst [vmem:[%s2608_s3 + $0x78] sm:$0xff] %v1889_v52   ;;  %2001 = vst [vmem:[%s2608_s3 + $0xf8] sm:$0xff] %v1969_v53  }

// kernel: deeplabv3_forward.115
= control target key start
LH: loop header
LB: loop body
LE: loop exit
PB: predicated region body
PF: predicated region fallthrough
CT: control target
= control target key end

     0   :  { %s721_s1 = inlined_call_operand.vmem [shape: bf16[128,128], index: 1, kind: input, shape index: {}]   ;;  %s722_s0 = inlined_call_operand.vmem [shape: bf16[128,128], index: 0, kind: input, shape index: {}]   ;;  %s723_s2 = inlined_call_operand.vmem [shape: f32[1,128], index: 2, kind: input, shape index: {}]   ;;  %s724_s3 = inlined_call_operand.vmem [shape: bf16[128,128], index: 3, kind: output, shape index: {}]  }
   0x1   :  { %v610_v0 = vld [vmem:[%s721_s1] sm:$0xff]   ;;  %v611_v1 = vld [vmem:[%s721_s1 + $0x8] sm:$0xff]   ;;  %v612_v2 = vld [vmem:[%s721_s1 + $0x10] sm:$0xff]  }
   0x2   :  { %562 = vmatprep.subr.bf16.mxu0 %v610_v0  ;;  %594 = vmatprep.subr.bf16.mxu1 %v610_v0  ;;  %v613_v3 = vld [vmem:[%s721_s1 + $0x18] sm:$0xff]   ;;  %v618_v4 = vld [vmem:[%s722_s0] sm:$0xff]   ;;  %v615_v7 = vld [vmem:[%s721_s1 + $0x28] sm:$0xff]  }
   0x3   :  { %563 = vmatpush3.bf16.msra.mxu0 %v610_v0  ;;  %602 = vmatpush3.bf16.msra.mxu1 %v610_v0  ;;  %v619_v5 = vld [vmem:[%s722_s0 + $0x20] sm:$0xff]   ;;  %v616_v8 = vld [vmem:[%s721_s1 + $0x30] sm:$0xff]   ;;  %v617_v9 = vld [vmem:[%s721_s1 + $0x38] sm:$0xff]  }
   0x4   :  { %564 = vmatprep.subr.bf16.mxu0 %v611_v1  ;;  %595 = vmatprep.subr.bf16.mxu1 %v611_v1  ;;  %v614_v6 = vld [vmem:[%s721_s1 + $0x20] sm:$0xff]   ;;  %v620_v10 = vld [vmem:[%s722_s0 + $0x8] sm:$0xff]   ;;  %v622_v12 = vld [vmem:[%s722_s0 + $0x10] sm:$0xff]  }
   0x5   :  { %578 = vmatprep.mubr.bf16.mxu0 %v618_v4  ;;  %586 = vmatprep.mubr.bf16.mxu1 %v619_v5  ;;  %v621_v11 = vld [vmem:[%s722_s0 + $0x28] sm:$0xff]   ;;  %v623_v13 = vld [vmem:[%s722_s0 + $0x30] sm:$0xff]   ;;  %v624_v14 = vld [vmem:[%s722_s0 + $0x18] sm:$0xff]  }
   0x6   :  { %v625_v15 = vld [vmem:[%s722_s0 + $0x38] sm:$0xff]   ;;  %v466_v16 = vld [vmem:[%s723_s2] ss:$0 sm:$0xff] }
   0x7   :  { %565 = vmatpush3.bf16.msra.mxu0 %v611_v1  ;;  %603 = vmatpush3.bf16.msra.mxu1 %v611_v1 }
   0x8   :  { %566 = vmatprep.subr.bf16.mxu0 %v612_v2  ;;  %596 = vmatprep.subr.bf16.mxu1 %v612_v2 }
   0xb   :  { %567 = vmatpush3.bf16.msra.mxu0 %v612_v2  ;;  %604 = vmatpush3.bf16.msra.mxu1 %v612_v2 }
   0xc   :  { %568 = vmatprep.subr.bf16.mxu0 %v613_v3  ;;  %597 = vmatprep.subr.bf16.mxu1 %v613_v3 }
   0xf   :  { %569 = vmatpush3.bf16.msra.mxu0 %v613_v3  ;;  %605 = vmatpush3.bf16.msra.mxu1 %v613_v3 }
  0x10   :  { %570 = vmatprep.subr.bf16.mxu0 %v614_v6  ;;  %598 = vmatprep.subr.bf16.mxu1 %v614_v6 }
  0x13   :  { %571 = vmatpush3.bf16.msra.mxu0 %v614_v6  ;;  %606 = vmatpush3.bf16.msra.mxu1 %v614_v6 }
  0x14   :  { %572 = vmatprep.subr.bf16.mxu0 %v615_v7  ;;  %599 = vmatprep.subr.bf16.mxu1 %v615_v7 }
  0x17   :  { %573 = vmatpush3.bf16.msra.mxu0 %v615_v7  ;;  %607 = vmatpush3.bf16.msra.mxu1 %v615_v7 }
  0x18   :  { %574 = vmatprep.subr.bf16.mxu0 %v616_v8  ;;  %600 = vmatprep.subr.bf16.mxu1 %v616_v8 }
  0x1b   :  { %575 = vmatpush3.bf16.msra.mxu0 %v616_v8  ;;  %608 = vmatpush3.bf16.msra.mxu1 %v616_v8 }
  0x1c   :  { %576 = vmatprep.subr.bf16.mxu0 %v617_v9  ;;  %601 = vmatprep.subr.bf16.mxu1 %v617_v9 }
  0x1f   :  { %577 = vmatpush3.bf16.msra.mxu0 %v617_v9  ;;  %609 = vmatpush3.bf16.msra.mxu1 %v617_v9 }
  0x22   :  { %579 = vmatmul.mubr.bf16.vlgmr.msra.gmra.mrb[0].mxu0 %v620_v10  ;;  %587 = vmatmul.mubr.bf16.vlgmr.msra.gmra.mrb[0].mxu1 %v621_v11 }
  0x23   :  { %582 = vmatprep.mubr.bf16.mxu0 %v622_v12  ;;  %590 = vmatprep.mubr.bf16.mxu1 %v623_v13 }
  0x2a   :  { %583 = vmatmul.mubr.bf16.gmra.mrb[4].mxu0 %v624_v14  ;;  %591 = vmatmul.mubr.bf16.gmra.mrb[4].mxu1 %v625_v15 }
  0xf5   :  { %v580_v17 = vpop.f32.mrb[0].mxu0  ;;  %v588_v18 = vpop.f32.mrb[0].mxu1 }
  0xf6   :  { %v336_v19 = vadd.f32 %v580_v17, %v466_v16  ;;  %v344_v20 = vadd.f32 %v588_v18, %v466_v16  ;;  %v213_v21 = vpop.f32.mrb[1].mxu0  ;;  %v245_v22 = vpop.f32.mrb[1].mxu1 }
  0xf7   :  { %v334_v23 = vadd.f32 %v466_v16, %v213_v21  ;;  %v342_v24 = vadd.f32 %v466_v16, %v245_v22  ;;  %v581_v25 = vpop.f32.mrb[2].mxu0  ;;  %v589_v26 = vpop.f32.mrb[2].mxu1 }
  0xf8   :  { %v337_v27 = vadd.f32 %v581_v25, %v466_v16  ;;  %v345_v28 = vadd.f32 %v589_v26, %v466_v16  ;;  %v216_v29 = vpop.f32.mrb[3].mxu0  ;;  %v248_v30 = vpop.f32.mrb[3].mxu1  ;;  %v352_v33 = vmax.f32 %v336_v19, 0.0  ;;  %v360_v34 = vmax.f32 %v344_v20, 0.0 }
  0xf9   :  { %v335_v31 = vadd.f32 %v466_v16, %v216_v29  ;;  %v343_v32 = vadd.f32 %v466_v16, %v248_v30  ;;  %v350_v37 = vmax.f32 %v334_v23, 0.0  ;;  %v358_v38 = vmax.f32 %v342_v24, 0.0 }
  0xfa   :  { %v353_v35 = vmax.f32 %v337_v27, 0.0  ;;  %v361_v36 = vmax.f32 %v345_v28, 0.0 }
  0xfb   :  { %v351_v39 = vmax.f32 %v335_v31, 0.0  ;;  %v359_v40 = vmax.f32 %v343_v32, 0.0 }
  0xfc   :  { %v507_v41 = vpack.c.bf16 %v353_v35, %v352_v33  ;;  %v527_v42 = vpack.c.bf16 %v361_v36, %v360_v34 }
  0xfd   :  { %v502_v43 = vpack.c.bf16 %v351_v39, %v350_v37  ;;  %v522_v44 = vpack.c.bf16 %v359_v40, %v358_v38  ;;  %v584_v45 = vpop.f32.mrb[4].mxu0  ;;  %v592_v46 = vpop.f32.mrb[4].mxu1 }
  0xfe   :  { %539 = vst [vmem:[%s724_s3 + $0x8] sm:$0xff] %v507_v41   ;;  %543 = vst [vmem:[%s724_s3 + $0x28] sm:$0xff] %v527_v42   ;;  %v340_v47 = vadd.f32 %v584_v45, %v466_v16  ;;  %v348_v48 = vadd.f32 %v592_v46, %v466_v16  ;;  %v229_v49 = vpop.f32.mrb[5].mxu0  ;;  %v261_v50 = vpop.f32.mrb[5].mxu1 }
  0xff   :  { %503 = vst [vmem:[%s724_s3] sm:$0xff] %v502_v43   ;;  %542 = vst [vmem:[%s724_s3 + $0x20] sm:$0xff] %v522_v44   ;;  %v338_v51 = vadd.f32 %v466_v16, %v229_v49  ;;  %v346_v52 = vadd.f32 %v466_v16, %v261_v50  ;;  %v585_v53 = vpop.f32.mrb[6].mxu0  ;;  %v593_v54 = vpop.f32.mrb[6].mxu1 }
 0x100   :  { %v341_v55 = vadd.f32 %v585_v53, %v466_v16  ;;  %v349_v56 = vadd.f32 %v593_v54, %v466_v16  ;;  %v232_v57 = vpop.f32.mrb[7].mxu0  ;;  %v264_v58 = vpop.f32.mrb[7].mxu1  ;;  %v356_v61 = vmax.f32 %v340_v47, 0.0  ;;  %v364_v62 = vmax.f32 %v348_v48, 0.0 }
 0x101   :  { %v339_v59 = vadd.f32 %v466_v16, %v232_v57  ;;  %v347_v60 = vadd.f32 %v466_v16, %v264_v58  ;;  %v354_v1 = vmax.f32 %v338_v51, 0.0  ;;  %v362_v2 = vmax.f32 %v346_v52, 0.0 }
 0x102   :  { %v357_v63 = vmax.f32 %v341_v55, 0.0  ;;  %v365_v0 = vmax.f32 %v349_v56, 0.0 }
 0x103   :  { %v355_v3 = vmax.f32 %v339_v59, 0.0  ;;  %v363_v4 = vmax.f32 %v347_v60, 0.0 }
 0x104   :  { %v517_v5 = vpack.c.bf16 %v357_v63, %v356_v61  ;;  %v537_v6 = vpack.c.bf16 %v365_v0, %v364_v62 }
 0x105   :  { %v512_v7 = vpack.c.bf16 %v355_v3, %v354_v1  ;;  %v532_v8 = vpack.c.bf16 %v363_v4, %v362_v2 }
 0x106   :  { %541 = vst [vmem:[%s724_s3 + $0x18] sm:$0xff] %v517_v5   ;;  %545 = vst [vmem:[%s724_s3 + $0x38] sm:$0xff] %v537_v6  }
 0x107   :  { %540 = vst [vmem:[%s724_s3 + $0x10] sm:$0xff] %v512_v7   ;;  %544 = vst [vmem:[%s724_s3 + $0x30] sm:$0xff] %v532_v8  }

// kernel: deeplabv3_forward.114
= control target key start
LH: loop header
LB: loop body
LE: loop exit
PB: predicated region body
PF: predicated region fallthrough
CT: control target
= control target key end

     0   :  { %s705_s1 = inlined_call_operand.vmem [shape: bf16[128,128], index: 1, kind: input, shape index: {}]   ;;  %s706_s0 = inlined_call_operand.vmem [shape: bf16[128,128], index: 0, kind: input, shape index: {}]   ;;  %s707_s2 = inlined_call_operand.vmem [shape: f32[1,128], index: 2, kind: input, shape index: {}]   ;;  %s708_s3 = inlined_call_operand.vmem [shape: bf16[128,128], index: 3, kind: output, shape index: {}]  }
   0x1   :  { %v594_v0 = vld [vmem:[%s705_s1] sm:$0xff]   ;;  %v595_v1 = vld [vmem:[%s705_s1 + $0x8] sm:$0xff]   ;;  %v596_v2 = vld [vmem:[%s705_s1 + $0x10] sm:$0xff]  }
   0x2   :  { %546 = vmatprep.subr.bf16.mxu0 %v594_v0  ;;  %578 = vmatprep.subr.bf16.mxu1 %v594_v0  ;;  %v597_v3 = vld [vmem:[%s705_s1 + $0x18] sm:$0xff]   ;;  %v602_v4 = vld [vmem:[%s706_s0] sm:$0xff]   ;;  %v599_v7 = vld [vmem:[%s705_s1 + $0x28] sm:$0xff]  }
   0x3   :  { %547 = vmatpush3.bf16.msra.mxu0 %v594_v0  ;;  %586 = vmatpush3.bf16.msra.mxu1 %v594_v0  ;;  %v603_v5 = vld [vmem:[%s706_s0 + $0x20] sm:$0xff]   ;;  %v600_v8 = vld [vmem:[%s705_s1 + $0x30] sm:$0xff]   ;;  %v601_v9 = vld [vmem:[%s705_s1 + $0x38] sm:$0xff]  }
   0x4   :  { %548 = vmatprep.subr.bf16.mxu0 %v595_v1  ;;  %579 = vmatprep.subr.bf16.mxu1 %v595_v1  ;;  %v598_v6 = vld [vmem:[%s705_s1 + $0x20] sm:$0xff]   ;;  %v604_v10 = vld [vmem:[%s706_s0 + $0x8] sm:$0xff]   ;;  %v606_v12 = vld [vmem:[%s706_s0 + $0x10] sm:$0xff]  }
   0x5   :  { %562 = vmatprep.mubr.bf16.mxu0 %v602_v4  ;;  %570 = vmatprep.mubr.bf16.mxu1 %v603_v5  ;;  %v605_v11 = vld [vmem:[%s706_s0 + $0x28] sm:$0xff]   ;;  %v607_v13 = vld [vmem:[%s706_s0 + $0x30] sm:$0xff]   ;;  %v608_v14 = vld [vmem:[%s706_s0 + $0x18] sm:$0xff]  }
   0x6   :  { %v609_v15 = vld [vmem:[%s706_s0 + $0x38] sm:$0xff]   ;;  %v450_v17 = vld [vmem:[%s707_s2] ss:$0 sm:$0xff] }
   0x7   :  { %549 = vmatpush3.bf16.msra.mxu0 %v595_v1  ;;  %587 = vmatpush3.bf16.msra.mxu1 %v595_v1 }
   0x8   :  { %550 = vmatprep.subr.bf16.mxu0 %v596_v2  ;;  %580 = vmatprep.subr.bf16.mxu1 %v596_v2 }
   0xb   :  { %551 = vmatpush3.bf16.msra.mxu0 %v596_v2  ;;  %588 = vmatpush3.bf16.msra.mxu1 %v596_v2 }
   0xc   :  { %552 = vmatprep.subr.bf16.mxu0 %v597_v3  ;;  %581 = vmatprep.subr.bf16.mxu1 %v597_v3 }
   0xf   :  { %553 = vmatpush3.bf16.msra.mxu0 %v597_v3  ;;  %589 = vmatpush3.bf16.msra.mxu1 %v597_v3 }
  0x10   :  { %554 = vmatprep.subr.bf16.mxu0 %v598_v6  ;;  %582 = vmatprep.subr.bf16.mxu1 %v598_v6 }
  0x13   :  { %555 = vmatpush3.bf16.msra.mxu0 %v598_v6  ;;  %590 = vmatpush3.bf16.msra.mxu1 %v598_v6 }
  0x14   :  { %556 = vmatprep.subr.bf16.mxu0 %v599_v7  ;;  %583 = vmatprep.subr.bf16.mxu1 %v599_v7 }
  0x17   :  { %557 = vmatpush3.bf16.msra.mxu0 %v599_v7  ;;  %591 = vmatpush3.bf16.msra.mxu1 %v599_v7 }
  0x18   :  { %558 = vmatprep.subr.bf16.mxu0 %v600_v8  ;;  %584 = vmatprep.subr.bf16.mxu1 %v600_v8 }
  0x1b   :  { %559 = vmatpush3.bf16.msra.mxu0 %v600_v8  ;;  %592 = vmatpush3.bf16.msra.mxu1 %v600_v8 }
  0x1c   :  { %560 = vmatprep.subr.bf16.mxu0 %v601_v9  ;;  %585 = vmatprep.subr.bf16.mxu1 %v601_v9 }
  0x1f   :  { %561 = vmatpush3.bf16.msra.mxu0 %v601_v9  ;;  %593 = vmatpush3.bf16.msra.mxu1 %v601_v9 }
  0x22   :  { %563 = vmatmul.mubr.bf16.vlgmr.msra.gmra.mrb[0].mxu0 %v604_v10  ;;  %571 = vmatmul.mubr.bf16.vlgmr.msra.gmra.mrb[0].mxu1 %v605_v11 }
  0x23   :  { %566 = vmatprep.mubr.bf16.mxu0 %v606_v12  ;;  %574 = vmatprep.mubr.bf16.mxu1 %v607_v13 }
  0x2a   :  { %567 = vmatmul.mubr.bf16.gmra.mrb[4].mxu0 %v608_v14  ;;  %575 = vmatmul.mubr.bf16.gmra.mrb[4].mxu1 %v609_v15 }
  0xf5   :  { %v564_v16 = vpop.f32.mrb[0].mxu0  ;;  %v572_v18 = vpop.f32.mrb[0].mxu1 }
  0xf6   :  { %v213_v19 = vpop.f32.mrb[1].mxu0  ;;  %v245_v20 = vpop.f32.mrb[1].mxu1  ;;  %v336_v23 = vadd.f32 %v564_v16, %v450_v17  ;;  %v344_v24 = vadd.f32 %v572_v18, %v450_v17 }
  0xf7   :  { %v565_v21 = vpop.f32.mrb[2].mxu0  ;;  %v573_v22 = vpop.f32.mrb[2].mxu1  ;;  %v334_v29 = vadd.f32 %v450_v17, %v213_v19  ;;  %v342_v30 = vadd.f32 %v450_v17, %v245_v20 }
  0xf8   :  { %v337_v25 = vadd.f32 %v565_v21, %v450_v17  ;;  %v345_v26 = vadd.f32 %v573_v22, %v450_v17  ;;  %v216_v27 = vpop.f32.mrb[3].mxu0  ;;  %v248_v28 = vpop.f32.mrb[3].mxu1 }
  0xf9   :  { %v335_v31 = vadd.f32 %v450_v17, %v216_v27  ;;  %v343_v32 = vadd.f32 %v450_v17, %v248_v28 }
  0xfa   :  { %v491_v33 = vpack.c.bf16 %v337_v25, %v336_v23  ;;  %v511_v34 = vpack.c.bf16 %v345_v26, %v344_v24 }
  0xfb   :  { %v486_v35 = vpack.c.bf16 %v335_v31, %v334_v29  ;;  %v506_v36 = vpack.c.bf16 %v343_v32, %v342_v30 }
  0xfc   :  { %523 = vst [vmem:[%s708_s3 + $0x8] sm:$0xff] %v491_v33   ;;  %527 = vst [vmem:[%s708_s3 + $0x28] sm:$0xff] %v511_v34  }
  0xfd   :  { %487 = vst [vmem:[%s708_s3] sm:$0xff] %v486_v35   ;;  %526 = vst [vmem:[%s708_s3 + $0x20] sm:$0xff] %v506_v36   ;;  %v568_v37 = vpop.f32.mrb[4].mxu0  ;;  %v576_v38 = vpop.f32.mrb[4].mxu1 }
  0xfe   :  { %v229_v39 = vpop.f32.mrb[5].mxu0  ;;  %v261_v40 = vpop.f32.mrb[5].mxu1  ;;  %v340_v43 = vadd.f32 %v568_v37, %v450_v17  ;;  %v348_v44 = vadd.f32 %v576_v38, %v450_v17 }
  0xff   :  { %v569_v41 = vpop.f32.mrb[6].mxu0  ;;  %v577_v42 = vpop.f32.mrb[6].mxu1  ;;  %v338_v49 = vadd.f32 %v450_v17, %v229_v39  ;;  %v346_v50 = vadd.f32 %v450_v17, %v261_v40 }
 0x100   :  { %v341_v45 = vadd.f32 %v569_v41, %v450_v17  ;;  %v349_v46 = vadd.f32 %v577_v42, %v450_v17  ;;  %v232_v47 = vpop.f32.mrb[7].mxu0  ;;  %v264_v48 = vpop.f32.mrb[7].mxu1 }
 0x101   :  { %v339_v51 = vadd.f32 %v450_v17, %v232_v47  ;;  %v347_v52 = vadd.f32 %v450_v17, %v264_v48 }
 0x102   :  { %v501_v53 = vpack.c.bf16 %v341_v45, %v340_v43  ;;  %v521_v54 = vpack.c.bf16 %v349_v46, %v348_v44 }
 0x103   :  { %v496_v55 = vpack.c.bf16 %v339_v51, %v338_v49  ;;  %v516_v56 = vpack.c.bf16 %v347_v52, %v346_v50 }
 0x104   :  { %525 = vst [vmem:[%s708_s3 + $0x18] sm:$0xff] %v501_v53   ;;  %529 = vst [vmem:[%s708_s3 + $0x38] sm:$0xff] %v521_v54  }
 0x105   :  { %524 = vst [vmem:[%s708_s3 + $0x10] sm:$0xff] %v496_v55   ;;  %528 = vst [vmem:[%s708_s3 + $0x30] sm:$0xff] %v516_v56  }

// kernel: deeplabv3_forward.117
= control target key start
LH: loop header
LB: loop body
LE: loop exit
PB: predicated region body
PF: predicated region fallthrough
CT: control target
= control target key end

     0   :  { %s874_s1 = inlined_call_operand.vmem [shape: bf16[128,128], index: 1, kind: input, shape index: {}]   ;;  %s875_s0 = inlined_call_operand.vmem [shape: bf16[128,128], index: 0, kind: input, shape index: {}]   ;;  %s876_s3 = inlined_call_operand.vmem [shape: bf16[128,128], index: 3, kind: input, shape index: {}]   ;;  %s877_s2 = inlined_call_operand.vmem [shape: f32[1,128], index: 2, kind: input, shape index: {}]   ;;  %s878_s4 = inlined_call_operand.vmem [shape: bf16[128,128], index: 4, kind: output, shape index: {}]  }
   0x1   :  { %v700_v0 = vld [vmem:[%s874_s1] sm:$0xff]   ;;  %v701_v1 = vld [vmem:[%s874_s1 + $0x8] sm:$0xff]   ;;  %v702_v2 = vld [vmem:[%s874_s1 + $0x10] sm:$0xff]  }
   0x2   :  { %652 = vmatprep.subr.bf16.mxu0 %v700_v0  ;;  %684 = vmatprep.subr.bf16.mxu1 %v700_v0  ;;  %v703_v3 = vld [vmem:[%s874_s1 + $0x18] sm:$0xff]   ;;  %v708_v4 = vld [vmem:[%s875_s0] sm:$0xff]   ;;  %v705_v7 = vld [vmem:[%s874_s1 + $0x28] sm:$0xff]  }
   0x3   :  { %653 = vmatpush3.bf16.msra.mxu0 %v700_v0  ;;  %692 = vmatpush3.bf16.msra.mxu1 %v700_v0  ;;  %v709_v5 = vld [vmem:[%s875_s0 + $0x20] sm:$0xff]   ;;  %v706_v8 = vld [vmem:[%s874_s1 + $0x30] sm:$0xff]   ;;  %v707_v9 = vld [vmem:[%s874_s1 + $0x38] sm:$0xff]  }
   0x4   :  { %654 = vmatprep.subr.bf16.mxu0 %v701_v1  ;;  %685 = vmatprep.subr.bf16.mxu1 %v701_v1  ;;  %v704_v6 = vld [vmem:[%s874_s1 + $0x20] sm:$0xff]   ;;  %v710_v10 = vld [vmem:[%s875_s0 + $0x8] sm:$0xff]   ;;  %v712_v12 = vld [vmem:[%s875_s0 + $0x10] sm:$0xff]  }
   0x5   :  { %668 = vmatprep.mubr.bf16.mxu0 %v708_v4  ;;  %676 = vmatprep.mubr.bf16.mxu1 %v709_v5  ;;  %v711_v11 = vld [vmem:[%s875_s0 + $0x28] sm:$0xff]   ;;  %v713_v13 = vld [vmem:[%s875_s0 + $0x30] sm:$0xff]   ;;  %v714_v14 = vld [vmem:[%s875_s0 + $0x18] sm:$0xff]  }
   0x6   :  { %v715_v15 = vld [vmem:[%s875_s0 + $0x38] sm:$0xff]   ;;  %v622_v16 = vld [vmem:[%s876_s3 + $0x8] sm:$0xff]   ;;  %v551_v18 = vld [vmem:[%s876_s3] sm:$0xff]  }
   0x7   :  { %655 = vmatpush3.bf16.msra.mxu0 %v701_v1  ;;  %693 = vmatpush3.bf16.msra.mxu1 %v701_v1  ;;  %v626_v17 = vld [vmem:[%s876_s3 + $0x28] sm:$0xff]   ;;  %v625_v19 = vld [vmem:[%s876_s3 + $0x20] sm:$0xff]   ;;  %v809_v21 = vld [vmem:[%s876_s3 + $0x18] sm:$0xff]   ;;  %v556_v23 = vunpack.c.l.bf16 %v622_v16  ;;  %v552_v25 = vunpack.c.l.bf16 %v551_v18  ;;  %v557_v31 = vunpack.c.h.bf16 %v622_v16  ;;  %v553_v33 = vunpack.c.h.bf16 %v551_v18 }
   0x8   :  { %656 = vmatprep.subr.bf16.mxu0 %v702_v2  ;;  %686 = vmatprep.subr.bf16.mxu1 %v702_v2  ;;  %v804_v20 = vld [vmem:[%s877_s2] ss:$0 sm:$0xff]  ;;  %v814_v22 = vld [vmem:[%s876_s3 + $0x38] sm:$0xff]   ;;  %v572_v24 = vunpack.c.l.bf16 %v626_v17  ;;  %v568_v26 = vunpack.c.l.bf16 %v625_v19  ;;  %v819_v27 = vld [vmem:[%s876_s3 + $0x10] sm:$0xff]   ;;  %v573_v32 = vunpack.c.h.bf16 %v626_v17  ;;  %v569_v34 = vunpack.c.h.bf16 %v625_v19 }
   0x9   :  { %v824_v28 = vld [vmem:[%s876_s3 + $0x30] sm:$0xff]   ;;  %v564_v39 = vunpack.c.l.bf16 %v809_v21  ;;  %v580_v40 = vunpack.c.l.bf16 %v814_v22  ;;  %v560_v45 = vunpack.c.l.bf16 %v819_v27  ;;  %v565_v59 = vunpack.c.h.bf16 %v809_v21 }
   0xa   :  { %v576_v46 = vunpack.c.l.bf16 %v824_v28  ;;  %v581_v60 = vunpack.c.h.bf16 %v814_v22  ;;  %v561_v63 = vunpack.c.h.bf16 %v819_v27  ;;  %v577_v0 = vunpack.c.h.bf16 %v824_v28 }
   0xb   :  { %657 = vmatpush3.bf16.msra.mxu0 %v702_v2  ;;  %694 = vmatpush3.bf16.msra.mxu1 %v702_v2 }
   0xc   :  { %658 = vmatprep.subr.bf16.mxu0 %v703_v3  ;;  %687 = vmatprep.subr.bf16.mxu1 %v703_v3 }
   0xf   :  { %659 = vmatpush3.bf16.msra.mxu0 %v703_v3  ;;  %695 = vmatpush3.bf16.msra.mxu1 %v703_v3 }
  0x10   :  { %660 = vmatprep.subr.bf16.mxu0 %v704_v6  ;;  %688 = vmatprep.subr.bf16.mxu1 %v704_v6 }
  0x13   :  { %661 = vmatpush3.bf16.msra.mxu0 %v704_v6  ;;  %696 = vmatpush3.bf16.msra.mxu1 %v704_v6 }
  0x14   :  { %662 = vmatprep.subr.bf16.mxu0 %v705_v7  ;;  %689 = vmatprep.subr.bf16.mxu1 %v705_v7 }
  0x17   :  { %663 = vmatpush3.bf16.msra.mxu0 %v705_v7  ;;  %697 = vmatpush3.bf16.msra.mxu1 %v705_v7 }
  0x18   :  { %664 = vmatprep.subr.bf16.mxu0 %v706_v8  ;;  %690 = vmatprep.subr.bf16.mxu1 %v706_v8 }
  0x1b   :  { %665 = vmatpush3.bf16.msra.mxu0 %v706_v8  ;;  %698 = vmatpush3.bf16.msra.mxu1 %v706_v8 }
  0x1c   :  { %666 = vmatprep.subr.bf16.mxu0 %v707_v9  ;;  %691 = vmatprep.subr.bf16.mxu1 %v707_v9 }
  0x1f   :  { %667 = vmatpush3.bf16.msra.mxu0 %v707_v9  ;;  %699 = vmatpush3.bf16.msra.mxu1 %v707_v9 }
  0x22   :  { %669 = vmatmul.mubr.bf16.vlgmr.msra.gmra.mrb[0].mxu0 %v710_v10  ;;  %677 = vmatmul.mubr.bf16.vlgmr.msra.gmra.mrb[0].mxu1 %v711_v11 }
  0x23   :  { %672 = vmatprep.mubr.bf16.mxu0 %v712_v12  ;;  %680 = vmatprep.mubr.bf16.mxu1 %v713_v13 }
  0x2a   :  { %673 = vmatmul.mubr.bf16.gmra.mrb[4].mxu0 %v714_v14  ;;  %681 = vmatmul.mubr.bf16.gmra.mrb[4].mxu1 %v715_v15 }
  0xf5   :  { %v670_v29 = vpop.f32.mrb[0].mxu0  ;;  %v678_v30 = vpop.f32.mrb[0].mxu1 }
  0xf6   :  { %v339_v35 = vadd.f32 %v670_v29, %v804_v20  ;;  %v347_v36 = vadd.f32 %v678_v30, %v804_v20  ;;  %v216_v37 = vpop.f32.mrb[1].mxu0  ;;  %v248_v38 = vpop.f32.mrb[1].mxu1 }
  0xf7   :  { %v337_v41 = vadd.f32 %v804_v20, %v216_v37  ;;  %v345_v42 = vadd.f32 %v804_v20, %v248_v38  ;;  %v671_v43 = vpop.f32.mrb[2].mxu0  ;;  %v679_v44 = vpop.f32.mrb[2].mxu1 }
  0xf8   :  { %v387_v47 = vadd.f32 %v556_v23, %v339_v35  ;;  %v395_v48 = vadd.f32 %v572_v24, %v347_v36  ;;  %v340_v49 = vadd.f32 %v671_v43, %v804_v20  ;;  %v348_v50 = vadd.f32 %v679_v44, %v804_v20  ;;  %v219_v51 = vpop.f32.mrb[3].mxu0  ;;  %v251_v52 = vpop.f32.mrb[3].mxu1 }
  0xf9   :  { %v385_v53 = vadd.f32 %v552_v25, %v337_v41  ;;  %v393_v54 = vadd.f32 %v568_v26, %v345_v42  ;;  %v338_v55 = vadd.f32 %v804_v20, %v219_v51  ;;  %v346_v56 = vadd.f32 %v804_v20, %v251_v52 }
  0xfa   :  { %v388_v57 = vadd.f32 %v557_v31, %v340_v49  ;;  %v396_v58 = vadd.f32 %v573_v32, %v348_v50  ;;  %v403_v1 = vmax.f32 %v387_v47, 0.0  ;;  %v411_v2 = vmax.f32 %v395_v48, 0.0 }
  0xfb   :  { %v386_v61 = vadd.f32 %v553_v33, %v338_v55  ;;  %v394_v62 = vadd.f32 %v569_v34, %v346_v56  ;;  %v401_v5 = vmax.f32 %v385_v53, 0.0  ;;  %v409_v6 = vmax.f32 %v393_v54, 0.0 }
  0xfc   :  { %v404_v3 = vmax.f32 %v388_v57, 0.0  ;;  %v412_v4 = vmax.f32 %v396_v58, 0.0 }
  0xfd   :  { %v402_v7 = vmax.f32 %v386_v61, 0.0  ;;  %v410_v8 = vmax.f32 %v394_v62, 0.0  ;;  %v674_v9 = vpop.f32.mrb[4].mxu0  ;;  %v682_v10 = vpop.f32.mrb[4].mxu1 }
  0xfe   :  { %v590_v11 = vpack.c.bf16 %v404_v3, %v403_v1  ;;  %v610_v12 = vpack.c.bf16 %v412_v4, %v411_v2  ;;  %v343_v13 = vadd.f32 %v674_v9, %v804_v20  ;;  %v351_v14 = vadd.f32 %v682_v10, %v804_v20  ;;  %v232_v15 = vpop.f32.mrb[5].mxu0  ;;  %v264_v16 = vpop.f32.mrb[5].mxu1 }
  0xff   :  { %v585_v17 = vpack.c.bf16 %v402_v7, %v401_v5  ;;  %v605_v18 = vpack.c.bf16 %v410_v8, %v409_v6  ;;  %v341_v19 = vadd.f32 %v804_v20, %v232_v15  ;;  %v349_v21 = vadd.f32 %v804_v20, %v264_v16  ;;  %v675_v22 = vpop.f32.mrb[6].mxu0  ;;  %v683_v23 = vpop.f32.mrb[6].mxu1 }
 0x100   :  { %629 = vst [vmem:[%s878_s4 + $0x8] sm:$0xff] %v590_v11   ;;  %633 = vst [vmem:[%s878_s4 + $0x28] sm:$0xff] %v610_v12   ;;  %v391_v24 = vadd.f32 %v564_v39, %v343_v13  ;;  %v399_v25 = vadd.f32 %v580_v40, %v351_v14  ;;  %v344_v26 = vadd.f32 %v675_v22, %v804_v20  ;;  %v235_v28 = vpop.f32.mrb[7].mxu0  ;;  %v267_v29 = vpop.f32.mrb[7].mxu1 }
 0x101   :  { %v352_v27 = vadd.f32 %v683_v23, %v804_v20  ;;  %586 = vst [vmem:[%s878_s4] sm:$0xff] %v585_v17   ;;  %632 = vst [vmem:[%s878_s4 + $0x20] sm:$0xff] %v605_v18   ;;  %v389_v30 = vadd.f32 %v560_v45, %v341_v19  ;;  %v397_v31 = vadd.f32 %v576_v46, %v349_v21 }
 0x102   :  { %v342_v32 = vadd.f32 %v804_v20, %v235_v28  ;;  %v350_v33 = vadd.f32 %v804_v20, %v267_v29  ;;  %v392_v34 = vadd.f32 %v565_v59, %v344_v26  ;;  %v407_v38 = vmax.f32 %v391_v24, 0.0 }
 0x103   :  { %v400_v35 = vadd.f32 %v581_v60, %v352_v27  ;;  %v415_v39 = vmax.f32 %v399_v25, 0.0  ;;  %v405_v42 = vmax.f32 %v389_v30, 0.0  ;;  %v413_v43 = vmax.f32 %v397_v31, 0.0 }
 0x104   :  { %v390_v36 = vadd.f32 %v561_v63, %v342_v32  ;;  %v398_v37 = vadd.f32 %v577_v0, %v350_v33  ;;  %v408_v40 = vmax.f32 %v392_v34, 0.0 }
 0x105   :  { %v416_v41 = vmax.f32 %v400_v35, 0.0 }
 0x106   :  { %v406_v44 = vmax.f32 %v390_v36, 0.0  ;;  %v414_v47 = vmax.f32 %v398_v37, 0.0  ;;  %v600_v48 = vpack.c.bf16 %v408_v40, %v407_v38 }
 0x107   :  { %v620_v49 = vpack.c.bf16 %v416_v41, %v415_v39 }
 0x108   :  { %v595_v45 = vpack.c.bf16 %v406_v44, %v405_v42  ;;  %v615_v46 = vpack.c.bf16 %v414_v47, %v413_v43  ;;  %631 = vst [vmem:[%s878_s4 + $0x18] sm:$0xff] %v600_v48  }
 0x109   :  { %635 = vst [vmem:[%s878_s4 + $0x38] sm:$0xff] %v620_v49  }
 0x10a   :  { %630 = vst [vmem:[%s878_s4 + $0x10] sm:$0xff] %v595_v45   ;;  %634 = vst [vmem:[%s878_s4 + $0x30] sm:$0xff] %v615_v46  }

// kernel: deeplabv3_forward.128
= control target key start
LH: loop header
LB: loop body
LE: loop exit
PB: predicated region body
PF: predicated region fallthrough
CT: control target
= control target key end

     0   :  { %s339_s1 = inlined_call_operand.vmem [shape: bf16[128,128], index: 1, kind: input, shape index: {}]   ;;  %s340_s0 = inlined_call_operand.vmem [shape: bf16[32,128], index: 0, kind: input, shape index: {}]   ;;  %s341_s2 = inlined_call_operand.vmem [shape: f32[1,128], index: 2, kind: input, shape index: {}]   ;;  %s342_s3 = inlined_call_operand.vmem [shape: bf16[32,128], index: 3, kind: output, shape index: {}]  }
   0x1   :  { %v270_v0 = vld [vmem:[%s339_s1] sm:$0xff]   ;;  %v271_v1 = vld [vmem:[%s339_s1 + $0x8] sm:$0xff]   ;;  %v272_v2 = vld [vmem:[%s339_s1 + $0x10] sm:$0xff]  }
   0x2   :  { %250 = vmatprep.subr.bf16.mxu0 %v270_v0  ;;  %v273_v3 = vld [vmem:[%s339_s1 + $0x18] sm:$0xff]   ;;  %v278_v4 = vld [vmem:[%s340_s0] sm:$0xff]   ;;  %v275_v6 = vld [vmem:[%s339_s1 + $0x28] sm:$0xff]  }
   0x3   :  { %251 = vmatpush3.bf16.msra.mxu0 %v270_v0  ;;  %266 = vmatprep.mubr.bf16.mxu0 %v278_v4  ;;  %v274_v5 = vld [vmem:[%s339_s1 + $0x20] sm:$0xff]   ;;  %v276_v7 = vld [vmem:[%s339_s1 + $0x30] sm:$0xff]   ;;  %v277_v8 = vld [vmem:[%s339_s1 + $0x38] sm:$0xff]  }
   0x4   :  { %252 = vmatprep.subr.bf16.mxu0 %v271_v1  ;;  %v279_v9 = vld [vmem:[%s340_s0 + $0x8] sm:$0xff]   ;;  %v220_v10 = vld [vmem:[%s341_s2] ss:$0 sm:$0xff] }
   0x7   :  { %253 = vmatpush3.bf16.msra.mxu0 %v271_v1 }
   0x8   :  { %254 = vmatprep.subr.bf16.mxu0 %v272_v2 }
   0xb   :  { %255 = vmatpush3.bf16.msra.mxu0 %v272_v2 }
   0xc   :  { %256 = vmatprep.subr.bf16.mxu0 %v273_v3 }
   0xf   :  { %257 = vmatpush3.bf16.msra.mxu0 %v273_v3 }
  0x10   :  { %258 = vmatprep.subr.bf16.mxu0 %v274_v5 }
  0x13   :  { %259 = vmatpush3.bf16.msra.mxu0 %v274_v5 }
  0x14   :  { %260 = vmatprep.subr.bf16.mxu0 %v275_v6 }
  0x17   :  { %261 = vmatpush3.bf16.msra.mxu0 %v275_v6 }
  0x18   :  { %262 = vmatprep.subr.bf16.mxu0 %v276_v7 }
  0x1b   :  { %263 = vmatpush3.bf16.msra.mxu0 %v276_v7 }
  0x1c   :  { %264 = vmatprep.subr.bf16.mxu0 %v277_v8 }
  0x1f   :  { %265 = vmatpush3.bf16.msra.mxu0 %v277_v8 }
  0x22   :  { %267 = vmatmul.mubr.bf16.vlgmr.msra.gmra.mrb[0].mxu0 %v279_v9 }
  0xf5   :  { %v268_v11 = vpop.f32.mrb[0].mxu0 }
  0xf6   :  { %v180_v12 = vadd.f32 %v268_v11, %v220_v10  ;;  %v141_v13 = vpop.f32.mrb[1].mxu0 }
  0xf7   :  { %v178_v14 = vadd.f32 %v220_v10, %v141_v13  ;;  %v269_v15 = vpop.f32.mrb[2].mxu0 }
  0xf8   :  { %v181_v16 = vadd.f32 %v269_v15, %v220_v10  ;;  %v144_v17 = vpop.f32.mrb[3].mxu0  ;;  %v184_v19 = vmax.f32 %v180_v12, 0.0 }
  0xf9   :  { %v179_v18 = vadd.f32 %v220_v10, %v144_v17  ;;  %v182_v21 = vmax.f32 %v178_v14, 0.0 }
  0xfa   :  { %v185_v20 = vmax.f32 %v181_v16, 0.0 }
  0xfb   :  { %v183_v22 = vmax.f32 %v179_v18, 0.0 }
  0xfc   :  { %v237_v23 = vpack.c.bf16 %v185_v20, %v184_v19 }
  0xfd   :  { %v232_v24 = vpack.c.bf16 %v183_v22, %v182_v21 }
  0xfe   :  { %239 = vst [vmem:[%s342_s3 + $0x8] sm:$0xff] %v237_v23  }
  0xff   :  { %233 = vst [vmem:[%s342_s3] sm:$0xff] %v232_v24  }

// kernel: deeplabv3_forward.127
= control target key start
LH: loop header
LB: loop body
LE: loop exit
PB: predicated region body
PF: predicated region fallthrough
CT: control target
= control target key end

     0   :  { %s374_s1 = inlined_call_operand.vmem [shape: bf16[128,128], index: 1, kind: input, shape index: {}]   ;;  %s375_s0 = inlined_call_operand.vmem [shape: bf16[32,128], index: 0, kind: input, shape index: {}]   ;;  %s376_s3 = inlined_call_operand.vmem [shape: bf16[32,128], index: 3, kind: input, shape index: {}]   ;;  %s377_s2 = inlined_call_operand.vmem [shape: f32[1,128], index: 2, kind: input, shape index: {}]   ;;  %s378_s4 = inlined_call_operand.vmem [shape: bf16[32,128], index: 4, kind: output, shape index: {}]  }
   0x1   :  { %v294_v0 = vld [vmem:[%s374_s1] sm:$0xff]   ;;  %v295_v1 = vld [vmem:[%s374_s1 + $0x8] sm:$0xff]   ;;  %v296_v2 = vld [vmem:[%s374_s1 + $0x10] sm:$0xff]  }
   0x2   :  { %274 = vmatprep.subr.bf16.mxu0 %v294_v0  ;;  %v297_v3 = vld [vmem:[%s374_s1 + $0x18] sm:$0xff]   ;;  %v302_v4 = vld [vmem:[%s375_s0] sm:$0xff]   ;;  %v299_v6 = vld [vmem:[%s374_s1 + $0x28] sm:$0xff]  }
   0x3   :  { %275 = vmatpush3.bf16.msra.mxu0 %v294_v0  ;;  %290 = vmatprep.mubr.bf16.mxu0 %v302_v4  ;;  %v298_v5 = vld [vmem:[%s374_s1 + $0x20] sm:$0xff]   ;;  %v300_v7 = vld [vmem:[%s374_s1 + $0x30] sm:$0xff]   ;;  %v301_v8 = vld [vmem:[%s374_s1 + $0x38] sm:$0xff]  }
   0x4   :  { %276 = vmatprep.subr.bf16.mxu0 %v295_v1  ;;  %v303_v9 = vld [vmem:[%s375_s0 + $0x8] sm:$0xff]   ;;  %v245_v11 = vld [vmem:[%s376_s3] sm:$0xff]  }
   0x5   :  { %v262_v10 = vld [vmem:[%s376_s3 + $0x8] sm:$0xff]   ;;  %v235_v12 = vld [vmem:[%s377_s2] ss:$0 sm:$0xff]  ;;  %v246_v15 = vunpack.c.l.bf16 %v245_v11  ;;  %v247_v21 = vunpack.c.h.bf16 %v245_v11 }
   0x6   :  { %v250_v13 = vunpack.c.l.bf16 %v262_v10  ;;  %v251_v18 = vunpack.c.h.bf16 %v262_v10 }
   0x7   :  { %277 = vmatpush3.bf16.msra.mxu0 %v295_v1 }
   0x8   :  { %278 = vmatprep.subr.bf16.mxu0 %v296_v2 }
   0xb   :  { %279 = vmatpush3.bf16.msra.mxu0 %v296_v2 }
   0xc   :  { %280 = vmatprep.subr.bf16.mxu0 %v297_v3 }
   0xf   :  { %281 = vmatpush3.bf16.msra.mxu0 %v297_v3 }
  0x10   :  { %282 = vmatprep.subr.bf16.mxu0 %v298_v5 }
  0x13   :  { %283 = vmatpush3.bf16.msra.mxu0 %v298_v5 }
  0x14   :  { %284 = vmatprep.subr.bf16.mxu0 %v299_v6 }
  0x17   :  { %285 = vmatpush3.bf16.msra.mxu0 %v299_v6 }
  0x18   :  { %286 = vmatprep.subr.bf16.mxu0 %v300_v7 }
  0x1b   :  { %287 = vmatpush3.bf16.msra.mxu0 %v300_v7 }
  0x1c   :  { %288 = vmatprep.subr.bf16.mxu0 %v301_v8 }
  0x1f   :  { %289 = vmatpush3.bf16.msra.mxu0 %v301_v8 }
  0x22   :  { %291 = vmatmul.mubr.bf16.vlgmr.msra.gmra.mrb[0].mxu0 %v303_v9 }
  0xf5   :  { %v292_v14 = vpop.f32.mrb[0].mxu0 }
  0xf6   :  { %v183_v16 = vadd.f32 %v292_v14, %v235_v12  ;;  %v144_v17 = vpop.f32.mrb[1].mxu0 }
  0xf7   :  { %v181_v19 = vadd.f32 %v235_v12, %v144_v17  ;;  %v293_v20 = vpop.f32.mrb[2].mxu0 }
  0xf8   :  { %v195_v22 = vadd.f32 %v250_v13, %v183_v16  ;;  %v184_v23 = vadd.f32 %v293_v20, %v235_v12  ;;  %v147_v24 = vpop.f32.mrb[3].mxu0 }
  0xf9   :  { %v193_v25 = vadd.f32 %v246_v15, %v181_v19  ;;  %v182_v26 = vadd.f32 %v235_v12, %v147_v24 }
  0xfa   :  { %v196_v27 = vadd.f32 %v251_v18, %v184_v23  ;;  %v199_v29 = vmax.f32 %v195_v22, 0.0 }
  0xfb   :  { %v194_v28 = vadd.f32 %v247_v21, %v182_v26  ;;  %v197_v31 = vmax.f32 %v193_v25, 0.0 }
  0xfc   :  { %v200_v30 = vmax.f32 %v196_v27, 0.0 }
  0xfd   :  { %v198_v32 = vmax.f32 %v194_v28, 0.0 }
  0xfe   :  { %v260_v33 = vpack.c.bf16 %v200_v30, %v199_v29 }
  0xff   :  { %v255_v34 = vpack.c.bf16 %v198_v32, %v197_v31 }
 0x100   :  { %263 = vst [vmem:[%s378_s4 + $0x8] sm:$0xff] %v260_v33  }
 0x101   :  { %256 = vst [vmem:[%s378_s4] sm:$0xff] %v255_v34  }

// kernel: deeplabv3_forward.126
= control target key start
LH: loop header
LB: loop body
LE: loop exit
PB: predicated region body
PF: predicated region fallthrough
CT: control target
= control target key end

     0   :  { %s477_s1 = inlined_call_operand.vmem [shape: bf16[256,128], index: 1, kind: input, shape index: {}]   ;;  %s478_s0 = inlined_call_operand.vmem [shape: bf16[32,256], index: 0, kind: input, shape index: {}]   ;;  %s479_s2 = inlined_call_operand.vmem [shape: f32[1,128], index: 2, kind: input, shape index: {}]   ;;  %s480_s3 = inlined_call_operand.vmem [shape: bf16[32,128], index: 3, kind: output, shape index: {}]  }
   0x1   :  { %v366_v0 = vld [vmem:[%s477_s1 + $0x40] sm:$0xff]   ;;  %v368_v2 = vld [vmem:[%s477_s1 + $0x48] sm:$0xff]   ;;  %v370_v4 = vld [vmem:[%s477_s1 + $0x50] sm:$0xff]  }
   0x2   :  { %v367_v1 = vld [vmem:[%s477_s1] sm:$0xff]   ;;  %322 = vmatprep.subr.bf16.mxu0 %v366_v0  ;;  %350 = vmatprep.subr.bf16.mxu1 %v366_v0  ;;  %v369_v3 = vld [vmem:[%s477_s1 + $0x8] sm:$0xff]   ;;  %v371_v5 = vld [vmem:[%s477_s1 + $0x10] sm:$0xff]  }
   0x3   :  { %323 = vmatpush3.bf16.msra.mxu0 %v367_v1  ;;  %358 = vmatpush3.bf16.msra.mxu1 %v367_v1  ;;  %v372_v6 = vld [vmem:[%s477_s1 + $0x58] sm:$0xff]   ;;  %v374_v8 = vld [vmem:[%s477_s1 + $0x60] sm:$0xff]   ;;  %v376_v10 = vld [vmem:[%s477_s1 + $0x68] sm:$0xff]  }
   0x4   :  { %324 = vmatprep.subr.bf16.mxu0 %v368_v2  ;;  %351 = vmatprep.subr.bf16.mxu1 %v368_v2  ;;  %v373_v7 = vld [vmem:[%s477_s1 + $0x18] sm:$0xff]   ;;  %v375_v9 = vld [vmem:[%s477_s1 + $0x20] sm:$0xff]   ;;  %v377_v13 = vld [vmem:[%s477_s1 + $0x28] sm:$0xff]  }
   0x5   :  { %v384_v11 = vld [vmem:[%s478_s0 + $0x4] ss:$8 sps:$4 sm:$0xff]   ;;  %v387_v12 = vld [vmem:[%s478_s0 + $0x14] ss:$8 sps:$4 sm:$0xff]   ;;  %v382_v18 = vld [vmem:[%s478_s0] ss:$8 sps:$4 sm:$0xff]  }
   0x6   :  { %v378_v14 = vld [vmem:[%s477_s1 + $0x70] sm:$0xff]   ;;  %211 = vmatprep.mubr.bf16.mxu0 %v384_v11  ;;  %219 = vmatprep.mubr.bf16.mxu1 %v387_v12  ;;  %v380_v16 = vld [vmem:[%s477_s1 + $0x78] sm:$0xff]   ;;  %v302_v23 = vld [vmem:[%s479_s2] ss:$0 sm:$0xff] }
   0x7   :  { %325 = vmatpush3.bf16.msra.mxu0 %v369_v3  ;;  %359 = vmatpush3.bf16.msra.mxu1 %v369_v3  ;;  %v379_v15 = vld [vmem:[%s477_s1 + $0x30] sm:$0xff]   ;;  %v381_v17 = vld [vmem:[%s477_s1 + $0x38] sm:$0xff]  }
   0x8   :  { %326 = vmatprep.subr.bf16.mxu0 %v370_v4  ;;  %352 = vmatprep.subr.bf16.mxu1 %v370_v4  ;;  %v385_v19 = vld [vmem:[%s478_s0 + $0x10] ss:$8 sps:$4 sm:$0xff]  }
   0xb   :  { %327 = vmatpush3.bf16.msra.mxu0 %v371_v5  ;;  %360 = vmatpush3.bf16.msra.mxu1 %v371_v5 }
   0xc   :  { %328 = vmatprep.subr.bf16.mxu0 %v372_v6  ;;  %353 = vmatprep.subr.bf16.mxu1 %v372_v6 }
   0xf   :  { %329 = vmatpush3.bf16.msra.mxu0 %v373_v7  ;;  %361 = vmatpush3.bf16.msra.mxu1 %v373_v7 }
  0x10   :  { %330 = vmatprep.subr.bf16.mxu0 %v374_v8  ;;  %354 = vmatprep.subr.bf16.mxu1 %v374_v8 }
  0x13   :  { %331 = vmatpush3.bf16.msra.mxu0 %v375_v9  ;;  %362 = vmatpush3.bf16.msra.mxu1 %v375_v9 }
  0x14   :  { %332 = vmatprep.subr.bf16.mxu0 %v376_v10  ;;  %355 = vmatprep.subr.bf16.mxu1 %v376_v10 }
  0x17   :  { %333 = vmatpush3.bf16.msra.mxu0 %v377_v13  ;;  %363 = vmatpush3.bf16.msra.mxu1 %v377_v13 }
  0x18   :  { %334 = vmatprep.subr.bf16.mxu0 %v378_v14  ;;  %356 = vmatprep.subr.bf16.mxu1 %v378_v14 }
  0x1b   :  { %335 = vmatpush3.bf16.msra.mxu0 %v379_v15  ;;  %364 = vmatpush3.bf16.msra.mxu1 %v379_v15 }
  0x1c   :  { %336 = vmatprep.subr.bf16.mxu0 %v380_v16  ;;  %357 = vmatprep.subr.bf16.mxu1 %v380_v16 }
  0x1f   :  { %337 = vmatpush3.bf16.msra.mxu0 %v381_v17  ;;  %365 = vmatpush3.bf16.msra.mxu1 %v381_v17 }
  0x22   :  { %212 = vmatmul.mubr.bf16.vlgmr.msra.gmra.mrb[0].mxu0 %v382_v18  ;;  %220 = vmatmul.mubr.bf16.vlgmr.msra.gmra.mrb[0].mxu1 %v385_v19 }
  0xf5   :  { %v338_v20 = vpop.f32.mrb[0].mxu0  ;;  %v344_v21 = vpop.f32.mrb[0].mxu1 }
  0xf6   :  { %v339_v22 = vpop.f32.mrb[1].mxu0  ;;  %v345_v24 = vpop.f32.mrb[1].mxu1 }
  0xf7   :  { %v340_v25 = vadd.f32 %v339_v22, %v338_v20  ;;  %v346_v26 = vadd.f32 %v345_v24, %v344_v21  ;;  %v341_v27 = vpop.f32.mrb[2].mxu0  ;;  %v347_v28 = vpop.f32.mrb[2].mxu1 }
  0xf8   :  { %v342_v29 = vpop.f32.mrb[3].mxu0  ;;  %v348_v30 = vpop.f32.mrb[3].mxu1 }
  0xf9   :  { %v250_v31 = vadd.f32 %v340_v25, %v302_v23  ;;  %v252_v32 = vadd.f32 %v346_v26, %v302_v23  ;;  %v343_v33 = vadd.f32 %v342_v29, %v341_v27  ;;  %v349_v34 = vadd.f32 %v348_v30, %v347_v28 }
  0xfb   :  { %v251_v35 = vadd.f32 %v343_v33, %v302_v23  ;;  %v253_v36 = vadd.f32 %v349_v34, %v302_v23  ;;  %v254_v37 = vmax.f32 %v250_v31, 0.0  ;;  %v256_v38 = vmax.f32 %v252_v32, 0.0 }
  0xfd   :  { %v255_v39 = vmax.f32 %v251_v35, 0.0  ;;  %v257_v40 = vmax.f32 %v253_v36, 0.0 }
  0xff   :  { %v314_v41 = vpack.c.bf16 %v255_v39, %v254_v37  ;;  %v319_v42 = vpack.c.bf16 %v257_v40, %v256_v38 }
 0x101   :  { %315 = vst [vmem:[%s480_s3] sm:$0xff] %v314_v41   ;;  %321 = vst [vmem:[%s480_s3 + $0x8] sm:$0xff] %v319_v42  }

// kernel: deeplabv3_forward.124
= control target key start
LH: loop header
LB: loop body
LE: loop exit
PB: predicated region body
PF: predicated region fallthrough
CT: control target
= control target key end

     0   :  { %s335_s1 = inlined_call_operand.vmem [shape: bf16[128,128], index: 1, kind: input, shape index: {}]   ;;  %s336_s0 = inlined_call_operand.vmem [shape: bf16[32,128], index: 0, kind: input, shape index: {}]   ;;  %s337_s2 = inlined_call_operand.vmem [shape: f32[1,128], index: 2, kind: input, shape index: {}]   ;;  %s338_s3 = inlined_call_operand.vmem [shape: bf16[32,128], index: 3, kind: output, shape index: {}]  }
   0x1   :  { %v266_v0 = vld [vmem:[%s335_s1] sm:$0xff]   ;;  %v267_v1 = vld [vmem:[%s335_s1 + $0x8] sm:$0xff]   ;;  %v268_v2 = vld [vmem:[%s335_s1 + $0x10] sm:$0xff]  }
   0x2   :  { %246 = vmatprep.subr.bf16.mxu0 %v266_v0  ;;  %v269_v3 = vld [vmem:[%s335_s1 + $0x18] sm:$0xff]   ;;  %v274_v4 = vld [vmem:[%s336_s0] sm:$0xff]   ;;  %v271_v6 = vld [vmem:[%s335_s1 + $0x28] sm:$0xff]  }
   0x3   :  { %247 = vmatpush3.bf16.msra.mxu0 %v266_v0  ;;  %262 = vmatprep.mubr.bf16.mxu0 %v274_v4  ;;  %v270_v5 = vld [vmem:[%s335_s1 + $0x20] sm:$0xff]   ;;  %v272_v7 = vld [vmem:[%s335_s1 + $0x30] sm:$0xff]   ;;  %v273_v8 = vld [vmem:[%s335_s1 + $0x38] sm:$0xff]  }
   0x4   :  { %248 = vmatprep.subr.bf16.mxu0 %v267_v1  ;;  %v275_v9 = vld [vmem:[%s336_s0 + $0x8] sm:$0xff]   ;;  %v216_v11 = vld [vmem:[%s337_s2] ss:$0 sm:$0xff] }
   0x7   :  { %249 = vmatpush3.bf16.msra.mxu0 %v267_v1 }
   0x8   :  { %250 = vmatprep.subr.bf16.mxu0 %v268_v2 }
   0xb   :  { %251 = vmatpush3.bf16.msra.mxu0 %v268_v2 }
   0xc   :  { %252 = vmatprep.subr.bf16.mxu0 %v269_v3 }
   0xf   :  { %253 = vmatpush3.bf16.msra.mxu0 %v269_v3 }
  0x10   :  { %254 = vmatprep.subr.bf16.mxu0 %v270_v5 }
  0x13   :  { %255 = vmatpush3.bf16.msra.mxu0 %v270_v5 }
  0x14   :  { %256 = vmatprep.subr.bf16.mxu0 %v271_v6 }
  0x17   :  { %257 = vmatpush3.bf16.msra.mxu0 %v271_v6 }
  0x18   :  { %258 = vmatprep.subr.bf16.mxu0 %v272_v7 }
  0x1b   :  { %259 = vmatpush3.bf16.msra.mxu0 %v272_v7 }
  0x1c   :  { %260 = vmatprep.subr.bf16.mxu0 %v273_v8 }
  0x1f   :  { %261 = vmatpush3.bf16.msra.mxu0 %v273_v8 }
  0x22   :  { %263 = vmatmul.mubr.bf16.vlgmr.msra.gmra.mrb[0].mxu0 %v275_v9 }
  0xf5   :  { %v264_v10 = vpop.f32.mrb[0].mxu0 }
  0xf6   :  { %v141_v12 = vpop.f32.mrb[1].mxu0  ;;  %v180_v14 = vadd.f32 %v264_v10, %v216_v11 }
  0xf7   :  { %v265_v13 = vpop.f32.mrb[2].mxu0  ;;  %v178_v17 = vadd.f32 %v216_v11, %v141_v12 }
  0xf8   :  { %v181_v15 = vadd.f32 %v265_v13, %v216_v11  ;;  %v144_v16 = vpop.f32.mrb[3].mxu0 }
  0xf9   :  { %v179_v18 = vadd.f32 %v216_v11, %v144_v16 }
  0xfa   :  { %v233_v19 = vpack.c.bf16 %v181_v15, %v180_v14 }
  0xfb   :  { %v228_v20 = vpack.c.bf16 %v179_v18, %v178_v17 }
  0xfc   :  { %235 = vst [vmem:[%s338_s3 + $0x8] sm:$0xff] %v233_v19  }
  0xfd   :  { %229 = vst [vmem:[%s338_s3] sm:$0xff] %v228_v20  }

// kernel: deeplabv3_forward.210
= control target key start
LH: loop header
LB: loop body
LE: loop exit
PB: predicated region body
PF: predicated region fallthrough
CT: control target
= control target key end

     0   :  { %v379_v1 = vmov 0   ;;  %v232_v19 = vlaneseq  ;;  %s486_s1 = inlined_call_operand.vmem [shape: bf16[128,256], index: 1, kind: input, shape index: {}]   ;;  %s487_s0 = inlined_call_operand.vmem [shape: bf16[32,128], index: 0, kind: input, shape index: {}]   ;;  %s488_s2 = inlined_call_operand.vmem [shape: f32[1,256], index: 2, kind: input, shape index: {}]   ;;  %s489_s3 = inlined_call_operand.vmem [shape: bf16[32,256], index: 3, kind: input, shape index: {}]   ;;  %s490_s4 = inlined_call_operand.vmem [shape: bf16[32,256], index: 4, kind: output, shape index: {}]  }
   0x1   :  { %v353_v0 = vld [vmem:[%s486_s1 + $0x4] ss:$8 sps:$4 sm:$0xff]   ;;  %182 = vmatprep.mubr.bf16.mxu0 %v379_v1  ;;  %192 = vmatprep.mubr.bf16.mxu1 %v379_v1  ;;  %v355_v2 = vld [vmem:[%s486_s1] ss:$8 sps:$4 sm:$0xff]   ;;  %v356_v3 = vld [vmem:[%s486_s1 + $0x14] ss:$8 sps:$4 sm:$0xff]  }
   0x2   :  { %150 = vmatprep.subr.bf16.mxu0 %v353_v0  ;;  %336 = vmatprep.subr.bf16.mxu1 %v353_v0  ;;  %v358_v4 = vld [vmem:[%s486_s1 + $0x10] ss:$8 sps:$4 sm:$0xff]   ;;  %v359_v5 = vld [vmem:[%s486_s1 + $0x24] ss:$8 sps:$4 sm:$0xff]   ;;  %v361_v6 = vld [vmem:[%s486_s1 + $0x20] ss:$8 sps:$4 sm:$0xff]  }
   0x3   :  { %151 = vmatpush1.bf16.msra.mxu0 %v355_v2  ;;  %344 = vmatpush1.bf16.msra.mxu1 %v355_v2  ;;  %v362_v7 = vld [vmem:[%s486_s1 + $0x34] ss:$8 sps:$4 sm:$0xff]   ;;  %v364_v8 = vld [vmem:[%s486_s1 + $0x30] ss:$8 sps:$4 sm:$0xff]   ;;  %v365_v9 = vld [vmem:[%s486_s1 + $0x44] ss:$8 sps:$4 sm:$0xff]  }
   0x4   :  { %152 = vmatprep.subr.bf16.mxu0 %v356_v3  ;;  %337 = vmatprep.subr.bf16.mxu1 %v356_v3  ;;  %v367_v10 = vld [vmem:[%s486_s1 + $0x40] ss:$8 sps:$4 sm:$0xff]   ;;  %v368_v11 = vld [vmem:[%s486_s1 + $0x54] ss:$8 sps:$4 sm:$0xff]   ;;  %v370_v12 = vld [vmem:[%s486_s1 + $0x50] ss:$8 sps:$4 sm:$0xff]  }
   0x5   :  { %v371_v13 = vld [vmem:[%s486_s1 + $0x64] ss:$8 sps:$4 sm:$0xff]   ;;  %v373_v14 = vld [vmem:[%s486_s1 + $0x60] ss:$8 sps:$4 sm:$0xff]   ;;  %v374_v15 = vld [vmem:[%s486_s1 + $0x74] ss:$8 sps:$4 sm:$0xff]  }
   0x6   :  { %v376_v16 = vld [vmem:[%s486_s1 + $0x70] ss:$8 sps:$4 sm:$0xff]   ;;  %v377_v17 = vld [vmem:[%s487_s0] sm:$0xff]   ;;  %v378_v18 = vld [vmem:[%s487_s0 + $0x8] sm:$0xff]   ;;  %v233_v20 = vshrl.u32 %v232_v19, 7 }
   0x7   :  { %153 = vmatpush1.bf16.msra.mxu0 %v358_v4  ;;  %345 = vmatpush1.bf16.msra.mxu1 %v358_v4  ;;  %v230_v22 = vld [vmem:[%s488_s2] sm:$0x3]  ;;  %v252_v25 = vld [vmem:[%s489_s3 + $0x10] sm:$0xff]  ;;  %v251_v28 = vld [vmem:[%s489_s3 + $0x8] sm:$0xff] }
   0x8   :  { %154 = vmatprep.subr.bf16.mxu0 %v359_v5  ;;  %338 = vmatprep.subr.bf16.mxu1 %v359_v5  ;;  %v234_v21 = vsub.s32 0, %v233_v20  ;;  %v238_v23 = vsub.s32 1, %v233_v20  ;;  %v250_v24 = vld [vmem:[%s489_s3] sm:$0xff]  ;;  %v253_v29 = vld [vmem:[%s489_s3 + $0x18] sm:$0xff]  ;;  %v258_v31 = vunpack.c.l.bf16 %v252_v25  ;;  %v259_v35 = vunpack.c.h.bf16 %v252_v25 }
   0x9   :  { %v254_v30 = vunpack.c.l.bf16 %v250_v24  ;;  %v255_v34 = vunpack.c.h.bf16 %v250_v24  ;;  %v256_v40 = vunpack.c.l.bf16 %v251_v28  ;;  %v260_v41 = vunpack.c.l.bf16 %v253_v29 }
   0xa   :  { %v235_v26 = vrot.slane %v230_v22, %v234_v21  ;;  %v239_v27 = vrot.slane %v230_v22, %v238_v23  ;;  %v257_v46 = vunpack.c.h.bf16 %v251_v28  ;;  %v261_v47 = vunpack.c.h.bf16 %v253_v29 }
   0xb   :  { %155 = vmatpush1.bf16.msra.mxu0 %v361_v6  ;;  %346 = vmatpush1.bf16.msra.mxu1 %v361_v6 }
   0xc   :  { %156 = vmatprep.subr.bf16.mxu0 %v362_v7  ;;  %339 = vmatprep.subr.bf16.mxu1 %v362_v7 }
   0xf   :  { %157 = vmatpush1.bf16.msra.mxu0 %v364_v8  ;;  %347 = vmatpush1.bf16.msra.mxu1 %v364_v8 }
  0x10   :  { %158 = vmatprep.subr.bf16.mxu0 %v365_v9  ;;  %340 = vmatprep.subr.bf16.mxu1 %v365_v9 }
  0x13   :  { %159 = vmatpush1.bf16.msra.mxu0 %v367_v10  ;;  %348 = vmatpush1.bf16.msra.mxu1 %v367_v10 }
  0x14   :  { %160 = vmatprep.subr.bf16.mxu0 %v368_v11  ;;  %341 = vmatprep.subr.bf16.mxu1 %v368_v11 }
  0x17   :  { %161 = vmatpush1.bf16.msra.mxu0 %v370_v12  ;;  %349 = vmatpush1.bf16.msra.mxu1 %v370_v12 }
  0x18   :  { %162 = vmatprep.subr.bf16.mxu0 %v371_v13  ;;  %342 = vmatprep.subr.bf16.mxu1 %v371_v13 }
  0x1b   :  { %163 = vmatpush1.bf16.msra.mxu0 %v373_v14  ;;  %350 = vmatpush1.bf16.msra.mxu1 %v373_v14 }
  0x1c   :  { %164 = vmatprep.subr.bf16.mxu0 %v374_v15  ;;  %343 = vmatprep.subr.bf16.mxu1 %v374_v15 }
  0x1f   :  { %165 = vmatpush1.bf16.msra.mxu0 %v376_v16  ;;  %351 = vmatpush1.bf16.msra.mxu1 %v376_v16 }
  0x22   :  { %183 = vmatmul.mubr.bf16.vlgmr.msra.gmra.mrb[0].mxu0 %v377_v17  ;;  %193 = vmatmul.mubr.bf16.vlgmr.msra.gmra.mrb[0].mxu1 %v378_v18 }
  0xf5   :  { %v184_v32 = vpop.f32.mrb[0].mxu0  ;;  %v194_v33 = vpop.f32.mrb[0].mxu1 }
  0xf6   :  { %v242_v36 = vadd.f32 %v235_v26, %v184_v32  ;;  %v246_v37 = vadd.f32 %v235_v26, %v194_v33  ;;  %v186_v38 = vpop.f32.mrb[1].mxu0  ;;  %v196_v39 = vpop.f32.mrb[1].mxu1 }
  0xf7   :  { %v243_v42 = vadd.f32 %v239_v27, %v186_v38  ;;  %v247_v43 = vadd.f32 %v239_v27, %v196_v39  ;;  %v188_v44 = vpop.f32.mrb[2].mxu0  ;;  %v198_v45 = vpop.f32.mrb[2].mxu1 }
  0xf8   :  { %v262_v48 = vadd.f32 %v254_v30, %v242_v36  ;;  %v266_v49 = vadd.f32 %v258_v31, %v246_v37  ;;  %v244_v50 = vadd.f32 %v235_v26, %v188_v44  ;;  %v248_v51 = vadd.f32 %v235_v26, %v198_v45  ;;  %v190_v52 = vpop.f32.mrb[3].mxu0  ;;  %v200_v53 = vpop.f32.mrb[3].mxu1 }
  0xf9   :  { %v263_v54 = vadd.f32 %v255_v34, %v243_v42  ;;  %v267_v55 = vadd.f32 %v259_v35, %v247_v43  ;;  %v245_v56 = vadd.f32 %v239_v27, %v190_v52  ;;  %v249_v57 = vadd.f32 %v239_v27, %v200_v53 }
  0xfa   :  { %v270_v58 = vmax.f32 %v262_v48, 0.0  ;;  %v274_v59 = vmax.f32 %v266_v49, 0.0  ;;  %v264_v60 = vadd.f32 %v256_v40, %v244_v50  ;;  %v268_v61 = vadd.f32 %v260_v41, %v248_v51 }
  0xfb   :  { %v271_v62 = vmax.f32 %v263_v54, 0.0  ;;  %v275_v63 = vmax.f32 %v267_v55, 0.0  ;;  %v265_v0 = vadd.f32 %v257_v46, %v245_v56  ;;  %v269_v1 = vadd.f32 %v261_v47, %v249_v57 }
  0xfc   :  { %v272_v2 = vmax.f32 %v264_v60, 0.0  ;;  %v276_v3 = vmax.f32 %v268_v61, 0.0 }
  0xfd   :  { %v332_v4 = vpack.c.bf16 %v271_v62, %v270_v58  ;;  %v334_v5 = vpack.c.bf16 %v275_v63, %v274_v59  ;;  %v273_v6 = vmax.f32 %v265_v0, 0.0  ;;  %v277_v7 = vmax.f32 %v269_v1, 0.0 }
  0xff   :  { %302 = vst [vmem:[%s490_s4] sm:$0xff] %v332_v4  ;;  %304 = vst [vmem:[%s490_s4 + $0x10] sm:$0xff] %v334_v5  ;;  %v333_v8 = vpack.c.bf16 %v273_v6, %v272_v2  ;;  %v335_v9 = vpack.c.bf16 %v277_v7, %v276_v3 }
 0x101   :  { %303 = vst [vmem:[%s490_s4 + $0x8] sm:$0xff] %v333_v8  ;;  %305 = vst [vmem:[%s490_s4 + $0x18] sm:$0xff] %v335_v9 }

// kernel: deeplabv3_forward.139
= control target key start
LH: loop header
LB: loop body
LE: loop exit
PB: predicated region body
PF: predicated region fallthrough
CT: control target
= control target key end

     0   :  { %s670_s1 = inlined_call_operand.vmem [shape: bf16[384,128], index: 1, kind: input, shape index: {}]   ;;  %s671_s0 = inlined_call_operand.vmem [shape: bf16[32,384], index: 0, kind: input, shape index: {}]   ;;  %s672_s2 = inlined_call_operand.vmem [shape: f32[1,128], index: 2, kind: input, shape index: {}]   ;;  %s673_s3 = inlined_call_operand.vmem [shape: bf16[32,128], index: 3, kind: output, shape index: {}]  }
   0x1   :  { %v519_v0 = vld [vmem:[%s670_s1 + $0x40] sm:$0xff]   ;;  %v522_v3 = vld [vmem:[%s670_s1 + $0x48] sm:$0xff]   ;;  %v525_v6 = vld [vmem:[%s670_s1 + $0x50] sm:$0xff]  }
   0x2   :  { %v520_v1 = vld [vmem:[%s670_s1] sm:$0xff]   ;;  %461 = vmatprep.subr.bf16.mxu0 %v519_v0  ;;  %v523_v4 = vld [vmem:[%s670_s1 + $0x8] sm:$0xff]   ;;  %v526_v7 = vld [vmem:[%s670_s1 + $0x10] sm:$0xff]  }
   0x3   :  { %v521_v2 = vld [vmem:[%s670_s1 + $0x80] sm:$0xff]   ;;  %462 = vmatpush3.bf16.msra.mxu0 %v520_v1  ;;  %v524_v5 = vld [vmem:[%s670_s1 + $0x88] sm:$0xff]   ;;  %v527_v8 = vld [vmem:[%s670_s1 + $0x90] sm:$0xff]  }
   0x4   :  { %499 = vmatprep.subr.bf16.mxu1 %v521_v2  ;;  %463 = vmatprep.subr.bf16.mxu0 %v522_v3  ;;  %v528_v9 = vld [vmem:[%s670_s1 + $0x58] sm:$0xff]   ;;  %v531_v12 = vld [vmem:[%s670_s1 + $0x60] sm:$0xff]   ;;  %v534_v15 = vld [vmem:[%s670_s1 + $0x68] sm:$0xff]  }
   0x5   :  { %500 = vmatpush3.bf16.msra.mxu1 %v521_v2  ;;  %v529_v10 = vld [vmem:[%s670_s1 + $0x18] sm:$0xff]   ;;  %v533_v13 = vld [vmem:[%s670_s1 + $0xa0] sm:$0xff]   ;;  %v536_v16 = vld [vmem:[%s670_s1 + $0xa8] sm:$0xff]  }
   0x6   :  { %501 = vmatprep.subr.bf16.mxu1 %v524_v5  ;;  %v530_v11 = vld [vmem:[%s670_s1 + $0x98] sm:$0xff]   ;;  %v532_v14 = vld [vmem:[%s670_s1 + $0x20] sm:$0xff]   ;;  %v535_v17 = vld [vmem:[%s670_s1 + $0x28] sm:$0xff]  }
   0x7   :  { %464 = vmatpush3.bf16.msra.mxu0 %v523_v4  ;;  %v537_v18 = vld [vmem:[%s670_s1 + $0x70] sm:$0xff]   ;;  %v540_v21 = vld [vmem:[%s670_s1 + $0x78] sm:$0xff]   ;;  %v543_v26 = vld [vmem:[%s671_s0] ss:$12 sps:$4 sm:$0xff]  }
   0x8   :  { %465 = vmatprep.subr.bf16.mxu0 %v525_v6  ;;  %v538_v19 = vld [vmem:[%s670_s1 + $0x30] sm:$0xff]   ;;  %v542_v22 = vld [vmem:[%s670_s1 + $0xb8] sm:$0xff]   ;;  %v547_v28 = vld [vmem:[%s671_s0 + $0x20] ss:$12 sps:$4 sm:$0xff]  }
   0x9   :  { %502 = vmatpush3.bf16.msra.mxu1 %v524_v5  ;;  %v539_v20 = vld [vmem:[%s670_s1 + $0xb0] sm:$0xff]   ;;  %v541_v25 = vld [vmem:[%s670_s1 + $0x38] sm:$0xff]   ;;  %v441_v37 = vld [vmem:[%s672_s2] ss:$0 sm:$0xff] }
   0xa   :  { %503 = vmatprep.subr.bf16.mxu1 %v527_v8  ;;  %v545_v23 = vld [vmem:[%s671_s0 + $0x4] ss:$12 sps:$4 sm:$0xff]   ;;  %v546_v24 = vld [vmem:[%s671_s0 + $0x8] ss:$12 sps:$4 sm:$0xff]  }
   0xb   :  { %466 = vmatpush3.bf16.msra.mxu0 %v526_v7  ;;  %291 = vmatprep.mubr.bf16.mxu0 %v545_v23  ;;  %v548_v27 = vld [vmem:[%s671_s0 + $0x1c] ss:$12 sps:$4 sm:$0xff]   ;;  %v550_v29 = vld [vmem:[%s671_s0 + $0x18] ss:$12 sps:$4 sm:$0xff]  }
   0xc   :  { %467 = vmatprep.subr.bf16.mxu0 %v528_v9  ;;  %515 = vmatprep.mubr.bf16.mxu1 %v546_v24 }
   0xd   :  { %504 = vmatpush3.bf16.msra.mxu1 %v527_v8 }
   0xe   :  { %505 = vmatprep.subr.bf16.mxu1 %v530_v11 }
   0xf   :  { %468 = vmatpush3.bf16.msra.mxu0 %v529_v10 }
  0x10   :  { %469 = vmatprep.subr.bf16.mxu0 %v531_v12 }
  0x11   :  { %506 = vmatpush3.bf16.msra.mxu1 %v530_v11 }
  0x12   :  { %507 = vmatprep.subr.bf16.mxu1 %v533_v13 }
  0x13   :  { %470 = vmatpush3.bf16.msra.mxu0 %v532_v14 }
  0x14   :  { %471 = vmatprep.subr.bf16.mxu0 %v534_v15 }
  0x15   :  { %508 = vmatpush3.bf16.msra.mxu1 %v533_v13 }
  0x16   :  { %509 = vmatprep.subr.bf16.mxu1 %v536_v16 }
  0x17   :  { %472 = vmatpush3.bf16.msra.mxu0 %v535_v17 }
  0x18   :  { %473 = vmatprep.subr.bf16.mxu0 %v537_v18 }
  0x19   :  { %510 = vmatpush3.bf16.msra.mxu1 %v536_v16 }
  0x1a   :  { %511 = vmatprep.subr.bf16.mxu1 %v539_v20 }
  0x1b   :  { %474 = vmatpush3.bf16.msra.mxu0 %v538_v19 }
  0x1c   :  { %475 = vmatprep.subr.bf16.mxu0 %v540_v21 }
  0x1d   :  { %512 = vmatpush3.bf16.msra.mxu1 %v539_v20 }
  0x1e   :  { %513 = vmatprep.subr.bf16.mxu1 %v542_v22 }
  0x1f   :  { %476 = vmatpush3.bf16.msra.mxu0 %v541_v25 }
  0x21   :  { %514 = vmatpush3.bf16.msra.mxu1 %v542_v22 }
  0x22   :  { %292 = vmatmul.mubr.bf16.vlgmr.msra.gmra.mrb[0].mxu0 %v543_v26 }
  0x23   :  { %299 = vmatprep.mubr.bf16.mxu0 %v548_v27 }
  0x24   :  { %516 = vmatmul.mubr.bf16.vlgmr.msra.gmra.mrb[0].mxu1 %v547_v28 }
  0x2a   :  { %300 = vmatmul.mubr.bf16.gmra.mrb[4].mxu0 %v550_v29 }
  0xf5   :  { %v477_v30 = vpop.f32.mrb[0].mxu0 }
  0xf6   :  { %v478_v31 = vpop.f32.mrb[1].mxu0 }
  0xf7   :  { %v479_v32 = vadd.f32 %v478_v31, %v477_v30  ;;  %v480_v33 = vpop.f32.mrb[2].mxu0  ;;  %v517_v34 = vpop.f32.mrb[0].mxu1 }
  0xf8   :  { %v481_v35 = vpop.f32.mrb[3].mxu0  ;;  %v342_v36 = vpop.f32.mrb[1].mxu1 }
  0xf9   :  { %v482_v38 = vadd.f32 %v481_v35, %v480_v33  ;;  %v343_v39 = vadd.f32 %v479_v32, %v342_v36  ;;  %v518_v40 = vpop.f32.mrb[2].mxu1 }
  0xfa   :  { %v345_v41 = vpop.f32.mrb[3].mxu1 }
  0xfb   :  { %v379_v42 = vadd.f32 %v441_v37, %v343_v39  ;;  %v346_v43 = vadd.f32 %v482_v38, %v345_v41 }
  0xfd   :  { %v380_v44 = vadd.f32 %v441_v37, %v346_v43  ;;  %v483_v45 = vpop.f32.mrb[4].mxu0  ;;  %v383_v47 = vmax.f32 %v379_v42, 0.0 }
  0xfe   :  { %v484_v46 = vpop.f32.mrb[5].mxu0 }
  0xff   :  { %v384_v48 = vmax.f32 %v380_v44, 0.0  ;;  %v485_v49 = vadd.f32 %v484_v46, %v483_v45  ;;  %v486_v50 = vpop.f32.mrb[6].mxu0 }
 0x100   :  { %v487_v51 = vpop.f32.mrb[7].mxu0 }
 0x101   :  { %v453_v52 = vpack.c.bf16 %v384_v48, %v383_v47  ;;  %v351_v53 = vadd.f32 %v517_v34, %v485_v49  ;;  %v488_v54 = vadd.f32 %v487_v51, %v486_v50 }
 0x103   :  { %454 = vst [vmem:[%s673_s3] sm:$0xff] %v453_v52   ;;  %v381_v55 = vadd.f32 %v441_v37, %v351_v53  ;;  %v354_v56 = vadd.f32 %v518_v40, %v488_v54 }
 0x105   :  { %v382_v57 = vadd.f32 %v441_v37, %v354_v56  ;;  %v385_v58 = vmax.f32 %v381_v55, 0.0 }
 0x107   :  { %v386_v59 = vmax.f32 %v382_v57, 0.0 }
 0x109   :  { %v458_v60 = vpack.c.bf16 %v386_v59, %v385_v58 }
 0x10b   :  { %460 = vst [vmem:[%s673_s3 + $0x8] sm:$0xff] %v458_v60  }

// kernel: deeplabv3_forward.221
= control target key start
LH: loop header
LB: loop body
LE: loop exit
PB: predicated region body
PF: predicated region fallthrough
CT: control target
= control target key end

     0   :  { %v102_v0 = vmov 0.0   ;;  %v103_v25 = vmov 1983009808   ;;  %v62_v27 = vlaneseq  ;;  %vm79_vm0 = vcmask 1041409   ;;  %s141_s1 = inlined_call_operand.vmem [shape: f32[2,256], index: 1, kind: output, shape index: {}]   ;;  %s142_s0 = inlined_call_operand.vmem [shape: bf16[2,16,256], index: 0, kind: input, shape index: {}]  }
   0x1   :  { %12 = vst [vmem:[%s141_s1] sm:$0xf] %v102_v0  ;;  %v14_v1 = vld [vmem:[%s142_s0] sm:$0xff]  ;;  %v15_v2 = vld [vmem:[%s142_s0 + $0x8] sm:$0xff]  ;;  %v16_v3 = vld [vmem:[%s142_s0 + $0x10] sm:$0xff]  ;;  %v60_v26 = vunpack.c.l.s4 %v103_v25  ;;  %vm81_vm1 = vcmask 1043459   ;;  %vm83_vm2 = vcmask 1045509  }
   0x2   :  { %v17_v4 = vld [vmem:[%s142_s0 + $0x18] sm:$0xff]  ;;  %v18_v5 = vunpack.c.l.bf16 %v14_v1  ;;  %v19_v6 = vunpack.c.h.bf16 %v14_v1  ;;  %v20_v7 = vunpack.c.l.bf16 %v15_v2  ;;  %v21_v8 = vunpack.c.h.bf16 %v15_v2 }
   0x3   :  { %v22_v9 = vunpack.c.l.bf16 %v16_v3  ;;  %v23_v10 = vunpack.c.h.bf16 %v16_v3  ;;  %v24_v11 = vunpack.c.l.bf16 %v17_v4  ;;  %v25_v12 = vunpack.c.h.bf16 %v17_v4 }
   0x4   :  { %v26_v13 = vadd.f32 %v20_v7, %v18_v5  ;;  %v33_v14 = vadd.f32 %v21_v8, %v19_v6  ;;  %v61_v36 = vunpack.c.0.s8 %v60_v26  ;;  %v63_v37 = vshrl.u32 %v62_v27, 7 }
   0x5   :  { %v40_v15 = vadd.f32 %v24_v11, %v22_v9  ;;  %v47_v16 = vadd.f32 %v25_v12, %v23_v10  ;;  %vm85_vm3 = vcmask 1047559  }
   0x6   :  { %v27_v17 = vrot.slane %v26_v13, 4  ;;  %v34_v18 = vrot.slane %v33_v14, 4  ;;  %v64_v46 = vsub.s32 %v61_v36, %v63_v37 }
   0x7   :  { %v41_v19 = vrot.slane %v40_v15, 4  ;;  %v48_v20 = vrot.slane %v47_v16, 4 }
   0x8   :  { %v28_v21 = vadd.f32 %v27_v17, %v26_v13  ;;  %v35_v22 = vadd.f32 %v34_v18, %v33_v14  ;;  %v13_v53 = vld [vmem:[%s141_s1] sm:$0xf] }
   0x9   :  { %v42_v23 = vadd.f32 %v41_v19, %v40_v15  ;;  %v49_v24 = vadd.f32 %v48_v20, %v47_v16 }
   0xa   :  { %v29_v28 = vrot.slane %v28_v21, 2  ;;  %v36_v29 = vrot.slane %v35_v22, 2 }
   0xb   :  { %v43_v30 = vrot.slane %v42_v23, 2  ;;  %v50_v31 = vrot.slane %v49_v24, 2 }
   0xc   :  { %v30_v32 = vadd.f32 %v29_v28, %v28_v21  ;;  %v37_v33 = vadd.f32 %v36_v29, %v35_v22 }
   0xd   :  { %v44_v34 = vadd.f32 %v43_v30, %v42_v23  ;;  %v51_v35 = vadd.f32 %v50_v31, %v49_v24 }
   0xe   :  { %v31_v38 = vrot.slane %v30_v32, 1  ;;  %v38_v39 = vrot.slane %v37_v33, 1 }
   0xf   :  { %v45_v40 = vrot.slane %v44_v34, 1  ;;  %v52_v41 = vrot.slane %v51_v35, 1 }
  0x10   :  { %v32_v42 = vadd.f32 %v31_v38, %v30_v32  ;;  %v39_v43 = vadd.f32 %v38_v39, %v37_v33 }
  0x11   :  { %v46_v44 = vadd.f32 %v45_v40, %v44_v34  ;;  %v53_v45 = vadd.f32 %v52_v41, %v51_v35 }
  0x12   :  { %v58_v47 = vcombine.low %v32_v42, %v39_v43 }
  0x13   :  { %v66_v48 = vcombine.low %v46_v44, %v53_v45 }
  0x14   :  { %v65_v49 = vrot.slane %v58_v47, %v64_v46 }
  0x15   :  { %v73_v50 = vrot.slane %v66_v48, %v64_v46 }
  0x17   :  { %v78_v51 = vrot.slane %v73_v50, 7 }
  0x19   :  { %v80_v52 = vsel %vm79_vm0, %v78_v51, %v65_v49 }
  0x1a   :  { %v82_v54 = vsel %vm81_vm1, %v78_v51, %v80_v52 }
  0x1b   :  { %v84_v55 = vsel %vm83_vm2, %v78_v51, %v82_v54 }
  0x1c   :  { %v86_v56 = vsel %vm85_vm3, %v78_v51, %v84_v55 }
  0x1d   :  { %v88_v57 = vadd.f32 %v86_v56, %v13_v53 }
  0x1f   :  { %89 = vst [vmem:[%s141_s1] sm:$0xf] %v88_v57 }
  0x26   :  { %v93_v58 = vld [vmem:[%s141_s1] sm:$0xf] }
  0x27   :  { %v94_v59 = vmul.f32 0.0625, %v93_v58 }
  0x29   :  { %95 = vst [vmem:[%s141_s1] sm:$0xf] %v94_v59 }

// kernel: deeplabv3_forward.207
= control target key start
LH: loop header
LB: loop body
LE: loop exit
PB: predicated region body
PF: predicated region fallthrough
CT: control target
= control target key end

     0   :  { %v348_v1 = vmov 0   ;;  %v229_v19 = vlaneseq  ;;  %s438_s1 = inlined_call_operand.vmem [shape: bf16[128,256], index: 1, kind: input, shape index: {}]   ;;  %s439_s0 = inlined_call_operand.vmem [shape: bf16[32,128], index: 0, kind: input, shape index: {}]   ;;  %s440_s2 = inlined_call_operand.vmem [shape: f32[1,256], index: 2, kind: input, shape index: {}]   ;;  %s441_s3 = inlined_call_operand.vmem [shape: bf16[32,256], index: 3, kind: output, shape index: {}]  }
   0x1   :  { %v322_v0 = vld [vmem:[%s438_s1 + $0x4] ss:$8 sps:$4 sm:$0xff]   ;;  %179 = vmatprep.mubr.bf16.mxu0 %v348_v1  ;;  %189 = vmatprep.mubr.bf16.mxu1 %v348_v1  ;;  %v324_v2 = vld [vmem:[%s438_s1] ss:$8 sps:$4 sm:$0xff]   ;;  %v325_v3 = vld [vmem:[%s438_s1 + $0x14] ss:$8 sps:$4 sm:$0xff]  }
   0x2   :  { %147 = vmatprep.subr.bf16.mxu0 %v322_v0  ;;  %305 = vmatprep.subr.bf16.mxu1 %v322_v0  ;;  %v327_v4 = vld [vmem:[%s438_s1 + $0x10] ss:$8 sps:$4 sm:$0xff]   ;;  %v328_v5 = vld [vmem:[%s438_s1 + $0x24] ss:$8 sps:$4 sm:$0xff]   ;;  %v330_v6 = vld [vmem:[%s438_s1 + $0x20] ss:$8 sps:$4 sm:$0xff]  }
   0x3   :  { %148 = vmatpush1.bf16.msra.mxu0 %v324_v2  ;;  %313 = vmatpush1.bf16.msra.mxu1 %v324_v2  ;;  %v331_v7 = vld [vmem:[%s438_s1 + $0x34] ss:$8 sps:$4 sm:$0xff]   ;;  %v333_v8 = vld [vmem:[%s438_s1 + $0x30] ss:$8 sps:$4 sm:$0xff]   ;;  %v334_v9 = vld [vmem:[%s438_s1 + $0x44] ss:$8 sps:$4 sm:$0xff]  }
   0x4   :  { %149 = vmatprep.subr.bf16.mxu0 %v325_v3  ;;  %306 = vmatprep.subr.bf16.mxu1 %v325_v3  ;;  %v336_v10 = vld [vmem:[%s438_s1 + $0x40] ss:$8 sps:$4 sm:$0xff]   ;;  %v337_v11 = vld [vmem:[%s438_s1 + $0x54] ss:$8 sps:$4 sm:$0xff]   ;;  %v339_v12 = vld [vmem:[%s438_s1 + $0x50] ss:$8 sps:$4 sm:$0xff]  }
   0x5   :  { %v340_v13 = vld [vmem:[%s438_s1 + $0x64] ss:$8 sps:$4 sm:$0xff]   ;;  %v342_v14 = vld [vmem:[%s438_s1 + $0x60] ss:$8 sps:$4 sm:$0xff]   ;;  %v343_v15 = vld [vmem:[%s438_s1 + $0x74] ss:$8 sps:$4 sm:$0xff]  }
   0x6   :  { %v345_v16 = vld [vmem:[%s438_s1 + $0x70] ss:$8 sps:$4 sm:$0xff]   ;;  %v346_v17 = vld [vmem:[%s439_s0] sm:$0xff]   ;;  %v347_v18 = vld [vmem:[%s439_s0 + $0x8] sm:$0xff]   ;;  %v230_v20 = vshrl.u32 %v229_v19, 7 }
   0x7   :  { %150 = vmatpush1.bf16.msra.mxu0 %v327_v4  ;;  %314 = vmatpush1.bf16.msra.mxu1 %v327_v4  ;;  %v227_v22 = vld [vmem:[%s440_s2] sm:$0x3] }
   0x8   :  { %151 = vmatprep.subr.bf16.mxu0 %v328_v5  ;;  %307 = vmatprep.subr.bf16.mxu1 %v328_v5  ;;  %v231_v21 = vsub.s32 0, %v230_v20  ;;  %v235_v23 = vsub.s32 1, %v230_v20 }
   0xa   :  { %v232_v24 = vrot.slane %v227_v22, %v231_v21  ;;  %v236_v25 = vrot.slane %v227_v22, %v235_v23 }
   0xb   :  { %152 = vmatpush1.bf16.msra.mxu0 %v330_v6  ;;  %315 = vmatpush1.bf16.msra.mxu1 %v330_v6 }
   0xc   :  { %153 = vmatprep.subr.bf16.mxu0 %v331_v7  ;;  %308 = vmatprep.subr.bf16.mxu1 %v331_v7 }
   0xf   :  { %154 = vmatpush1.bf16.msra.mxu0 %v333_v8  ;;  %316 = vmatpush1.bf16.msra.mxu1 %v333_v8 }
  0x10   :  { %155 = vmatprep.subr.bf16.mxu0 %v334_v9  ;;  %309 = vmatprep.subr.bf16.mxu1 %v334_v9 }
  0x13   :  { %156 = vmatpush1.bf16.msra.mxu0 %v336_v10  ;;  %317 = vmatpush1.bf16.msra.mxu1 %v336_v10 }
  0x14   :  { %157 = vmatprep.subr.bf16.mxu0 %v337_v11  ;;  %310 = vmatprep.subr.bf16.mxu1 %v337_v11 }
  0x17   :  { %158 = vmatpush1.bf16.msra.mxu0 %v339_v12  ;;  %318 = vmatpush1.bf16.msra.mxu1 %v339_v12 }
  0x18   :  { %159 = vmatprep.subr.bf16.mxu0 %v340_v13  ;;  %311 = vmatprep.subr.bf16.mxu1 %v340_v13 }
  0x1b   :  { %160 = vmatpush1.bf16.msra.mxu0 %v342_v14  ;;  %319 = vmatpush1.bf16.msra.mxu1 %v342_v14 }
  0x1c   :  { %161 = vmatprep.subr.bf16.mxu0 %v343_v15  ;;  %312 = vmatprep.subr.bf16.mxu1 %v343_v15 }
  0x1f   :  { %162 = vmatpush1.bf16.msra.mxu0 %v345_v16  ;;  %320 = vmatpush1.bf16.msra.mxu1 %v345_v16 }
  0x22   :  { %180 = vmatmul.mubr.bf16.vlgmr.msra.gmra.mrb[0].mxu0 %v346_v17  ;;  %190 = vmatmul.mubr.bf16.vlgmr.msra.gmra.mrb[0].mxu1 %v347_v18 }
  0xf5   :  { %v181_v26 = vpop.f32.mrb[0].mxu0  ;;  %v191_v27 = vpop.f32.mrb[0].mxu1 }
  0xf6   :  { %v239_v28 = vadd.f32 %v232_v24, %v181_v26  ;;  %v243_v29 = vadd.f32 %v232_v24, %v191_v27  ;;  %v183_v30 = vpop.f32.mrb[1].mxu0  ;;  %v193_v31 = vpop.f32.mrb[1].mxu1 }
  0xf7   :  { %v240_v32 = vadd.f32 %v236_v25, %v183_v30  ;;  %v244_v33 = vadd.f32 %v236_v25, %v193_v31  ;;  %v185_v34 = vpop.f32.mrb[2].mxu0  ;;  %v195_v35 = vpop.f32.mrb[2].mxu1 }
  0xf8   :  { %v241_v36 = vadd.f32 %v232_v24, %v185_v34  ;;  %v245_v37 = vadd.f32 %v232_v24, %v195_v35  ;;  %v187_v38 = vpop.f32.mrb[3].mxu0  ;;  %v197_v39 = vpop.f32.mrb[3].mxu1 }
  0xf9   :  { %v301_v40 = vpack.c.bf16 %v240_v32, %v239_v28  ;;  %v303_v41 = vpack.c.bf16 %v244_v33, %v243_v29  ;;  %v242_v42 = vadd.f32 %v236_v25, %v187_v38  ;;  %v246_v43 = vadd.f32 %v236_v25, %v197_v39 }
  0xfb   :  { %271 = vst [vmem:[%s441_s3] sm:$0xff] %v301_v40  ;;  %273 = vst [vmem:[%s441_s3 + $0x10] sm:$0xff] %v303_v41  ;;  %v302_v44 = vpack.c.bf16 %v242_v42, %v241_v36  ;;  %v304_v45 = vpack.c.bf16 %v246_v43, %v245_v37 }
  0xfd   :  { %272 = vst [vmem:[%s441_s3 + $0x8] sm:$0xff] %v302_v44  ;;  %274 = vst [vmem:[%s441_s3 + $0x18] sm:$0xff] %v304_v45 }

// kernel: deeplabv3_forward.209
= control target key start
LH: loop header
LB: loop body
LE: loop exit
PB: predicated region body
PF: predicated region fallthrough
CT: control target
= control target key end

     0   :  { %s1001_s1 = inlined_call_operand.vmem [shape: bf16[640,128], index: 1, kind: input, shape index: {}]   ;;  %s1002_s0 = inlined_call_operand.vmem [shape: bf16[32,640], index: 0, kind: input, shape index: {}]   ;;  %s1003_s2 = inlined_call_operand.vmem [shape: f32[1,128], index: 2, kind: input, shape index: {}]   ;;  %s1004_s3 = inlined_call_operand.vmem [shape: bf16[32,128], index: 3, kind: output, shape index: {}]  }
   0x1   :  { %v768_v0 = vld [vmem:[%s1001_s1 + $0x40] sm:$0xff]   ;;  %v772_v4 = vld [vmem:[%s1001_s1 + $0x48] sm:$0xff]   ;;  %v776_v8 = vld [vmem:[%s1001_s1 + $0x50] sm:$0xff]  }
   0x2   :  { %v769_v1 = vld [vmem:[%s1001_s1 + $0xc0] sm:$0xff]   ;;  %682 = vmatprep.subr.bf16.mxu0 %v768_v0  ;;  %v773_v5 = vld [vmem:[%s1001_s1 + $0xc8] sm:$0xff]   ;;  %v777_v9 = vld [vmem:[%s1001_s1 + $0xd0] sm:$0xff]  }
   0x3   :  { %v770_v2 = vld [vmem:[%s1001_s1] sm:$0xff]   ;;  %710 = vmatprep.subr.bf16.mxu1 %v769_v1  ;;  %v774_v6 = vld [vmem:[%s1001_s1 + $0x8] sm:$0xff]   ;;  %v778_v10 = vld [vmem:[%s1001_s1 + $0x10] sm:$0xff]  }
   0x4   :  { %v771_v3 = vld [vmem:[%s1001_s1 + $0x80] sm:$0xff]   ;;  %683 = vmatpush3.bf16.msra.mxu0 %v770_v2  ;;  %v775_v7 = vld [vmem:[%s1001_s1 + $0x88] sm:$0xff]   ;;  %v779_v11 = vld [vmem:[%s1001_s1 + $0x90] sm:$0xff]  }
   0x5   :  { %711 = vmatpush3.bf16.msra.mxu1 %v771_v3  ;;  %684 = vmatprep.subr.bf16.mxu0 %v772_v4  ;;  %v780_v12 = vld [vmem:[%s1001_s1 + $0x58] sm:$0xff]   ;;  %v784_v16 = vld [vmem:[%s1001_s1 + $0x60] sm:$0xff]   ;;  %v788_v20 = vld [vmem:[%s1001_s1 + $0x68] sm:$0xff]  }
   0x6   :  { %712 = vmatprep.subr.bf16.mxu1 %v773_v5  ;;  %v781_v13 = vld [vmem:[%s1001_s1 + $0xd8] sm:$0xff]   ;;  %v785_v17 = vld [vmem:[%s1001_s1 + $0xe0] sm:$0xff]   ;;  %v789_v21 = vld [vmem:[%s1001_s1 + $0xe8] sm:$0xff]  }
   0x7   :  { %v782_v14 = vld [vmem:[%s1001_s1 + $0x18] sm:$0xff]   ;;  %v786_v18 = vld [vmem:[%s1001_s1 + $0x20] sm:$0xff]   ;;  %v790_v22 = vld [vmem:[%s1001_s1 + $0x28] sm:$0xff]  }
   0x8   :  { %685 = vmatpush3.bf16.msra.mxu0 %v774_v6  ;;  %v783_v15 = vld [vmem:[%s1001_s1 + $0x98] sm:$0xff]   ;;  %v787_v19 = vld [vmem:[%s1001_s1 + $0xa0] sm:$0xff]   ;;  %v791_v23 = vld [vmem:[%s1001_s1 + $0xa8] sm:$0xff]  }
   0x9   :  { %713 = vmatpush3.bf16.msra.mxu1 %v775_v7  ;;  %686 = vmatprep.subr.bf16.mxu0 %v776_v8  ;;  %v792_v24 = vld [vmem:[%s1001_s1 + $0x70] sm:$0xff]   ;;  %v796_v28 = vld [vmem:[%s1001_s1 + $0x78] sm:$0xff]   ;;  %v805_v35 = vld [vmem:[%s1002_s0 + $0xc] ss:$20 sps:$4 sm:$0xff]  }
   0xa   :  { %714 = vmatprep.subr.bf16.mxu1 %v777_v9  ;;  %v793_v25 = vld [vmem:[%s1001_s1 + $0xf0] sm:$0xff]   ;;  %v797_v29 = vld [vmem:[%s1001_s1 + $0xf8] sm:$0xff]   ;;  %v806_v36 = vld [vmem:[%s1001_s1 + $0x100] sm:$0xff]   ;;  %492 = vmatprep.mubr.bf16.mxu1 %v805_v35 }
   0xb   :  { %v794_v26 = vld [vmem:[%s1001_s1 + $0x30] sm:$0xff]   ;;  %v798_v30 = vld [vmem:[%s1001_s1 + $0x38] sm:$0xff]   ;;  %v807_v37 = vld [vmem:[%s1001_s1 + $0x108] sm:$0xff]  }
   0xc   :  { %687 = vmatpush3.bf16.msra.mxu0 %v778_v10  ;;  %v795_v27 = vld [vmem:[%s1001_s1 + $0xb0] sm:$0xff]   ;;  %v799_v31 = vld [vmem:[%s1001_s1 + $0xb8] sm:$0xff]   ;;  %v811_v39 = vld [vmem:[%s1002_s0 + $0x2c] ss:$20 sps:$4 sm:$0xff]  }
   0xd   :  { %715 = vmatpush3.bf16.msra.mxu1 %v779_v11  ;;  %688 = vmatprep.subr.bf16.mxu0 %v780_v12  ;;  %v800_v32 = vld [vmem:[%s1002_s0] ss:$20 sps:$4 sm:$0xff]   ;;  %v802_v33 = vld [vmem:[%s1002_s0 + $0x4] ss:$20 sps:$4 sm:$0xff]   ;;  %v803_v34 = vld [vmem:[%s1002_s0 + $0x8] ss:$20 sps:$4 sm:$0xff]  }
   0xe   :  { %716 = vmatprep.subr.bf16.mxu1 %v781_v13  ;;  %443 = vmatprep.mubr.bf16.mxu0 %v802_v33  ;;  %v808_v38 = vld [vmem:[%s1001_s1 + $0x110] sm:$0xff]   ;;  %v809_v41 = vld [vmem:[%s1001_s1 + $0x118] sm:$0xff]   ;;  %v810_v45 = vld [vmem:[%s1001_s1 + $0x120] sm:$0xff]  }
   0xf   :  { %v813_v40 = vld [vmem:[%s1002_s0 + $0x34] ss:$20 sps:$4 sm:$0xff]   ;;  %v817_v43 = vld [vmem:[%s1002_s0 + $0x30] ss:$20 sps:$4 sm:$0xff]   ;;  %v819_v48 = vld [vmem:[%s1001_s1 + $0x138] sm:$0xff]  }
  0x10   :  { %689 = vmatpush3.bf16.msra.mxu0 %v782_v14  ;;  %v816_v42 = vld [vmem:[%s1002_s0 + $0x28] ss:$20 sps:$4 sm:$0xff]   ;;  %v820_v44 = vld [vmem:[%s1002_s0 + $0x10] ss:$20 sps:$4 sm:$0xff]   ;;  %v821_v49 = vld [vmem:[%s1002_s0 + $0x38] ss:$20 sps:$4 sm:$0xff]  }
  0x11   :  { %717 = vmatpush3.bf16.msra.mxu1 %v783_v15  ;;  %690 = vmatprep.subr.bf16.mxu0 %v784_v16  ;;  %v815_v46 = vld [vmem:[%s1001_s1 + $0x128] sm:$0xff]   ;;  %v818_v47 = vld [vmem:[%s1001_s1 + $0x130] sm:$0xff]   ;;  %v662_v15 = vld [vmem:[%s1003_s2] ss:$0 sm:$0xff] }
  0x12   :  { %718 = vmatprep.subr.bf16.mxu1 %v785_v17 }
  0x14   :  { %691 = vmatpush3.bf16.msra.mxu0 %v786_v18 }
  0x15   :  { %719 = vmatpush3.bf16.msra.mxu1 %v787_v19  ;;  %692 = vmatprep.subr.bf16.mxu0 %v788_v20 }
  0x16   :  { %720 = vmatprep.subr.bf16.mxu1 %v789_v21 }
  0x18   :  { %693 = vmatpush3.bf16.msra.mxu0 %v790_v22 }
  0x19   :  { %721 = vmatpush3.bf16.msra.mxu1 %v791_v23  ;;  %694 = vmatprep.subr.bf16.mxu0 %v792_v24 }
  0x1a   :  { %722 = vmatprep.subr.bf16.mxu1 %v793_v25 }
  0x1c   :  { %695 = vmatpush3.bf16.msra.mxu0 %v794_v26 }
  0x1d   :  { %723 = vmatpush3.bf16.msra.mxu1 %v795_v27  ;;  %696 = vmatprep.subr.bf16.mxu0 %v796_v28 }
  0x1e   :  { %724 = vmatprep.subr.bf16.mxu1 %v797_v29 }
  0x20   :  { %697 = vmatpush3.bf16.msra.mxu0 %v798_v30 }
  0x21   :  { %725 = vmatpush3.bf16.msra.mxu1 %v799_v31  ;;  %748 = vmatprep.subr.bf16.mxu0 %v806_v36 }
  0x23   :  { %444 = vmatmul.mubr.bf16.vlgmr.msra.gmra.mrb[0].mxu0 %v800_v32 }
  0x24   :  { %493 = vmatmul.mubr.bf16.vlgmr.msra.gmra.mrb[0].mxu1 %v803_v34  ;;  %749 = vmatpush3.bf16.msra.mxu0 %v806_v36 }
  0x25   :  { %750 = vmatprep.subr.bf16.mxu0 %v807_v37  ;;  %451 = vmatprep.mubr.bf16.mxu0 %v811_v39 }
  0x26   :  { %500 = vmatprep.mubr.bf16.mxu1 %v813_v40 }
  0x28   :  { %751 = vmatpush3.bf16.msra.mxu0 %v807_v37 }
  0x29   :  { %752 = vmatprep.subr.bf16.mxu0 %v808_v38 }
  0x2b   :  { %452 = vmatmul.mubr.bf16.gmra.mrb[4].mxu0 %v816_v42 }
  0x2c   :  { %501 = vmatmul.mubr.bf16.gmra.mrb[4].mxu1 %v817_v43  ;;  %753 = vmatpush3.bf16.msra.mxu0 %v808_v38 }
  0x2d   :  { %754 = vmatprep.subr.bf16.mxu0 %v809_v41  ;;  %764 = vmatprep.mubr.bf16.mxu0 %v820_v44 }
  0x30   :  { %755 = vmatpush3.bf16.msra.mxu0 %v809_v41 }
  0x31   :  { %756 = vmatprep.subr.bf16.mxu0 %v810_v45 }
  0x34   :  { %757 = vmatpush3.bf16.msra.mxu0 %v810_v45 }
  0x35   :  { %758 = vmatprep.subr.bf16.mxu0 %v815_v46 }
  0x38   :  { %759 = vmatpush3.bf16.msra.mxu0 %v815_v46 }
  0x39   :  { %760 = vmatprep.subr.bf16.mxu0 %v818_v47 }
  0x3c   :  { %761 = vmatpush3.bf16.msra.mxu0 %v818_v47 }
  0x3d   :  { %762 = vmatprep.subr.bf16.mxu0 %v819_v48 }
  0x40   :  { %763 = vmatpush3.bf16.msra.mxu0 %v819_v48 }
  0x43   :  { %765 = vmatmul.mubr.bf16.vlgmr.msra.gmra.mrb[8].mxu0 %v821_v49 }
  0xf6   :  { %v698_v50 = vpop.f32.mrb[0].mxu0 }
  0xf7   :  { %v726_v51 = vpop.f32.mrb[0].mxu1  ;;  %v699_v52 = vpop.f32.mrb[1].mxu0 }
  0xf8   :  { %v700_v53 = vadd.f32 %v699_v52, %v698_v50  ;;  %v727_v54 = vpop.f32.mrb[1].mxu1  ;;  %v701_v55 = vpop.f32.mrb[2].mxu0 }
  0xf9   :  { %v728_v56 = vadd.f32 %v727_v54, %v726_v51  ;;  %v729_v57 = vpop.f32.mrb[2].mxu1  ;;  %v702_v58 = vpop.f32.mrb[3].mxu0 }
  0xfa   :  { %v703_v59 = vadd.f32 %v702_v58, %v701_v55  ;;  %v730_v60 = vpop.f32.mrb[3].mxu1 }
  0xfb   :  { %v731_v61 = vadd.f32 %v730_v60, %v729_v57  ;;  %v495_v62 = vadd.f32 %v728_v56, %v700_v53 }
  0xfd   :  { %v498_v63 = vadd.f32 %v731_v61, %v703_v59 }
  0xfe   :  { %v704_v0 = vpop.f32.mrb[4].mxu0 }
  0xff   :  { %v732_v1 = vpop.f32.mrb[4].mxu1  ;;  %v705_v2 = vpop.f32.mrb[5].mxu0 }
 0x100   :  { %v706_v3 = vadd.f32 %v705_v2, %v704_v0  ;;  %v733_v4 = vpop.f32.mrb[5].mxu1  ;;  %v707_v5 = vpop.f32.mrb[6].mxu0 }
 0x101   :  { %v734_v6 = vadd.f32 %v733_v4, %v732_v1  ;;  %v735_v7 = vpop.f32.mrb[6].mxu1  ;;  %v708_v8 = vpop.f32.mrb[7].mxu0 }
 0x102   :  { %v709_v9 = vadd.f32 %v708_v8, %v707_v5  ;;  %v736_v10 = vpop.f32.mrb[7].mxu1 }
 0x103   :  { %v737_v11 = vadd.f32 %v736_v10, %v735_v7  ;;  %v503_v12 = vadd.f32 %v734_v6, %v706_v3 }
 0x105   :  { %v506_v13 = vadd.f32 %v737_v11, %v709_v9 }
 0x116   :  { %v766_v14 = vpop.f32.mrb[8].mxu0 }
 0x117   :  { %v552_v16 = vadd.f32 %v766_v14, %v503_v12  ;;  %v543_v17 = vpop.f32.mrb[9].mxu0 }
 0x118   :  { %v544_v18 = vadd.f32 %v543_v17, %v495_v62  ;;  %v767_v19 = vpop.f32.mrb[10].mxu0 }
 0x119   :  { %v582_v20 = vadd.f32 %v662_v15, %v552_v16  ;;  %v555_v21 = vadd.f32 %v767_v19, %v506_v13  ;;  %v546_v22 = vpop.f32.mrb[11].mxu0 }
 0x11a   :  { %v580_v23 = vadd.f32 %v662_v15, %v544_v18  ;;  %v547_v24 = vadd.f32 %v546_v22, %v498_v63 }
 0x11b   :  { %v583_v25 = vadd.f32 %v662_v15, %v555_v21  ;;  %v586_v27 = vmax.f32 %v582_v20, 0.0 }
 0x11c   :  { %v581_v26 = vadd.f32 %v662_v15, %v547_v24  ;;  %v584_v29 = vmax.f32 %v580_v23, 0.0 }
 0x11d   :  { %v587_v28 = vmax.f32 %v583_v25, 0.0 }
 0x11e   :  { %v585_v30 = vmax.f32 %v581_v26, 0.0 }
 0x11f   :  { %v679_v31 = vpack.c.bf16 %v587_v28, %v586_v27 }
 0x120   :  { %v674_v32 = vpack.c.bf16 %v585_v30, %v584_v29 }
 0x121   :  { %681 = vst [vmem:[%s1004_s3 + $0x8] sm:$0xff] %v679_v31  }
 0x122   :  { %675 = vst [vmem:[%s1004_s3] sm:$0xff] %v674_v32  }

// kernel: deeplabv3_forward.222
= control target key start
LH: loop header
LB: loop body
LE: loop exit
PB: predicated region body
PF: predicated region fallthrough
CT: control target
= control target key end

     0   :  { %s387_s1 = inlined_call_operand.vmem [shape: bf16[256,128], index: 1, kind: input, shape index: {}]   ;;  %s388_s0 = inlined_call_operand.vmem [shape: bf16[16,256], index: 0, kind: input, shape index: {}]   ;;  %s389_s2 = inlined_call_operand.vmem [shape: f32[1,128], index: 2, kind: input, shape index: {}]   ;;  %s390_s3 = inlined_call_operand.vmem [shape: bf16[16,128], index: 3, kind: output, shape index: {}]  }
   0x1   :  { %v288_v0 = vld [vmem:[%s387_s1 + $0x40] sm:$0xff]   ;;  %v290_v2 = vld [vmem:[%s387_s1 + $0x48] sm:$0xff]   ;;  %v292_v4 = vld [vmem:[%s387_s1 + $0x50] sm:$0xff]  }
   0x2   :  { %v289_v1 = vld [vmem:[%s387_s1] sm:$0xff]   ;;  %266 = vmatprep.subr.bf16.mxu0 %v288_v0  ;;  %v291_v3 = vld [vmem:[%s387_s1 + $0x8] sm:$0xff]   ;;  %v293_v5 = vld [vmem:[%s387_s1 + $0x10] sm:$0xff]  }
   0x3   :  { %267 = vmatpush3.bf16.msra.mxu0 %v289_v1  ;;  %v294_v6 = vld [vmem:[%s387_s1 + $0x58] sm:$0xff]   ;;  %v296_v8 = vld [vmem:[%s387_s1 + $0x60] sm:$0xff]   ;;  %v298_v10 = vld [vmem:[%s387_s1 + $0x68] sm:$0xff]  }
   0x4   :  { %268 = vmatprep.subr.bf16.mxu0 %v290_v2  ;;  %v295_v7 = vld [vmem:[%s387_s1 + $0x18] sm:$0xff]   ;;  %v297_v9 = vld [vmem:[%s387_s1 + $0x20] sm:$0xff]   ;;  %v299_v12 = vld [vmem:[%s387_s1 + $0x28] sm:$0xff]  }
   0x5   :  { %v306_v11 = vld [vmem:[%s388_s0 + $0x4] ss:$8 sps:$4 sm:$0xff]   ;;  %v300_v13 = vld [vmem:[%s387_s1 + $0x70] sm:$0xff]   ;;  %v302_v15 = vld [vmem:[%s387_s1 + $0x78] sm:$0xff]  }
   0x6   :  { %195 = vmatprep.mubr.bf16.mxu0 %v306_v11  ;;  %v301_v14 = vld [vmem:[%s387_s1 + $0x30] sm:$0xff]   ;;  %v303_v16 = vld [vmem:[%s387_s1 + $0x38] sm:$0xff]   ;;  %v304_v17 = vld [vmem:[%s388_s0] ss:$8 sps:$4 sm:$0xff]  }
   0x7   :  { %269 = vmatpush3.bf16.msra.mxu0 %v291_v3  ;;  %v256_v20 = vld [vmem:[%s389_s2] ss:$0 sm:$0xff] }
   0x8   :  { %270 = vmatprep.subr.bf16.mxu0 %v292_v4 }
   0xb   :  { %271 = vmatpush3.bf16.msra.mxu0 %v293_v5 }
   0xc   :  { %272 = vmatprep.subr.bf16.mxu0 %v294_v6 }
   0xf   :  { %273 = vmatpush3.bf16.msra.mxu0 %v295_v7 }
  0x10   :  { %274 = vmatprep.subr.bf16.mxu0 %v296_v8 }
  0x13   :  { %275 = vmatpush3.bf16.msra.mxu0 %v297_v9 }
  0x14   :  { %276 = vmatprep.subr.bf16.mxu0 %v298_v10 }
  0x17   :  { %277 = vmatpush3.bf16.msra.mxu0 %v299_v12 }
  0x18   :  { %278 = vmatprep.subr.bf16.mxu0 %v300_v13 }
  0x1b   :  { %279 = vmatpush3.bf16.msra.mxu0 %v301_v14 }
  0x1c   :  { %280 = vmatprep.subr.bf16.mxu0 %v302_v15 }
  0x1f   :  { %281 = vmatpush3.bf16.msra.mxu0 %v303_v16 }
  0x22   :  { %196 = vmatmul.mubr.bf16.vlgmr.msra.gmra.mrb[0].mxu0 %v304_v17 }
  0xf5   :  { %v282_v18 = vpop.f32.mrb[0].mxu0 }
  0xf6   :  { %v283_v19 = vpop.f32.mrb[1].mxu0 }
  0xf7   :  { %v284_v21 = vadd.f32 %v283_v19, %v282_v18  ;;  %v285_v22 = vpop.f32.mrb[2].mxu0 }
  0xf8   :  { %v286_v23 = vpop.f32.mrb[3].mxu0 }
  0xf9   :  { %v220_v24 = vadd.f32 %v284_v21, %v256_v20  ;;  %v287_v25 = vadd.f32 %v286_v23, %v285_v22 }
  0xfb   :  { %v221_v26 = vadd.f32 %v287_v25, %v256_v20  ;;  %v222_v27 = vmax.f32 %v220_v24, 0.0 }
  0xfd   :  { %v223_v28 = vmax.f32 %v221_v26, 0.0 }
  0xff   :  { %v264_v29 = vpack.c.bf16 %v223_v28, %v222_v27 }
 0x101   :  { %265 = vst [vmem:[%s390_s3] sm:$0xff] %v264_v29  }

// kernel: deeplabv3_forward.225
= control target key start
LH: loop header
LB: loop body
LE: loop exit
PB: predicated region body
PF: predicated region fallthrough
CT: control target
= control target key end

     0   :  { %s306_s1 = inlined_call_operand.vmem [shape: bf16[128,128], index: 1, kind: input, shape index: {}]   ;;  %s307_s0 = inlined_call_operand.vmem [shape: bf16[32,128], index: 0, kind: input, shape index: {}]   ;;  %s308_s2 = inlined_call_operand.vmem [shape: f32[1,128], index: 2, kind: input, shape index: {}]   ;;  %s309_s3 = inlined_call_operand.vmem [shape: f32[32,128], index: 3, kind: output, shape index: {}]  }
   0x1   :  { %v231_v0 = vld [vmem:[%s306_s1] sm:$0xff]   ;;  %v232_v1 = vld [vmem:[%s306_s1 + $0x8] sm:$0xff]   ;;  %v233_v2 = vld [vmem:[%s306_s1 + $0x10] sm:$0xff]  }
   0x2   :  { %211 = vmatprep.subr.bf16.mxu0 %v231_v0  ;;  %v234_v3 = vld [vmem:[%s306_s1 + $0x18] sm:$0xff]   ;;  %v239_v4 = vld [vmem:[%s307_s0] sm:$0xff]   ;;  %v236_v6 = vld [vmem:[%s306_s1 + $0x28] sm:$0xff]  }
   0x3   :  { %212 = vmatpush3.bf16.msra.mxu0 %v231_v0  ;;  %227 = vmatprep.mubr.bf16.mxu0 %v239_v4  ;;  %v235_v5 = vld [vmem:[%s306_s1 + $0x20] sm:$0xff]   ;;  %v237_v7 = vld [vmem:[%s306_s1 + $0x30] sm:$0xff]   ;;  %v238_v8 = vld [vmem:[%s306_s1 + $0x38] sm:$0xff]  }
   0x4   :  { %213 = vmatprep.subr.bf16.mxu0 %v232_v1  ;;  %v240_v9 = vld [vmem:[%s307_s0 + $0x8] sm:$0xff]   ;;  %v200_v10 = vld [vmem:[%s308_s2] ss:$0 sm:$0xff] }
   0x7   :  { %214 = vmatpush3.bf16.msra.mxu0 %v232_v1 }
   0x8   :  { %215 = vmatprep.subr.bf16.mxu0 %v233_v2 }
   0xb   :  { %216 = vmatpush3.bf16.msra.mxu0 %v233_v2 }
   0xc   :  { %217 = vmatprep.subr.bf16.mxu0 %v234_v3 }
   0xf   :  { %218 = vmatpush3.bf16.msra.mxu0 %v234_v3 }
  0x10   :  { %219 = vmatprep.subr.bf16.mxu0 %v235_v5 }
  0x13   :  { %220 = vmatpush3.bf16.msra.mxu0 %v235_v5 }
  0x14   :  { %221 = vmatprep.subr.bf16.mxu0 %v236_v6 }
  0x17   :  { %222 = vmatpush3.bf16.msra.mxu0 %v236_v6 }
  0x18   :  { %223 = vmatprep.subr.bf16.mxu0 %v237_v7 }
  0x1b   :  { %224 = vmatpush3.bf16.msra.mxu0 %v237_v7 }
  0x1c   :  { %225 = vmatprep.subr.bf16.mxu0 %v238_v8 }
  0x1f   :  { %226 = vmatpush3.bf16.msra.mxu0 %v238_v8 }
  0x22   :  { %228 = vmatmul.mubr.bf16.vlgmr.msra.gmra.mrb[0].mxu0 %v240_v9 }
  0xf5   :  { %v229_v11 = vpop.f32.mrb[0].mxu0 }
  0xf6   :  { %v180_v12 = vadd.f32 %v229_v11, %v200_v10  ;;  %v141_v13 = vpop.f32.mrb[1].mxu0 }
  0xf7   :  { %v178_v14 = vadd.f32 %v200_v10, %v141_v13  ;;  %v230_v15 = vpop.f32.mrb[2].mxu0 }
  0xf8   :  { %184 = vst [vmem:[%s309_s3 + $0x10] sm:$0xff] %v180_v12  ;;  %v181_v16 = vadd.f32 %v230_v15, %v200_v10  ;;  %v144_v17 = vpop.f32.mrb[3].mxu0 }
  0xf9   :  { %182 = vst [vmem:[%s309_s3] sm:$0xff] %v178_v14  ;;  %v179_v18 = vadd.f32 %v200_v10, %v144_v17 }
  0xfa   :  { %185 = vst [vmem:[%s309_s3 + $0x18] sm:$0xff] %v181_v16 }
  0xfb   :  { %183 = vst [vmem:[%s309_s3 + $0x8] sm:$0xff] %v179_v18 }

</bundles_post_ra>
